<compile_context>
chip_gen: v6e
topology: v6e:2x2x1
jax: 0.10.0
libtpu: 0.0.40
codegen_flags: <defaults>
</compile_context>

<pallas_src>
import functools

import jax
import jax.numpy as jnp
from jax.experimental import pallas as pl
from jax.experimental.pallas import tpu as pltpu

BN_EPS = 1e-5
LRELU_SLOPE = 0.1
LANE = 128                        # channel dims are zero-padded to this
VMEM_LIMIT = 32 * 1024 * 1024     # safe scoped-VMEM request on v5e/v6e/v7x


# ---------------------------------------------------------------------------
# small helpers
# ---------------------------------------------------------------------------
def _round_up(x, m):
    return (x + m - 1) // m * m


def _pick_tile(padded_dim, candidates):
    """Largest candidate tile that divides the (already lane-padded) dim."""
    for c in candidates:
        if padded_dim % c == 0:
            return c
    return padded_dim


def _row_tile(m):
    """(tile, padded_rows) for the row axis M = N*H*W."""
    mp = _round_up(m, 8)
    if mp <= 256:
        return mp, mp
    return 256, _round_up(mp, 256)


# ---------------------------------------------------------------------------
# Pass A kernels: conv-as-matmul + per-channel sum / sum-of-squares partials
# ---------------------------------------------------------------------------
def _mm_stats_kernel(x_ref, w_ref, y_ref, st_ref, acc_ref):
    """1x1 conv tile: y = x @ w, tiled K reduction, BN partial stats."""
    k = pl.program_id(2)

    @pl.when(k == 0)
    def _():
        acc_ref[...] = jnp.zeros_like(acc_ref)

    acc_ref[...] += jnp.dot(x_ref[...], w_ref[...],
                            preferred_element_type=jnp.float32)

    @pl.when(k == pl.num_programs(2) - 1)
    def _():
        acc = acc_ref[...]
        y_ref[...] = acc.astype(y_ref.dtype)
        s = jnp.sum(acc, axis=0, keepdims=True)          # (1, TN)
        ss = jnp.sum(acc * acc, axis=0, keepdims=True)   # (1, TN)
        st_ref[0, :, :] = jnp.concatenate([s, ss], axis=0)


def _conv3x3_stats_kernel(x_ref, w_ref, y_ref, st_ref, *, H, W, C):
    """3x3/stride1/pad1 conv for one image: in-VMEM im2col (9 taps) + matmul.

    x_ref : (1, H+2, W+2, C)  bf16  padded image of one batch element
    w_ref : (9*C, TN)         bf16  tap-major weight slab
    y_ref : (1, H*W, TN)      bf16
    st_ref: (1, 2, TN)        f32   per-image channel sum / sumsq
    """
    tn = y_ref.shape[-1]
    acc = jnp.zeros((H * W, tn), jnp.float32)
    for kh in range(3):
        for kw in range(3):
            patch = x_ref[0, kh:kh + H, kw:kw + W, :].reshape(H * W, C)
            tap = (kh * 3 + kw) * C
            acc = acc + jnp.dot(patch, w_ref[tap:tap + C, :],
                                preferred_element_type=jnp.float32)
    y_ref[0, :, :] = acc.astype(y_ref.dtype)
    s = jnp.sum(acc, axis=0, keepdims=True)
    ss = jnp.sum(acc * acc, axis=0, keepdims=True)
    st_ref[0, :, :] = jnp.concatenate([s, ss], axis=0)
    # TODO(synk): for very large feature maps (per-image padded slab > a few
    # MiB) this kernel should tile over row blocks with a 1-row halo DMA
    # instead of taking the whole image per grid step.


# ---------------------------------------------------------------------------
# Pass B kernel: BN affine (scale/shift folded outside) + LeakyReLU
# ---------------------------------------------------------------------------
def _bn_lrelu_kernel(y_ref, sc_ref, sh_ref, o_ref):
    v = y_ref[...].astype(jnp.float32) * sc_ref[...] + sh_ref[...]
    o_ref[...] = jnp.where(v > 0, v, LRELU_SLOPE * v).astype(o_ref.dtype)


# ---------------------------------------------------------------------------
# pallas_call wrappers
# ---------------------------------------------------------------------------
def _matmul_stats(x2d, w2d):
    """x2d (M, Kp) @ w2d (Kp, Cp) -> y (Mp, Cp) bf16, stats (2, Cp) f32."""
    M, Kp = x2d.shape
    Cp = w2d.shape[1]
    TM, Mp = _row_tile(M)
    TK = _pick_tile(Kp, (512, 256, 128))
    TN = _pick_tile(Cp, (256, 128))
    if Mp != M:
        x2d = jnp.pad(x2d, ((0, Mp - M), (0, 0)))   # zero rows: no stat impact
    x2d = x2d.astype(jnp.bfloat16)
    w2d = w2d.astype(jnp.bfloat16)

    grid = (Mp // TM, Cp // TN, Kp // TK)
    flops = 2 * Mp * Kp * Cp
    bytes_acc = Mp * Kp * 2 + Kp * Cp * 2 + Mp * Cp * 2 + grid[0] * 2 * Cp * 4

    y, stats = pl.pallas_call(
        _mm_stats_kernel,
        out_shape=(jax.ShapeDtypeStruct((Mp, Cp), jnp.bfloat16),
                   jax.ShapeDtypeStruct((grid[0], 2, Cp), jnp.float32)),
        grid=grid,
        in_specs=[
            pl.BlockSpec((TM, TK), lambda i, j, k: (i, k)),
            pl.BlockSpec((TK, TN), lambda i, j, k: (k, j)),
        ],
        out_specs=(
            pl.BlockSpec((TM, TN), lambda i, j, k: (i, j)),
            pl.BlockSpec((1, 2, TN), lambda i, j, k: (i, 0, j)),
        ),
        scratch_shapes=[pltpu.VMEM((TM, TN), jnp.float32)],
        compiler_params=pltpu.CompilerParams(
            dimension_semantics=("parallel", "parallel", "arbitrary"),
            vmem_limit_bytes=VMEM_LIMIT),
        cost_estimate=pl.CostEstimate(flops=flops, transcendentals=0,
                                      bytes_accessed=bytes_acc),
    )(x2d, w2d)
    return y, jnp.sum(stats, axis=0)                 # (Mp, Cp), (2, Cp)


def _conv3x3_stats(xp, w2d, H, W):
    """xp (N, H+2, W+2, Cp_in) bf16, w2d (9*Cp_in, Cp_out) bf16."""
    N = xp.shape[0]
    Cp_in = xp.shape[-1]
    Cp_out = w2d.shape[1]
    TN = _pick_tile(Cp_out, (256, 128))
    HW = H * W
    grid = (N, Cp_out // TN)
    kernel = functools.partial(_conv3x3_stats_kernel, H=H, W=W, C=Cp_in)
    flops = 2 * N * HW * 9 * Cp_in * Cp_out
    bytes_acc = (xp.size * 2 + w2d.size * 2 + N * HW * Cp_out * 2
                 + N * 2 * Cp_out * 4)

    y, stats = pl.pallas_call(
        kernel,
        out_shape=(jax.ShapeDtypeStruct((N, HW, Cp_out), jnp.bfloat16),
                   jax.ShapeDtypeStruct((N, 2, Cp_out), jnp.float32)),
        grid=grid,
        in_specs=[
            pl.BlockSpec((1, H + 2, W + 2, Cp_in), lambda n, j: (n, 0, 0, 0)),
            pl.BlockSpec((9 * Cp_in, TN), lambda n, j: (0, j)),
        ],
        out_specs=(
            pl.BlockSpec((1, HW, TN), lambda n, j: (n, 0, j)),
            pl.BlockSpec((1, 2, TN), lambda n, j: (n, 0, j)),
        ),
        compiler_params=pltpu.CompilerParams(
            dimension_semantics=("parallel", "parallel"),
            vmem_limit_bytes=VMEM_LIMIT),
        cost_estimate=pl.CostEstimate(flops=flops, transcendentals=0,
                                      bytes_accessed=bytes_acc),
    )(xp.astype(jnp.bfloat16), w2d.astype(jnp.bfloat16))
    return y, jnp.sum(stats, axis=0)                 # (N, HW, Cp_out), (2, Cp_out)


def _bn_lrelu(y2d, scale, shift):
    """Elementwise pass B over y2d (M, Cp) bf16 with f32 scale/shift (1, Cp)."""
    M, Cp = y2d.shape
    TM, Mp = _row_tile(M)
    TN = _pick_tile(Cp, (256, 128))
    if Mp != M:
        y2d = jnp.pad(y2d, ((0, Mp - M), (0, 0)))
    grid = (Mp // TM, Cp // TN)
    bytes_acc = 2 * Mp * Cp * 2 + 2 * Cp * 4

    out = pl.pallas_call(
        _bn_lrelu_kernel,
        out_shape=jax.ShapeDtypeStruct((Mp, Cp), jnp.bfloat16),
        grid=grid,
        in_specs=[
            pl.BlockSpec((TM, TN), lambda i, j: (i, j)),
            pl.BlockSpec((1, TN), lambda i, j: (0, j)),
            pl.BlockSpec((1, TN), lambda i, j: (0, j)),
        ],
        out_specs=pl.BlockSpec((TM, TN), lambda i, j: (i, j)),
        compiler_params=pltpu.CompilerParams(
            dimension_semantics=("parallel", "parallel"),
            vmem_limit_bytes=VMEM_LIMIT),
        cost_estimate=pl.CostEstimate(flops=3 * Mp * Cp, transcendentals=0,
                                      bytes_accessed=bytes_acc),
    )(y2d, scale, shift)
    return out[:M]


# ---------------------------------------------------------------------------
# BN batch-stat folding (tiny per-channel math, plain JAX)
# ---------------------------------------------------------------------------
def _bn_affine(stats, gamma, beta, m_true, cp_out):
    cout = gamma.shape[0]
    g = jnp.pad(gamma.astype(jnp.float32), (0, cp_out - cout),
                constant_values=1.0)
    b = jnp.pad(beta.astype(jnp.float32), (0, cp_out - cout))
    mean = stats[0] / m_true
    var = jnp.maximum(stats[1] / m_true - mean * mean, 0.0)   # f32, clamped
    inv = jax.lax.rsqrt(var + BN_EPS)
    scale = g * inv
    shift = b - mean * scale
    return scale.reshape(1, cp_out), shift.reshape(1, cp_out)


# ---------------------------------------------------------------------------
# weight preparation (pad channels to lane multiples, tap-major 3x3 layout)
# ---------------------------------------------------------------------------
def _prep_w1x1(w, cp_in, cp_out):
    cout, cin = w.shape[0], w.shape[1]
    w2 = jnp.transpose(w[:, :, 0, 0], (1, 0))                      # (cin, cout)
    return jnp.pad(w2, ((0, cp_in - cin), (0, cp_out - cout)))


def _prep_w3x3(w, cp_in, cp_out):
    cout, cin = w.shape[0], w.shape[1]
    wt = jnp.transpose(w, (2, 3, 1, 0))                            # (3,3,cin,cout)
    wt = jnp.pad(wt, ((0, 0), (0, 0), (0, cp_in - cin), (0, cp_out - cout)))
    return wt.reshape(9 * cp_in, cp_out)


# ---------------------------------------------------------------------------
# one ConvolutionalLayer (Conv + BN(batch stats) + LeakyReLU)
# ---------------------------------------------------------------------------
def _layer_1x1(cur, w, gamma, beta):
    N, H, W, cp_in = cur.shape
    cout = w.shape[0]
    cp_out = _round_up(cout, LANE)
    M = N * H * W
    x2d = cur.reshape(M, cp_in)
    y2d, stats = _matmul_stats(x2d, _prep_w1x1(w, cp_in, cp_out))
    scale, shift = _bn_affine(stats, gamma, beta, M, cp_out)
    out2d = _bn_lrelu(y2d, scale, shift)
    return out2d[:M].reshape(N, H, W, cp_out)


def _layer_3x3(cur, w, gamma, beta):
    N, H, W, cp_in = cur.shape
    cout = w.shape[0]
    cp_out = _round_up(cout, LANE)
    M = N * H * W
    xp = jnp.pad(cur, ((0, 0), (1, 1), (1, 1), (0, 0)))     # spatial pad only
    y, stats = _conv3x3_stats(xp, _prep_w3x3(w, cp_in, cp_out), H, W)
    scale, shift = _bn_affine(stats, gamma, beta, M, cp_out)
    out2d = _bn_lrelu(y.reshape(M, cp_out), scale, shift)
    return out2d[:M].reshape(N, H, W, cp_out)


# ---------------------------------------------------------------------------
# parameters & forward
# ---------------------------------------------------------------------------
def init_params(key, in_channel, out_channel):
    """Synthetic parameters matching ConvolutionalSetLayer's five layers."""
    layer_defs = [
        (in_channel, out_channel, 1),
        (out_channel, in_channel, 3),
        (in_channel, out_channel, 1),
        (out_channel, in_channel, 3),
        (in_channel, out_channel, 1),
    ]
    params = []
    for (cin, cout, k) in layer_defs:
        key, kw, kb = jax.random.split(key, 3)
        w = jax.random.normal(kw, (cout, cin, k, k), jnp.float32) * 0.1
        # Conv bias exists in the PyTorch module but is exactly cancelled by
        # the train-mode BatchNorm mean subtraction, so it is never applied.
        b = jax.random.normal(kb, (cout,), jnp.float32) * 0.05
        gamma = jnp.ones((cout,), jnp.float32)    # BatchNorm2d default weight
        beta = jnp.zeros((cout,), jnp.float32)    # BatchNorm2d default bias
        params.append({"w": w, "b": b, "gamma": gamma, "beta": beta})
    return params


@jax.jit
def convolutional_set_layer(x_nchw, params):
    """Forward pass of ConvolutionalSetLayer. x_nchw: (N, Cin, H, W) f32."""
    N, Cin, H, W = x_nchw.shape
    cp = _round_up(Cin, LANE)
    cur = jnp.transpose(x_nchw, (0, 2, 3, 1))                       # NHWC
    cur = jnp.pad(cur, ((0, 0), (0, 0), (0, 0), (0, cp - Cin)))
    cur = cur.astype(jnp.bfloat16)
    for p in params:
        w = p["w"]
        ksize = w.shape[2]          # static shape -> no tracer bool conversion
        if ksize == 1:
            cur = _layer_1x1(cur, w, p["gamma"], p["beta"])
        else:
            cur = _layer_3x3(cur, w, p["gamma"], p["beta"])
    cout_final = params[-1]["w"].shape[0]
    out = jnp.transpose(cur, (0, 3, 1, 2)).astype(jnp.float32)      # NCHW
    return out[:, :cout_final]


if __name__ == "__main__":
    key = jax.random.PRNGKey(0)
    in_channel, out_channel = 8, 4
    N, H, W = 2, 16, 16

    kx, kp = jax.random.split(key)
    x = jax.random.normal(kx, (N, in_channel, H, W), jnp.float32)
    params = init_params(kp, in_channel, out_channel)

    out = jax.block_until_ready(convolutional_set_layer(x, params))

    assert out.shape == (N, out_channel, H, W), out.shape
    assert out.dtype == jnp.float32
    assert bool(jnp.all(jnp.isfinite(out)))
    print("KERNEL_OK")
</pallas_src>

<mosaic_0001>
module attributes {stable_mosaic.version = 11 : i64} {
  func.func @_mm_stats_kernel(%arg0: i32, %arg1: i32, %arg2: i32, %arg3: memref<256x128xbf16, #tpu.memory_space<vmem>>, %arg4: memref<128x128xbf16, #tpu.memory_space<vmem>>, %arg5: memref<256x128xbf16, #tpu.memory_space<vmem>>, %arg6: memref<1x2x128xf32, #tpu.memory_space<vmem>>, %arg7: memref<256x128xf32, #tpu.memory_space<vmem>>) attributes {dimension_semantics = [#tpu.dimension_semantics<parallel>, #tpu.dimension_semantics<parallel>, #tpu.dimension_semantics<arbitrary>], iteration_bounds = array<i64: 2, 1, 1>, scalar_prefetch = 0 : i64, scratch_operands = 1 : i64, tpu.core_type = #tpu.core_type<tc>, window_params = [{transform_indices = @transform_0, window_bounds = array<i64: 256, 128>}, {transform_indices = @transform_1, window_bounds = array<i64: 128, 128>}, {transform_indices = @transform_2, window_bounds = array<i64: 256, 128>}, {transform_indices = @transform_3, window_bounds = array<i64: 1, 2, 128>}]} {
    %c0_i32 = arith.constant 0 : i32
    %0 = arith.cmpi eq, %arg2, %c0_i32 : i32
    %1 = arith.extui %0 : i1 to i32
    %c0_i32_0 = arith.constant 0 : i32
    %2 = arith.cmpi ne, %1, %c0_i32_0 : i32
    scf.if %2 {
      %cst_10 = arith.constant 0.000000e+00 : f32
      %12 = vector.broadcast %cst_10 : f32 to vector<256x128xf32>
      %c0_11 = arith.constant 0 : index
      %c0_12 = arith.constant 0 : index
      %13 = vector.load %arg7[%c0_11, %c0_12] : memref<256x128xf32, #tpu.memory_space<vmem>>, vector<256x128xf32>
      tpu.vector_store %arg7[%c0_11, %c0_12], %12 {strides = array<i32>} : memref<256x128xf32, #tpu.memory_space<vmem>>, vector<256x128xf32>,
    } else {
    }
    %c0 = arith.constant 0 : index
    %c0_1 = arith.constant 0 : index
    %3 = vector.load %arg7[%c0, %c0_1] : memref<256x128xf32, #tpu.memory_space<vmem>>, vector<256x128xf32>
    %c0_2 = arith.constant 0 : index
    %c0_3 = arith.constant 0 : index
    %4 = vector.load %arg3[%c0_2, %c0_3] : memref<256x128xbf16, #tpu.memory_space<vmem>>, vector<256x128xbf16>
    %c0_4 = arith.constant 0 : index
    %c0_5 = arith.constant 0 : index
    %5 = vector.load %arg4[%c0_4, %c0_5] : memref<128x128xbf16, #tpu.memory_space<vmem>>, vector<128x128xbf16>
    %cst = arith.constant dense<0.000000e+00> : vector<256x128xf32>
    %6 = tpu.matmul %4, %5, %cst {dimension_numbers = #tpu.dot_dimension_numbers<[1], [0], [0], [1], [0, 0, 1, 1], [], []>} : vector<256x128xbf16>, vector<128x128xbf16>, vector<256x128xf32> -> vector<256x128xf32>
    %7 = arith.addf %3, %6 : vector<256x128xf32>
    %c0_6 = arith.constant 0 : index
    %c0_7 = arith.constant 0 : index
    %8 = vector.load %arg7[%c0_6, %c0_7] : memref<256x128xf32, #tpu.memory_space<vmem>>, vector<256x128xf32>
    tpu.vector_store %arg7[%c0_6, %c0_7], %7 {strides = array<i32>} : memref<256x128xf32, #tpu.memory_space<vmem>>, vector<256x128xf32>,
    %c0_i32_8 = arith.constant 0 : i32
    %9 = arith.cmpi eq, %arg2, %c0_i32_8 : i32
    %10 = arith.extui %9 : i1 to i32
    %c0_i32_9 = arith.constant 0 : i32
    %11 = arith.cmpi ne, %10, %c0_i32_9 : i32
    scf.if %11 {
      %c0_10 = arith.constant 0 : index
      %c0_11 = arith.constant 0 : index
      %12 = vector.load %arg7[%c0_10, %c0_11] : memref<256x128xf32, #tpu.memory_space<vmem>>, vector<256x128xf32>
      %13 = arith.truncf %12 : vector<256x128xf32> to vector<256x128xbf16>
      %c0_12 = arith.constant 0 : index
      %c0_13 = arith.constant 0 : index
      %14 = vector.load %arg5[%c0_12, %c0_13] : memref<256x128xbf16, #tpu.memory_space<vmem>>, vector<256x128xbf16>
      tpu.vector_store %arg5[%c0_12, %c0_13], %13 {strides = array<i32>} : memref<256x128xbf16, #tpu.memory_space<vmem>>, vector<256x128xbf16>,
      %cst_14 = arith.constant dense<0.000000e+00> : vector<128xf32>
      %15 = vector.multi_reduction <add>, %12, %cst_14 [0] : vector<256x128xf32> to vector<128xf32>
      %16 = vector.shape_cast %15 : vector<128xf32> to vector<1x128xf32>
      %17 = arith.mulf %12, %12 : vector<256x128xf32>
      %cst_15 = arith.constant dense<0.000000e+00> : vector<128xf32>
      %18 = vector.multi_reduction <add>, %17, %cst_15 [0] : vector<256x128xf32> to vector<128xf32>
      %19 = vector.shape_cast %18 : vector<128xf32> to vector<1x128xf32>
      %20 = tpu.concatenate %16, %19 in 0 : vector<1x128xf32>, vector<1x128xf32> -> vector<2x128xf32>
      %c0_16 = arith.constant 0 : index
      %c0_17 = arith.constant 0 : index
      %c0_18 = arith.constant 0 : index
      %21 = vector.load %arg6[%c0_16, %c0_17, %c0_18] : memref<1x2x128xf32, #tpu.memory_space<vmem>>, vector<1x2x128xf32>
      %22 = vector.shape_cast %21 : vector<1x2x128xf32> to vector<2x128xf32>
      %23 = vector.shape_cast %20 : vector<2x128xf32> to vector<1x2x128xf32>
      tpu.vector_store %arg6[%c0_16, %c0_17, %c0_18], %23 {strides = array<i32>} : memref<1x2x128xf32, #tpu.memory_space<vmem>>, vector<1x2x128xf32>,
    } else {
    }
    return
  }
  func.func @transform_0(%arg0: i32, %arg1: i32, %arg2: i32) -> (i32, i32) {
    %c0_i32 = arith.constant 0 : i32
    return %arg0, %arg2 : i32, i32
  }
  func.func @transform_1(%arg0: i32, %arg1: i32, %arg2: i32) -> (i32, i32) {
    %c0_i32 = arith.constant 0 : i32
    return %arg2, %arg1 : i32, i32
  }
  func.func @transform_2(%arg0: i32, %arg1: i32, %arg2: i32) -> (i32, i32) {
    %c0_i32 = arith.constant 0 : i32
    return %arg0, %arg1 : i32, i32
  }
  func.func @transform_3(%arg0: i32, %arg1: i32, %arg2: i32) -> (i32, i32, i32) {
    %c0_i32 = arith.constant 0 : i32
    %c0_i32_0 = arith.constant 0 : i32
    return %arg0, %c0_i32, %arg1 : i32, i32, i32
  }
}

module attributes {stable_mosaic.version = 11 : i64} {
  func.func @_bn_lrelu_kernel(%arg0: i32, %arg1: i32, %arg2: memref<256x128xbf16, #tpu.memory_space<vmem>>, %arg3: memref<1x128xf32, #tpu.memory_space<vmem>>, %arg4: memref<1x128xf32, #tpu.memory_space<vmem>>, %arg5: memref<256x128xbf16, #tpu.memory_space<vmem>>) attributes {dimension_semantics = [#tpu.dimension_semantics<parallel>, #tpu.dimension_semantics<parallel>], iteration_bounds = array<i64: 2, 1>, scalar_prefetch = 0 : i64, scratch_operands = 0 : i64, tpu.core_type = #tpu.core_type<tc>, window_params = [{transform_indices = @transform_0, window_bounds = array<i64: 256, 128>}, {transform_indices = @transform_1, window_bounds = array<i64: 1, 128>}, {transform_indices = @transform_2, window_bounds = array<i64: 1, 128>}, {transform_indices = @transform_3, window_bounds = array<i64: 256, 128>}]} {
    %c0 = arith.constant 0 : index
    %c0_0 = arith.constant 0 : index
    %0 = vector.load %arg2[%c0, %c0_0] : memref<256x128xbf16, #tpu.memory_space<vmem>>, vector<256x128xbf16>
    %1 = arith.extf %0 : vector<256x128xbf16> to vector<256x128xf32>
    %c0_1 = arith.constant 0 : index
    %c0_2 = arith.constant 0 : index
    %2 = vector.load %arg3[%c0_1, %c0_2] : memref<1x128xf32, #tpu.memory_space<vmem>>, vector<1x128xf32>
    %3 = vector.broadcast %2 : vector<1x128xf32> to vector<256x128xf32>
    %4 = arith.mulf %1, %3 : vector<256x128xf32>
    %c0_3 = arith.constant 0 : index
    %c0_4 = arith.constant 0 : index
    %5 = vector.load %arg4[%c0_3, %c0_4] : memref<1x128xf32, #tpu.memory_space<vmem>>, vector<1x128xf32>
    %6 = vector.broadcast %5 : vector<1x128xf32> to vector<256x128xf32>
    %7 = arith.addf %4, %6 : vector<256x128xf32>
    %cst = arith.constant 0.000000e+00 : f32
    %8 = vector.broadcast %cst : f32 to vector<256x128xf32>
    %9 = arith.cmpf ogt, %7, %8 : vector<256x128xf32>
    %cst_5 = arith.constant 1.000000e-01 : f32
    %10 = vector.broadcast %cst_5 : f32 to vector<256x128xf32>
    %11 = arith.mulf %10, %7 : vector<256x128xf32>
    %12 = arith.select %9, %7, %11 : vector<256x128xi1>, vector<256x128xf32>
    %13 = arith.truncf %12 : vector<256x128xf32> to vector<256x128xbf16>
    %c0_6 = arith.constant 0 : index
    %c0_7 = arith.constant 0 : index
    %14 = vector.load %arg5[%c0_6, %c0_7] : memref<256x128xbf16, #tpu.memory_space<vmem>>, vector<256x128xbf16>
    tpu.vector_store %arg5[%c0_6, %c0_7], %13 {strides = array<i32>} : memref<256x128xbf16, #tpu.memory_space<vmem>>, vector<256x128xbf16>,
    return
  }
  func.func @transform_0(%arg0: i32, %arg1: i32) -> (i32, i32) {
    %c0_i32 = arith.constant 0 : i32
    return %arg0, %arg1 : i32, i32
  }
  func.func @transform_1(%arg0: i32, %arg1: i32) -> (i32, i32) {
    %c0_i32 = arith.constant 0 : i32
    %c0_i32_0 = arith.constant 0 : i32
    return %c0_i32, %arg1 : i32, i32
  }
  func.func @transform_2(%arg0: i32, %arg1: i32) -> (i32, i32) {
    %c0_i32 = arith.constant 0 : i32
    %c0_i32_0 = arith.constant 0 : i32
    return %c0_i32, %arg1 : i32, i32
  }
  func.func @transform_3(%arg0: i32, %arg1: i32) -> (i32, i32) {
    %c0_i32 = arith.constant 0 : i32
    return %arg0, %arg1 : i32, i32
  }
}

module attributes {stable_mosaic.version = 11 : i64} {
  func.func @_conv3x3_stats_kernel(%arg0: i32, %arg1: i32, %arg2: memref<1x18x18x128xbf16, #tpu.memory_space<vmem>>, %arg3: memref<1152x128xbf16, #tpu.memory_space<vmem>>, %arg4: memref<1x256x128xbf16, #tpu.memory_space<vmem>>, %arg5: memref<1x2x128xf32, #tpu.memory_space<vmem>>) attributes {dimension_semantics = [#tpu.dimension_semantics<parallel>, #tpu.dimension_semantics<parallel>], iteration_bounds = array<i64: 2, 1>, scalar_prefetch = 0 : i64, scratch_operands = 0 : i64, tpu.core_type = #tpu.core_type<tc>, window_params = [{transform_indices = @transform_0, window_bounds = array<i64: 1, 18, 18, 128>}, {transform_indices = @transform_1, window_bounds = array<i64: 1152, 128>}, {transform_indices = @transform_2, window_bounds = array<i64: 1, 256, 128>}, {transform_indices = @transform_3, window_bounds = array<i64: 1, 2, 128>}]} {
    %cst = arith.constant 0.000000e+00 : f32
    %0 = vector.broadcast %cst : f32 to vector<256x128xf32>
    %c0 = arith.constant 0 : index
    %c0_0 = arith.constant 0 : index
    %c0_1 = arith.constant 0 : index
    %c0_2 = arith.constant 0 : index
    %1 = vector.load %arg2[%c0, %c0_0, %c0_1, %c0_2] : memref<1x18x18x128xbf16, #tpu.memory_space<vmem>>, vector<1x16x16x128xbf16>
    %2 = vector.shape_cast %1 : vector<1x16x16x128xbf16> to vector<16x16x128xbf16>
    %3 = vector.shape_cast %2 : vector<16x16x128xbf16> to vector<256x128xbf16>
    %c0_3 = arith.constant 0 : index
    %c0_4 = arith.constant 0 : index
    %4 = vector.load %arg3[%c0_3, %c0_4] : memref<1152x128xbf16, #tpu.memory_space<vmem>>, vector<128x128xbf16>
    %cst_5 = arith.constant dense<0.000000e+00> : vector<256x128xf32>
    %5 = tpu.matmul %3, %4, %cst_5 {dimension_numbers = #tpu.dot_dimension_numbers<[1], [0], [0], [1], [0, 0, 1, 1], [], []>} : vector<256x128xbf16>, vector<128x128xbf16>, vector<256x128xf32> -> vector<256x128xf32>
    %6 = arith.addf %0, %5 : vector<256x128xf32>
    %c0_6 = arith.constant 0 : index
    %c0_7 = arith.constant 0 : index
    %c1 = arith.constant 1 : index
    %c0_8 = arith.constant 0 : index
    %7 = vector.load %arg2[%c0_6, %c0_7, %c1, %c0_8] : memref<1x18x18x128xbf16, #tpu.memory_space<vmem>>, vector<1x16x16x128xbf16>
    %8 = vector.shape_cast %7 : vector<1x16x16x128xbf16> to vector<16x16x128xbf16>
    %9 = vector.shape_cast %8 : vector<16x16x128xbf16> to vector<256x128xbf16>
    %c128 = arith.constant 128 : index
    %c0_9 = arith.constant 0 : index
    %10 = vector.load %arg3[%c128, %c0_9] : memref<1152x128xbf16, #tpu.memory_space<vmem>>, vector<128x128xbf16>
    %cst_10 = arith.constant dense<0.000000e+00> : vector<256x128xf32>
    %11 = tpu.matmul %9, %10, %cst_10 {dimension_numbers = #tpu.dot_dimension_numbers<[1], [0], [0], [1], [0, 0, 1, 1], [], []>} : vector<256x128xbf16>, vector<128x128xbf16>, vector<256x128xf32> -> vector<256x128xf32>
    %12 = arith.addf %6, %11 : vector<256x128xf32>
    %c0_11 = arith.constant 0 : index
    %c0_12 = arith.constant 0 : index
    %c2 = arith.constant 2 : index
    %c0_13 = arith.constant 0 : index
    %13 = vector.load %arg2[%c0_11, %c0_12, %c2, %c0_13] : memref<1x18x18x128xbf16, #tpu.memory_space<vmem>>, vector<1x16x16x128xbf16>
    %14 = vector.shape_cast %13 : vector<1x16x16x128xbf16> to vector<16x16x128xbf16>
    %15 = vector.shape_cast %14 : vector<16x16x128xbf16> to vector<256x128xbf16>
    %c256 = arith.constant 256 : index
    %c0_14 = arith.constant 0 : index
    %16 = vector.load %arg3[%c256, %c0_14] : memref<1152x128xbf16, #tpu.memory_space<vmem>>, vector<128x128xbf16>
    %cst_15 = arith.constant dense<0.000000e+00> : vector<256x128xf32>
    %17 = tpu.matmul %15, %16, %cst_15 {dimension_numbers = #tpu.dot_dimension_numbers<[1], [0], [0], [1], [0, 0, 1, 1], [], []>} : vector<256x128xbf16>, vector<128x128xbf16>, vector<256x128xf32> -> vector<256x128xf32>
    %18 = arith.addf %12, %17 : vector<256x128xf32>
    %c0_16 = arith.constant 0 : index
    %c1_17 = arith.constant 1 : index
    %c0_18 = arith.constant 0 : index
    %c0_19 = arith.constant 0 : index
    %19 = vector.load %arg2[%c0_16, %c1_17, %c0_18, %c0_19] : memref<1x18x18x128xbf16, #tpu.memory_space<vmem>>, vector<1x16x16x128xbf16>
    %20 = vector.shape_cast %19 : vector<1x16x16x128xbf16> to vector<16x16x128xbf16>
    %21 = vector.shape_cast %20 : vector<16x16x128xbf16> to vector<256x128xbf16>
    %c384 = arith.constant 384 : index
    %c0_20 = arith.constant 0 : index
    %22 = vector.load %arg3[%c384, %c0_20] : memref<1152x128xbf16, #tpu.memory_space<vmem>>, vector<128x128xbf16>
    %cst_21 = arith.constant dense<0.000000e+00> : vector<256x128xf32>
    %23 = tpu.matmul %21, %22, %cst_21 {dimension_numbers = #tpu.dot_dimension_numbers<[1], [0], [0], [1], [0, 0, 1, 1], [], []>} : vector<256x128xbf16>, vector<128x128xbf16>, vector<256x128xf32> -> vector<256x128xf32>
    %24 = arith.addf %18, %23 : vector<256x128xf32>
    %c0_22 = arith.constant 0 : index
    %c1_23 = arith.constant 1 : index
    %c1_24 = arith.constant 1 : index
    %c0_25 = arith.constant 0 : index
    %25 = vector.load %arg2[%c0_22, %c1_23, %c1_24, %c0_25] : memref<1x18x18x128xbf16, #tpu.memory_space<vmem>>, vector<1x16x16x128xbf16>
    %26 = vector.shape_cast %25 : vector<1x16x16x128xbf16> to vector<16x16x128xbf16>
    %27 = vector.shape_cast %26 : vector<16x16x128xbf16> to vector<256x128xbf16>
    %c512 = arith.constant 512 : index
    %c0_26 = arith.constant 0 : index
    %28 = vector.load %arg3[%c512, %c0_26] : memref<1152x128xbf16, #tpu.memory_space<vmem>>, vector<128x128xbf16>
    %cst_27 = arith.constant dense<0.000000e+00> : vector<256x128xf32>
    %29 = tpu.matmul %27, %28, %cst_27 {dimension_numbers = #tpu.dot_dimension_numbers<[1], [0], [0], [1], [0, 0, 1, 1], [], []>} : vector<256x128xbf16>, vector<128x128xbf16>, vector<256x128xf32> -> vector<256x128xf32>
    %30 = arith.addf %24, %29 : vector<256x128xf32>
    %c0_28 = arith.constant 0 : index
    %c1_29 = arith.constant 1 : index
    %c2_30 = arith.constant 2 : index
    %c0_31 = arith.constant 0 : index
    %31 = vector.load %arg2[%c0_28, %c1_29, %c2_30, %c0_31] : memref<1x18x18x128xbf16, #tpu.memory_space<vmem>>, vector<1x16x16x128xbf16>
    %32 = vector.shape_cast %31 : vector<1x16x16x128xbf16> to vector<16x16x128xbf16>
    %33 = vector.shape_cast %32 : vector<16x16x128xbf16> to vector<256x128xbf16>
    %c640 = arith.constant 640 : index
    %c0_32 = arith.constant 0 : index
    %34 = vector.load %arg3[%c640, %c0_32] : memref<1152x128xbf16, #tpu.memory_space<vmem>>, vector<128x128xbf16>
    %cst_33 = arith.constant dense<0.000000e+00> : vector<256x128xf32>
    %35 = tpu.matmul %33, %34, %cst_33 {dimension_numbers = #tpu.dot_dimension_numbers<[1], [0], [0], [1], [0, 0, 1, 1], [], []>} : vector<256x128xbf16>, vector<128x128xbf16>, vector<256x128xf32> -> vector<256x128xf32>
    %36 = arith.addf %30, %35 : vector<256x128xf32>
    %c0_34 = arith.constant 0 : index
    %c2_35 = arith.constant 2 : index
    %c0_36 = arith.constant 0 : index
    %c0_37 = arith.constant 0 : index
    %37 = vector.load %arg2[%c0_34, %c2_35, %c0_36, %c0_37] : memref<1x18x18x128xbf16, #tpu.memory_space<vmem>>, vector<1x16x16x128xbf16>
    %38 = vector.shape_cast %37 : vector<1x16x16x128xbf16> to vector<16x16x128xbf16>
    %39 = vector.shape_cast %38 : vector<16x16x128xbf16> to vector<256x128xbf16>
    %c768 = arith.constant 768 : index
    %c0_38 = arith.constant 0 : index
    %40 = vector.load %arg3[%c768, %c0_38] : memref<1152x128xbf16, #tpu.memory_space<vmem>>, vector<128x128xbf16>
    %cst_39 = arith.constant dense<0.000000e+00> : vector<256x128xf32>
    %41 = tpu.matmul %39, %40, %cst_39 {dimension_numbers = #tpu.dot_dimension_numbers<[1], [0], [0], [1], [0, 0, 1, 1], [], []>} : vector<256x128xbf16>, vector<128x128xbf16>, vector<256x128xf32> -> vector<256x128xf32>
    %42 = arith.addf %36, %41 : vector<256x128xf32>
    %c0_40 = arith.constant 0 : index
    %c2_41 = arith.constant 2 : index
    %c1_42 = arith.constant 1 : index
    %c0_43 = arith.constant 0 : index
    %43 = vector.load %arg2[%c0_40, %c2_41, %c1_42, %c0_43] : memref<1x18x18x128xbf16, #tpu.memory_space<vmem>>, vector<1x16x16x128xbf16>
    %44 = vector.shape_cast %43 : vector<1x16x16x128xbf16> to vector<16x16x128xbf16>
    %45 = vector.shape_cast %44 : vector<16x16x128xbf16> to vector<256x128xbf16>
    %c896 = arith.constant 896 : index
    %c0_44 = arith.constant 0 : index
    %46 = vector.load %arg3[%c896, %c0_44] : memref<1152x128xbf16, #tpu.memory_space<vmem>>, vector<128x128xbf16>
    %cst_45 = arith.constant dense<0.000000e+00> : vector<256x128xf32>
    %47 = tpu.matmul %45, %46, %cst_45 {dimension_numbers = #tpu.dot_dimension_numbers<[1], [0], [0], [1], [0, 0, 1, 1], [], []>} : vector<256x128xbf16>, vector<128x128xbf16>, vector<256x128xf32> -> vector<256x128xf32>
    %48 = arith.addf %42, %47 : vector<256x128xf32>
    %c0_46 = arith.constant 0 : index
    %c2_47 = arith.constant 2 : index
    %c2_48 = arith.constant 2 : index
    %c0_49 = arith.constant 0 : index
    %49 = vector.load %arg2[%c0_46, %c2_47, %c2_48, %c0_49] : memref<1x18x18x128xbf16, #tpu.memory_space<vmem>>, vector<1x16x16x128xbf16>
    %50 = vector.shape_cast %49 : vector<1x16x16x128xbf16> to vector<16x16x128xbf16>
    %51 = vector.shape_cast %50 : vector<16x16x128xbf16> to vector<256x128xbf16>
    %c1024 = arith.constant 1024 : index
    %c0_50 = arith.constant 0 : index
    %52 = vector.load %arg3[%c1024, %c0_50] : memref<1152x128xbf16, #tpu.memory_space<vmem>>, vector<128x128xbf16>
    %cst_51 = arith.constant dense<0.000000e+00> : vector<256x128xf32>
    %53 = tpu.matmul %51, %52, %cst_51 {dimension_numbers = #tpu.dot_dimension_numbers<[1], [0], [0], [1], [0, 0, 1, 1], [], []>} : vector<256x128xbf16>, vector<128x128xbf16>, vector<256x128xf32> -> vector<256x128xf32>
    %54 = arith.addf %48, %53 : vector<256x128xf32>
    %55 = arith.truncf %54 : vector<256x128xf32> to vector<256x128xbf16>
    %c0_52 = arith.constant 0 : index
    %c0_53 = arith.constant 0 : index
    %c0_54 = arith.constant 0 : index
    %56 = vector.load %arg4[%c0_52, %c0_53, %c0_54] : memref<1x256x128xbf16, #tpu.memory_space<vmem>>, vector<1x256x128xbf16>
    %57 = vector.shape_cast %56 : vector<1x256x128xbf16> to vector<256x128xbf16>
    %58 = vector.shape_cast %55 : vector<256x128xbf16> to vector<1x256x128xbf16>
    tpu.vector_store %arg4[%c0_52, %c0_53, %c0_54], %58 {strides = array<i32>} : memref<1x256x128xbf16, #tpu.memory_space<vmem>>, vector<1x256x128xbf16>,
    %cst_55 = arith.constant dense<0.000000e+00> : vector<128xf32>
    %59 = vector.multi_reduction <add>, %54, %cst_55 [0] : vector<256x128xf32> to vector<128xf32>
    %60 = vector.shape_cast %59 : vector<128xf32> to vector<1x128xf32>
    %61 = arith.mulf %54, %54 : vector<256x128xf32>
    %cst_56 = arith.constant dense<0.000000e+00> : vector<128xf32>
    %62 = vector.multi_reduction <add>, %61, %cst_56 [0] : vector<256x128xf32> to vector<128xf32>
    %63 = vector.shape_cast %62 : vector<128xf32> to vector<1x128xf32>
    %64 = tpu.concatenate %60, %63 in 0 : vector<1x128xf32>, vector<1x128xf32> -> vector<2x128xf32>
    %c0_57 = arith.constant 0 : index
    %c0_58 = arith.constant 0 : index
    %c0_59 = arith.constant 0 : index
    %65 = vector.load %arg5[%c0_57, %c0_58, %c0_59] : memref<1x2x128xf32, #tpu.memory_space<vmem>>, vector<1x2x128xf32>
    %66 = vector.shape_cast %65 : vector<1x2x128xf32> to vector<2x128xf32>
    %67 = vector.shape_cast %64 : vector<2x128xf32> to vector<1x2x128xf32>
    tpu.vector_store %arg5[%c0_57, %c0_58, %c0_59], %67 {strides = array<i32>} : memref<1x2x128xf32, #tpu.memory_space<vmem>>, vector<1x2x128xf32>,
    return
  }
  func.func @transform_0(%arg0: i32, %arg1: i32) -> (i32, i32, i32, i32) {
    %c0_i32 = arith.constant 0 : i32
    %c0_i32_0 = arith.constant 0 : i32
    %c0_i32_1 = arith.constant 0 : i32
    %c0_i32_2 = arith.constant 0 : i32
    return %arg0, %c0_i32, %c0_i32_0, %c0_i32_1 : i32, i32, i32, i32
  }
  func.func @transform_1(%arg0: i32, %arg1: i32) -> (i32, i32) {
    %c0_i32 = arith.constant 0 : i32
    %c0_i32_0 = arith.constant 0 : i32
    return %c0_i32, %arg1 : i32, i32
  }
  func.func @transform_2(%arg0: i32, %arg1: i32) -> (i32, i32, i32) {
    %c0_i32 = arith.constant 0 : i32
    %c0_i32_0 = arith.constant 0 : i32
    return %arg0, %c0_i32, %arg1 : i32, i32, i32
  }
  func.func @transform_3(%arg0: i32, %arg1: i32) -> (i32, i32, i32) {
    %c0_i32 = arith.constant 0 : i32
    %c0_i32_0 = arith.constant 0 : i32
    return %arg0, %c0_i32, %arg1 : i32, i32, i32
  }
}

</mosaic_0001>

<bundles_post_ra>
// kernel: convolutional_set_layer.11
= control target key start
LH: loop header
LB: loop body
LE: loop exit
PB: predicated region body
PF: predicated region fallthrough
CT: control target
= control target key end

     0   :  { %s1054_s12 = smov 0   ;;  %s1056_s13 = smov 0   ;;  %s1205_s0 = inlined_call_operand.vmem [shape: bf16[512,128], index: 0, kind: input, shape index: {}]   ;;  %s1206_s1 = inlined_call_operand.vmem [shape: f32[1,128], index: 1, kind: input, shape index: {}]   ;;  %s1207_s2 = inlined_call_operand.vmem [shape: f32[1,128], index: 2, kind: input, shape index: {}]   ;;  %s1208_s3 = inlined_call_operand.vmem [shape: bf16[512,128], index: 3, kind: output, shape index: {}]  }
   0x1   :  { %s1058_s14 = smov 0  }
   0x2 LB: > { %s25_s15 = sadd.s32 1, %s1028_s13  ;;  %p739_p0 = scmp.ge.s32.totalorder %s1032_s14, 1  ;;  %s1032_s14 = sphi %s1058_s14, %s13_s14   ;;  %s1028_s13 = sphi %s1056_s13, %s1210_s13   ;;  %s1024_s12 = sphi %s1054_s12, %s1209_s12  }
   0x3   : > { %p27_p1 = scmp.ge.s32.totalorder %s25_s15, 2  ;;  %p173_p2 = scmp.lt.s32.totalorder %s1032_s14, 3 }
   0x5   : > { %s1212_s15 = smov (%p27_p1, %s25_s15), 0  ;;  %p174_p3 = pnand %p739_p0, %p173_p2 }
   0x6   : > { %s740_s16 = sshll.u32 (!%p174_p3), %s1024_s12, 5 }
   0x7   : > { %177 = sbr.rel (%p174_p3) target bundleno = 75 (0x4b), region = 32  ;;  %p210_p4 = scmp.lt.s32.totalorder (!%p174_p3), %s740_s16, 63 }
   0xc   : > { %s1214_s16 = smov (!%p210_p4, %s740_s16), 63  ;;  %v1085_v0 = vld [vmem:[%s1206_s1] ss:$0 sm:$0xff] }
   0xd   : > { %s741_s17 = sshll.u32 %s1214_s16, 2  ;;  %v1094_v9 = vld [vmem:[%s1207_s2] ss:$0 sm:$0xff] }
   0xe   : > { %s1080_s20 = scalar_lea.vmem %s1205_s0, %s741_s17  ;;  %s1117_s27 = scalar_lea.vmem %s1208_s3, %s741_s17 }
   0xf   : > { %v813_v1 = vld [vmem:[%s1080_s20] sm:$0xff]   ;;  %v956_v2 = vld [vmem:[%s1080_s20 + $0x8] sm:$0xff]   ;;  %v957_v3 = vld [vmem:[%s1080_s20 + $0x10] sm:$0xff]  }
  0x10   : > { %v814_v4 = vunpack.c.l.bf16 %v813_v1  ;;  %v815_v5 = vunpack.c.h.bf16 %v813_v1  ;;  %v818_v6 = vunpack.c.l.bf16 %v956_v2  ;;  %v819_v7 = vunpack.c.h.bf16 %v956_v2  ;;  %v958_v8 = vld [vmem:[%s1080_s20 + $0x18] sm:$0xff]   ;;  %v959_v36 = vld [vmem:[%s1080_s20 + $0x20] sm:$0xff]   ;;  %v960_v41 = vld [vmem:[%s1080_s20 + $0x28] sm:$0xff]  }
  0x11   : > { %v822_v10 = vunpack.c.l.bf16 %v957_v3  ;;  %v823_v11 = vunpack.c.h.bf16 %v957_v3  ;;  %v826_v12 = vunpack.c.l.bf16 %v958_v8  ;;  %v827_v13 = vunpack.c.h.bf16 %v958_v8  ;;  %v961_v52 = vld [vmem:[%s1080_s20 + $0x30] sm:$0xff]   ;;  %v962_v53 = vld [vmem:[%s1080_s20 + $0x38] sm:$0xff]  }
  0x12   : > { %v304_v14 = vmul.f32 %v814_v4, %v1085_v0  ;;  %v305_v15 = vmul.f32 %v815_v5, %v1085_v0  ;;  %v306_v16 = vmul.f32 %v818_v6, %v1085_v0  ;;  %v307_v17 = vmul.f32 %v819_v7, %v1085_v0 }
  0x13   : > { %v308_v18 = vmul.f32 %v822_v10, %v1085_v0  ;;  %v309_v19 = vmul.f32 %v823_v11, %v1085_v0  ;;  %v310_v20 = vmul.f32 %v826_v12, %v1085_v0  ;;  %v311_v21 = vmul.f32 %v827_v13, %v1085_v0 }
  0x14   : > { %v343_v22 = vadd.f32 %v1094_v9, %v304_v14  ;;  %v344_v23 = vadd.f32 %v1094_v9, %v305_v15  ;;  %v345_v24 = vadd.f32 %v1094_v9, %v306_v16  ;;  %v346_v25 = vadd.f32 %v1094_v9, %v307_v17 }
  0x15   : > { %v347_v26 = vadd.f32 %v1094_v9, %v308_v18  ;;  %v348_v27 = vadd.f32 %v1094_v9, %v309_v19  ;;  %v349_v28 = vadd.f32 %v1094_v9, %v310_v20  ;;  %v350_v29 = vadd.f32 %v1094_v9, %v311_v21  ;;  %v963_v20 = vld [vmem:[%s1080_s20 + $0x40] sm:$0xff]  }
  0x16   : > { %vm375_vm0 = vcmp.gt.f32.partialorder %v343_v22, 0.0  ;;  %vm376_vm1 = vcmp.gt.f32.partialorder %v344_v23, 0.0  ;;  %v407_v30 = vmul.f32 0.1, %v343_v22  ;;  %v408_v31 = vmul.f32 0.1, %v344_v23 }
  0x17   : > { %vm377_vm2 = vcmp.gt.f32.partialorder %v345_v24, 0.0  ;;  %vm378_vm3 = vcmp.gt.f32.partialorder %v346_v25, 0.0  ;;  %v409_v32 = vmul.f32 0.1, %v345_v24  ;;  %v410_v33 = vmul.f32 0.1, %v346_v25 }
  0x18   : > { %v439_v34 = vsel %vm375_vm0, %v343_v22, %v407_v30  ;;  %v440_v35 = vsel %vm376_vm1, %v344_v23, %v408_v31  ;;  %vm379_vm4 = vcmp.gt.f32.partialorder %v347_v26, 0.0  ;;  %vm380_vm5 = vcmp.gt.f32.partialorder %v348_v27, 0.0 }
  0x19   : > { %v879_v37 = vpack.c.bf16 %v440_v35, %v439_v34  ;;  %v441_v38 = vsel %vm377_vm2, %v345_v24, %v409_v32  ;;  %v442_v39 = vsel %vm378_vm3, %v346_v25, %v410_v33  ;;  %v411_v40 = vmul.f32 0.1, %v347_v26  ;;  %v964_v24 = vld [vmem:[%s1080_s20 + $0x48] sm:$0xff]  }
  0x1a   : > { %v884_v42 = vpack.c.bf16 %v442_v39, %v441_v38  ;;  %v412_v43 = vmul.f32 0.1, %v348_v27  ;;  %vm381_vm6 = vcmp.gt.f32.partialorder %v349_v28, 0.0  ;;  %vm382_vm7 = vcmp.gt.f32.partialorder %v350_v29, 0.0 }
  0x1b   : > { %880 = vst [vmem:[%s1117_s27] sm:$0xff] %v879_v37   ;;  %v443_v44 = vsel %vm379_vm4, %v347_v26, %v411_v40  ;;  %v413_v45 = vmul.f32 0.1, %v349_v28  ;;  %v414_v46 = vmul.f32 0.1, %v350_v29  ;;  %v830_v47 = vunpack.c.l.bf16 %v959_v36 }
  0x1c   : > { %971 = vst [vmem:[%s1117_s27 + $0x8] sm:$0xff] %v884_v42   ;;  %v444_v48 = vsel %vm380_vm5, %v348_v27, %v412_v43  ;;  %v831_v49 = vunpack.c.h.bf16 %v959_v36  ;;  %v834_v50 = vunpack.c.l.bf16 %v960_v41  ;;  %v835_v51 = vunpack.c.h.bf16 %v960_v41  ;;  %v965_v36 = vld [vmem:[%s1080_s20 + $0x50] sm:$0xff]  }
  0x1d   : > { %v889_v54 = vpack.c.bf16 %v444_v48, %v443_v44  ;;  %v445_v55 = vsel %vm381_vm6, %v349_v28, %v413_v45  ;;  %v446_v56 = vsel %vm382_vm7, %v350_v29, %v414_v46  ;;  %v312_v57 = vmul.f32 %v830_v47, %v1085_v0 }
  0x1e   : > { %v894_v58 = vpack.c.bf16 %v446_v56, %v445_v55  ;;  %v313_v59 = vmul.f32 %v831_v49, %v1085_v0  ;;  %v314_v60 = vmul.f32 %v834_v50, %v1085_v0  ;;  %v315_v61 = vmul.f32 %v835_v51, %v1085_v0  ;;  %v966_v55 = vld [vmem:[%s1080_s20 + $0x58] sm:$0xff]  }
  0x1f   : > { %972 = vst [vmem:[%s1117_s27 + $0x10] sm:$0xff] %v889_v54   ;;  %v351_v62 = vadd.f32 %v1094_v9, %v312_v57  ;;  %v838_v63 = vunpack.c.l.bf16 %v961_v52  ;;  %v839_v1 = vunpack.c.h.bf16 %v961_v52  ;;  %v842_v2 = vunpack.c.l.bf16 %v962_v53 }
  0x20   : > { %973 = vst [vmem:[%s1117_s27 + $0x18] sm:$0xff] %v894_v58   ;;  %v352_v3 = vadd.f32 %v1094_v9, %v313_v59  ;;  %v353_v4 = vadd.f32 %v1094_v9, %v314_v60  ;;  %v354_v5 = vadd.f32 %v1094_v9, %v315_v61  ;;  %v843_v6 = vunpack.c.h.bf16 %v962_v53 }
  0x21   : > { %vm383_vm8 = vcmp.gt.f32.partialorder %v351_v62, 0.0  ;;  %v415_v7 = vmul.f32 0.1, %v351_v62  ;;  %v316_v8 = vmul.f32 %v838_v63, %v1085_v0  ;;  %v317_v10 = vmul.f32 %v839_v1, %v1085_v0  ;;  %v967_v1 = vld [vmem:[%s1080_s20 + $0x60] sm:$0xff]  }
  0x22   : > { %vm384_vm9 = vcmp.gt.f32.partialorder %v352_v3, 0.0  ;;  %v416_v11 = vmul.f32 0.1, %v352_v3  ;;  %vm385_vm10 = vcmp.gt.f32.partialorder %v353_v4, 0.0  ;;  %vm386_vm11 = vcmp.gt.f32.partialorder %v354_v5, 0.0 }
  0x23   : > { %v447_v12 = vsel %vm383_vm8, %v351_v62, %v415_v7  ;;  %v417_v13 = vmul.f32 0.1, %v353_v4  ;;  %v418_v14 = vmul.f32 0.1, %v354_v5  ;;  %v355_v15 = vadd.f32 %v1094_v9, %v316_v8 }
  0x24   : > { %v448_v16 = vsel %vm384_vm9, %v352_v3, %v416_v11  ;;  %v356_v17 = vadd.f32 %v1094_v9, %v317_v10  ;;  %v318_v18 = vmul.f32 %v842_v2, %v1085_v0  ;;  %v319_v19 = vmul.f32 %v843_v6, %v1085_v0  ;;  %v968_v6 = vld [vmem:[%s1080_s20 + $0x68] sm:$0xff]  }
  0x25   : > { %v899_v21 = vpack.c.bf16 %v448_v16, %v447_v12  ;;  %v449_v22 = vsel %vm385_vm10, %v353_v4, %v417_v13  ;;  %v450_v23 = vsel %vm386_vm11, %v354_v5, %v418_v14  ;;  %vm387_vm12 = vcmp.gt.f32.partialorder %v355_v15, 0.0 }
  0x26   : > { %v904_v25 = vpack.c.bf16 %v450_v23, %v449_v22  ;;  %vm388_vm13 = vcmp.gt.f32.partialorder %v356_v17, 0.0  ;;  %v419_v26 = vmul.f32 0.1, %v355_v15  ;;  %v420_v27 = vmul.f32 0.1, %v356_v17  ;;  %v969_v22 = vld [vmem:[%s1080_s20 + $0x70] sm:$0xff]  }
  0x27   : > { %974 = vst [vmem:[%s1117_s27 + $0x20] sm:$0xff] %v899_v21   ;;  %v357_v28 = vadd.f32 %v1094_v9, %v318_v18  ;;  %v358_v29 = vadd.f32 %v1094_v9, %v319_v19  ;;  %v846_v30 = vunpack.c.l.bf16 %v963_v20  ;;  %v847_v31 = vunpack.c.h.bf16 %v963_v20 }
  0x28   : > { %975 = vst [vmem:[%s1117_s27 + $0x28] sm:$0xff] %v904_v25   ;;  %v451_v32 = vsel %vm387_vm12, %v355_v15, %v419_v26  ;;  %v452_v33 = vsel %vm388_vm13, %v356_v17, %v420_v27  ;;  %v850_v34 = vunpack.c.l.bf16 %v964_v24  ;;  %v851_v35 = vunpack.c.h.bf16 %v964_v24 }
  0x29   : > { %v909_v37 = vpack.c.bf16 %v452_v33, %v451_v32  ;;  %vm389_vm14 = vcmp.gt.f32.partialorder %v357_v28, 0.0  ;;  %vm390_vm15 = vcmp.gt.f32.partialorder %v358_v29, 0.0  ;;  %v421_v38 = vmul.f32 0.1, %v357_v28 }
  0x2a   : > { %v422_v39 = vmul.f32 0.1, %v358_v29  ;;  %v320_v40 = vmul.f32 %v846_v30, %v1085_v0  ;;  %v321_v41 = vmul.f32 %v847_v31, %v1085_v0  ;;  %v322_v42 = vmul.f32 %v850_v34, %v1085_v0 }
  0x2b   : > { %976 = vst [vmem:[%s1117_s27 + $0x30] sm:$0xff] %v909_v37   ;;  %v453_v43 = vsel %vm389_vm14, %v357_v28, %v421_v38  ;;  %v323_v44 = vmul.f32 %v851_v35, %v1085_v0  ;;  %v854_v45 = vunpack.c.l.bf16 %v965_v36  ;;  %v855_v46 = vunpack.c.h.bf16 %v965_v36 }
  0x2c   : > { %v454_v47 = vsel %vm390_vm15, %v358_v29, %v422_v39  ;;  %v359_v48 = vadd.f32 %v1094_v9, %v320_v40  ;;  %v360_v49 = vadd.f32 %v1094_v9, %v321_v41  ;;  %v361_v50 = vadd.f32 %v1094_v9, %v322_v42  ;;  %v970_v41 = vld [vmem:[%s1080_s20 + $0x78] sm:$0xff]  }
  0x2d   : > { %v914_v51 = vpack.c.bf16 %v454_v47, %v453_v43  ;;  %v362_v52 = vadd.f32 %v1094_v9, %v323_v44  ;;  %v324_v53 = vmul.f32 %v854_v45, %v1085_v0  ;;  %v325_v54 = vmul.f32 %v855_v46, %v1085_v0 }
  0x2e   : > { %vm391_vm0 = vcmp.gt.f32.partialorder %v359_v48, 0.0  ;;  %vm392_vm1 = vcmp.gt.f32.partialorder %v360_v49, 0.0  ;;  %v423_v56 = vmul.f32 0.1, %v359_v48  ;;  %v424_v57 = vmul.f32 0.1, %v360_v49 }
  0x2f   : > { %977 = vst [vmem:[%s1117_s27 + $0x38] sm:$0xff] %v914_v51   ;;  %vm393_vm2 = vcmp.gt.f32.partialorder %v361_v50, 0.0  ;;  %vm394_vm3 = vcmp.gt.f32.partialorder %v362_v52, 0.0  ;;  %v425_v58 = vmul.f32 0.1, %v361_v50  ;;  %v363_v62 = vadd.f32 %v1094_v9, %v324_v53 }
  0x30   : > { %v426_v59 = vmul.f32 0.1, %v362_v52  ;;  %v455_v60 = vsel %vm391_vm0, %v359_v48, %v423_v56  ;;  %v456_v61 = vsel %vm392_vm1, %v360_v49, %v424_v57  ;;  %v364_v63 = vadd.f32 %v1094_v9, %v325_v54 }
  0x31   : > { %v919_v2 = vpack.c.bf16 %v456_v61, %v455_v60  ;;  %v457_v3 = vsel %vm393_vm2, %v361_v50, %v425_v58  ;;  %v858_v5 = vunpack.c.l.bf16 %v966_v55  ;;  %vm395_vm4 = vcmp.gt.f32.partialorder %v363_v62, 0.0 }
  0x32   : > { %v458_v4 = vsel %vm394_vm3, %v362_v52, %v426_v59  ;;  %vm396_vm5 = vcmp.gt.f32.partialorder %v364_v63, 0.0  ;;  %v427_v8 = vmul.f32 0.1, %v363_v62  ;;  %v428_v10 = vmul.f32 0.1, %v364_v63 }
  0x33   : > { %v924_v7 = vpack.c.bf16 %v458_v4, %v457_v3  ;;  %978 = vst [vmem:[%s1117_s27 + $0x40] sm:$0xff] %v919_v2   ;;  %v859_v11 = vunpack.c.h.bf16 %v966_v55  ;;  %v326_v12 = vmul.f32 %v858_v5, %v1085_v0  ;;  %v862_v13 = vunpack.c.l.bf16 %v967_v1 }
  0x34   : > { %v459_v14 = vsel %vm395_vm4, %v363_v62, %v427_v8  ;;  %v863_v15 = vunpack.c.h.bf16 %v967_v1  ;;  %v866_v16 = vunpack.c.l.bf16 %v968_v6  ;;  %v867_v17 = vunpack.c.h.bf16 %v968_v6 }
  0x35   : > { %979 = vst [vmem:[%s1117_s27 + $0x48] sm:$0xff] %v924_v7   ;;  %v460_v18 = vsel %vm396_vm5, %v364_v63, %v428_v10  ;;  %v327_v19 = vmul.f32 %v859_v11, %v1085_v0  ;;  %v365_v20 = vadd.f32 %v1094_v9, %v326_v12  ;;  %v328_v21 = vmul.f32 %v862_v13, %v1085_v0 }
  0x36   : > { %v929_v23 = vpack.c.bf16 %v460_v18, %v459_v14  ;;  %v329_v24 = vmul.f32 %v863_v15, %v1085_v0  ;;  %v330_v25 = vmul.f32 %v866_v16, %v1085_v0  ;;  %v331_v26 = vmul.f32 %v867_v17, %v1085_v0 }
  0x37   : > { %v366_v27 = vadd.f32 %v1094_v9, %v327_v19  ;;  %vm397_vm6 = vcmp.gt.f32.partialorder %v365_v20, 0.0  ;;  %v429_v28 = vmul.f32 0.1, %v365_v20  ;;  %v367_v29 = vadd.f32 %v1094_v9, %v328_v21 }
  0x38   : > { %980 = vst [vmem:[%s1117_s27 + $0x50] sm:$0xff] %v929_v23   ;;  %v368_v30 = vadd.f32 %v1094_v9, %v329_v24  ;;  %v369_v31 = vadd.f32 %v1094_v9, %v330_v25  ;;  %v370_v32 = vadd.f32 %v1094_v9, %v331_v26  ;;  %v870_v33 = vunpack.c.l.bf16 %v969_v22 }
  0x39   : > { %vm398_vm7 = vcmp.gt.f32.partialorder %v366_v27, 0.0  ;;  %v430_v34 = vmul.f32 0.1, %v366_v27  ;;  %v461_v35 = vsel %vm397_vm6, %v365_v20, %v429_v28  ;;  %vm399_vm8 = vcmp.gt.f32.partialorder %v367_v29, 0.0 }
  0x3a   : > { %vm400_vm9 = vcmp.gt.f32.partialorder %v368_v30, 0.0  ;;  %v431_v36 = vmul.f32 0.1, %v367_v29  ;;  %v432_v37 = vmul.f32 0.1, %v368_v30  ;;  %vm401_vm10 = vcmp.gt.f32.partialorder %v369_v31, 0.0 }
  0x3b   : > { %v462_v38 = vsel %vm398_vm7, %v366_v27, %v430_v34  ;;  %vm402_vm11 = vcmp.gt.f32.partialorder %v370_v32, 0.0  ;;  %v433_v39 = vmul.f32 0.1, %v369_v31  ;;  %v434_v40 = vmul.f32 0.1, %v370_v32 }
  0x3c   : > { %v934_v42 = vpack.c.bf16 %v462_v38, %v461_v35  ;;  %v463_v43 = vsel %vm399_vm8, %v367_v29, %v431_v36  ;;  %v464_v44 = vsel %vm400_vm9, %v368_v30, %v432_v37  ;;  %v871_v45 = vunpack.c.h.bf16 %v969_v22 }
  0x3d   : > { %v939_v46 = vpack.c.bf16 %v464_v44, %v463_v43  ;;  %v465_v47 = vsel %vm401_vm10, %v369_v31, %v433_v39  ;;  %v466_v48 = vsel %vm402_vm11, %v370_v32, %v434_v40  ;;  %v332_v49 = vmul.f32 %v870_v33, %v1085_v0 }
  0x3e   : > { %981 = vst [vmem:[%s1117_s27 + $0x58] sm:$0xff] %v934_v42   ;;  %v944_v50 = vpack.c.bf16 %v466_v48, %v465_v47  ;;  %v333_v51 = vmul.f32 %v871_v45, %v1085_v0  ;;  %v874_v52 = vunpack.c.l.bf16 %v970_v41  ;;  %v875_v53 = vunpack.c.h.bf16 %v970_v41 }
  0x3f   : > { %982 = vst [vmem:[%s1117_s27 + $0x60] sm:$0xff] %v939_v46   ;;  %v371_v54 = vadd.f32 %v1094_v9, %v332_v49 }
  0x40   : > { %983 = vst [vmem:[%s1117_s27 + $0x68] sm:$0xff] %v944_v50   ;;  %v372_v55 = vadd.f32 %v1094_v9, %v333_v51  ;;  %v334_v56 = vmul.f32 %v874_v52, %v1085_v0  ;;  %v335_v57 = vmul.f32 %v875_v53, %v1085_v0 }
  0x41   : > { %vm403_vm12 = vcmp.gt.f32.partialorder %v371_v54, 0.0  ;;  %v435_v58 = vmul.f32 0.1, %v371_v54 }
  0x42   : > { %vm404_vm13 = vcmp.gt.f32.partialorder %v372_v55, 0.0  ;;  %v436_v59 = vmul.f32 0.1, %v372_v55  ;;  %v373_v60 = vadd.f32 %v1094_v9, %v334_v56  ;;  %v374_v61 = vadd.f32 %v1094_v9, %v335_v57 }
  0x43   : > { %v467_v62 = vsel %vm403_vm12, %v371_v54, %v435_v58 }
  0x44   : > { %v468_v63 = vsel %vm404_vm13, %v372_v55, %v436_v59  ;;  %vm405_vm14 = vcmp.gt.f32.partialorder %v373_v60, 0.0  ;;  %vm406_vm15 = vcmp.gt.f32.partialorder %v374_v61, 0.0  ;;  %v437_v1 = vmul.f32 0.1, %v373_v60 }
  0x45   : > { %v949_v2 = vpack.c.bf16 %v468_v63, %v467_v62  ;;  %v438_v3 = vmul.f32 0.1, %v374_v61 }
  0x46   : > { %v469_v4 = vsel %vm405_vm14, %v373_v60, %v437_v1 }
  0x47   : > { %984 = vst [vmem:[%s1117_s27 + $0x70] sm:$0xff] %v949_v2   ;;  %v470_v5 = vsel %vm406_vm15, %v374_v61, %v438_v3 }
  0x48   : > { %v954_v0 = vpack.c.bf16 %v470_v5, %v469_v4 }
  0x4a   : > { %985 = vst [vmem:[%s1117_s27 + $0x78] sm:$0xff] %v954_v0  }
  0x4b PF: > { %s13_s14 = sadd.s32 1, %s1032_s14   ;;  %s1209_s12 = smov %s1028_s13 }
  0x4c   : > { %p10_p5 = scmp.ge.s32.totalorder %s13_s14, 4   ;;  %s1210_s13 = smov %s1212_s15 }
  0x4e   :  { %12 = sbr.rel (!%p10_p5) target bundleno = 2 (0x2), region = 68 }

// kernel: convolutional_set_layer.10
= control target key start
LH: loop header
LB: loop body
LE: loop exit
PB: predicated region body
PF: predicated region fallthrough
CT: control target
= control target key end

     0   :  { %s1570_s12 = smov 0   ;;  %s1572_s13 = smov 0   ;;  %s1768_s0 = inlined_call_operand.vmem [shape: bf16[512,128], index: 0, kind: input, shape index: {}]   ;;  %s1769_s1 = inlined_call_operand.vmem [shape: bf16[128,128], index: 1, kind: input, shape index: {}]   ;;  %s1770_s2 = inlined_call_operand.vmem [shape: bf16[512,128], index: 2, kind: output, shape index: {0}]   ;;  %s1771_s3 = inlined_call_operand.vmem [shape: f32[2,2,128], index: 3, kind: output, shape index: {1}]  }
   0x1   :  { %s1574_s14 = smov 0  }
   0x2 LB: > { %s33_s15 = sadd.s32 1, %s1544_s13  ;;  %p1199_p0 = scmp.ge.s32.totalorder %s1548_s14, 1  ;;  %s1548_s14 = sphi %s1574_s14, %s14_s14   ;;  %s1544_s13 = sphi %s1572_s13, %s1773_s13   ;;  %s1540_s12 = sphi %s1570_s12, %s1772_s12  }
   0x3   : > { %p35_p1 = scmp.ge.s32.totalorder %s33_s15, 2  ;;  %p185_p2 = scmp.lt.s32.totalorder %s1548_s14, 3 }
   0x5   : > { %s1775_s15 = smov (%p35_p1, %s33_s15), 0  ;;  %p186_p3 = pnand %p1199_p0, %p185_p2 }
   0x6   : > { %s1200_s18 = sshll.u32 (!%p186_p3), %s1540_s12, 5  ;;  %p257_p5 = scmp.lt.s32.totalorder (!%p186_p3), %s1540_s12, 1 }
   0x7   : > { %189 = sbr.rel (%p186_p3) target bundleno = 322 (0x142), region = 28  ;;  %p231_p4 = scmp.lt.s32.totalorder (!%p186_p3), %s1200_s18, 63 }
   0xc   : > { %v1502_v0 = vld [vmem:[%s1769_s1 + $0x38] sm:$0xff]   ;;  %v1503_v1 = vld [vmem:[%s1769_s1 + $0x30] sm:$0xff]   ;;  %s1777_s18 = smov (!%p231_p4, %s1200_s18), 63  ;;  %v1504_v2 = vld [vmem:[%s1769_s1 + $0x28] sm:$0xff]   ;;  %s1779_s12 = smov (!%p257_p5, %s1540_s12), 1  ;;  %vm1051_vm0 = vcmask 1040384  }
   0xd   : > { %1414 = vmatprep.subr.bf16.mxu0 %v1502_v0  ;;  %1462 = vmatprep.subr.bf16.mxu1 %v1502_v0  ;;  %s1201_s23 = sshll.u32 %s1777_s18, 2  ;;  %v1505_v3 = vld [vmem:[%s1769_s1 + $0x20] sm:$0xff]   ;;  %v1506_v5 = vld [vmem:[%s1769_s1 + $0x18] sm:$0xff]   ;;  %v1507_v6 = vld [vmem:[%s1769_s1 + $0x10] sm:$0xff]   ;;  %s1204_s17 = sshll.u32 %s1779_s12, 1 }
   0xe   : > { %1415 = vmatpush3.bf16.msra.mxu0 %v1502_v0  ;;  %1470 = vmatpush3.bf16.msra.mxu1 %v1502_v0  ;;  %s1608_s26 = scalar_lea.vmem %s1768_s0, %s1201_s23  ;;  %v1508_v8 = vld [vmem:[%s1769_s1 + $0x8] sm:$0xff]   ;;  %v1509_v9 = vld [vmem:[%s1769_s1] sm:$0xff]   ;;  %s1650_s16 = scalar_lea.vmem %s1770_s2, %s1201_s23 }
   0xf   : > { %1416 = vmatprep.subr.bf16.mxu0 %v1503_v1  ;;  %1463 = vmatprep.subr.bf16.mxu1 %v1503_v1  ;;  %v1510_v4 = vld [vmem:[%s1608_s26] sm:$0xff]   ;;  %v1511_v10 = vld [vmem:[%s1608_s26 + $0x8] sm:$0xff]   ;;  %v1512_v12 = vld [vmem:[%s1608_s26 + $0x10] sm:$0xff]   ;;  %s263_s20 = scalar_lea.vmem %s1771_s3, %s1204_s17 }
  0x10   : > { %1430 = vmatprep.mubr.bf16.mxu0 %v1510_v4  ;;  %v1518_v7 = vld [vmem:[%s1608_s26 + $0x40] sm:$0xff]   ;;  %v1519_v11 = vld [vmem:[%s1608_s26 + $0x48] sm:$0xff]   ;;  %v1520_v13 = vld [vmem:[%s1608_s26 + $0x50] sm:$0xff]  }
  0x11   : > { %1446 = vmatprep.mubr.bf16.mxu1 %v1518_v7  ;;  %v1513_v14 = vld [vmem:[%s1608_s26 + $0x18] sm:$0xff]   ;;  %v1514_v16 = vld [vmem:[%s1608_s26 + $0x20] sm:$0xff]   ;;  %v1515_v18 = vld [vmem:[%s1608_s26 + $0x28] sm:$0xff]  }
  0x12   : > { %1417 = vmatpush3.bf16.msra.mxu0 %v1503_v1  ;;  %1471 = vmatpush3.bf16.msra.mxu1 %v1503_v1  ;;  %v1521_v15 = vld [vmem:[%s1608_s26 + $0x58] sm:$0xff]   ;;  %v1522_v17 = vld [vmem:[%s1608_s26 + $0x60] sm:$0xff]   ;;  %v1523_v19 = vld [vmem:[%s1608_s26 + $0x68] sm:$0xff]  }
  0x13   : > { %1418 = vmatprep.subr.bf16.mxu0 %v1504_v2  ;;  %1464 = vmatprep.subr.bf16.mxu1 %v1504_v2  ;;  %v1516_v20 = vld [vmem:[%s1608_s26 + $0x30] sm:$0xff]   ;;  %v1517_v22 = vld [vmem:[%s1608_s26 + $0x38] sm:$0xff]  }
  0x14   : > { %v1524_v21 = vld [vmem:[%s1608_s26 + $0x70] sm:$0xff]   ;;  %v1525_v23 = vld [vmem:[%s1608_s26 + $0x78] sm:$0xff]  }
  0x16   : > { %1419 = vmatpush3.bf16.msra.mxu0 %v1504_v2  ;;  %1472 = vmatpush3.bf16.msra.mxu1 %v1504_v2 }
  0x17   : > { %1420 = vmatprep.subr.bf16.mxu0 %v1505_v3  ;;  %1465 = vmatprep.subr.bf16.mxu1 %v1505_v3 }
  0x1a   : > { %1421 = vmatpush3.bf16.msra.mxu0 %v1505_v3  ;;  %1473 = vmatpush3.bf16.msra.mxu1 %v1505_v3 }
  0x1b   : > { %1422 = vmatprep.subr.bf16.mxu0 %v1506_v5  ;;  %1466 = vmatprep.subr.bf16.mxu1 %v1506_v5 }
  0x1e   : > { %1423 = vmatpush3.bf16.msra.mxu0 %v1506_v5  ;;  %1474 = vmatpush3.bf16.msra.mxu1 %v1506_v5 }
  0x1f   : > { %1424 = vmatprep.subr.bf16.mxu0 %v1507_v6  ;;  %1467 = vmatprep.subr.bf16.mxu1 %v1507_v6 }
  0x22   : > { %1425 = vmatpush3.bf16.msra.mxu0 %v1507_v6  ;;  %1475 = vmatpush3.bf16.msra.mxu1 %v1507_v6 }
  0x23   : > { %1426 = vmatprep.subr.bf16.mxu0 %v1508_v8  ;;  %1468 = vmatprep.subr.bf16.mxu1 %v1508_v8 }
  0x26   : > { %1427 = vmatpush3.bf16.msra.mxu0 %v1508_v8  ;;  %1476 = vmatpush3.bf16.msra.mxu1 %v1508_v8 }
  0x27   : > { %1428 = vmatprep.subr.bf16.mxu0 %v1509_v9  ;;  %1469 = vmatprep.subr.bf16.mxu1 %v1509_v9 }
  0x2a   : > { %1429 = vmatpush3.bf16.msra.mxu0 %v1509_v9  ;;  %1477 = vmatpush3.bf16.msra.mxu1 %v1509_v9 }
  0x2d   : > { %1431 = vmatmul.mubr.bf16.vlgmr.msra.gmra.mxu0 %v1511_v10  ;;  %1447 = vmatmul.mubr.bf16.vlgmr.msra.gmra.mxu1 %v1519_v11 }
  0x2e   : > { %1434 = vmatprep.mubr.bf16.mxu0 %v1512_v12  ;;  %1450 = vmatprep.mubr.bf16.mxu1 %v1520_v13 }
  0x35   : > { %1435 = vmatmul.mubr.bf16.gmra.mxu0 %v1513_v14  ;;  %1451 = vmatmul.mubr.bf16.gmra.mxu1 %v1521_v15 }
  0x36   : > { %1438 = vmatprep.mubr.bf16.mxu0 %v1514_v16  ;;  %1454 = vmatprep.mubr.bf16.mxu1 %v1522_v17 }
  0x3d   : > { %1439 = vmatmul.mubr.bf16.gmra.mxu0 %v1515_v18  ;;  %1455 = vmatmul.mubr.bf16.gmra.mxu1 %v1523_v19 }
  0x3e   : > { %1442 = vmatprep.mubr.bf16.mxu0 %v1516_v20  ;;  %1458 = vmatprep.mubr.bf16.mxu1 %v1524_v21 }
  0x45   : > { %1443 = vmatmul.mubr.bf16.gmra.mxu0 %v1517_v22  ;;  %1459 = vmatmul.mubr.bf16.gmra.mxu1 %v1525_v23 }
  0xed   : > { %v1432_v24 = vpop.f32.mrf.mxu0  ;;  %v1641_v25 = vpop.f32.mrf.mxu1 }
  0xee   : > { %v984_v41 = vmul.f32 %v1432_v24, %v1432_v24 }
  0xef   : > { %v559_v26 = vpop.f32.mrf.mxu0  ;;  %v1643_v27 = vpop.f32.mrf.mxu1 }
  0xf0   : > { %v982_v32 = vmul.f32 %v559_v26, %v559_v26 }
  0xf1   : > { %v1433_v28 = vpop.f32.mrf.mxu0  ;;  %v1652_v29 = vpop.f32.mrf.mxu1 }
  0xf2   : > { %v1303_v30 = vpack.c.bf16 %v1433_v28, %v1432_v24  ;;  %v1343_v31 = vpack.c.bf16 %v1652_v29, %v1641_v25  ;;  %v985_v46 = vmul.f32 %v1433_v28, %v1433_v28 }
  0xf3   : > { %v562_v33 = vpop.f32.mrf.mxu0  ;;  %v1656_v34 = vpop.f32.mrf.mxu1 }
  0xf4   : > { %1375 = vst [vmem:[%s1650_s16 + $0x8] sm:$0xff] %v1303_v30   ;;  %v1298_v35 = vpack.c.bf16 %v562_v33, %v559_v26  ;;  %v945_v36 = vadd.f32 %v562_v33, %v559_v26  ;;  %v983_v37 = vmul.f32 %v562_v33, %v562_v33  ;;  %1383 = vst [vmem:[%s1650_s16 + $0x48] sm:$0xff] %v1343_v31  }
  0xf5   : > { %v1338_v38 = vpack.c.bf16 %v1656_v34, %v1643_v27  ;;  %v1436_v39 = vpop.f32.mrf.mxu0  ;;  %v1662_v40 = vpop.f32.mrf.mxu1 }
  0xf6   : > { %1299 = vst [vmem:[%s1650_s16] sm:$0xff] %v1298_v35   ;;  %v946_v42 = vadd.f32 %v1432_v24, %v945_v36  ;;  %v1014_v43 = vadd.f32 %v983_v37, %v982_v32  ;;  %v988_v1 = vmul.f32 %v1436_v39, %v1436_v39 }
  0xf7   : > { %1382 = vst [vmem:[%s1650_s16 + $0x40] sm:$0xff] %v1338_v38   ;;  %v575_v44 = vpop.f32.mrf.mxu0  ;;  %v1666_v45 = vpop.f32.mrf.mxu1 }
  0xf8   : > { %v1015_v47 = vadd.f32 %v1014_v43, %v984_v41  ;;  %v947_v48 = vadd.f32 %v1433_v28, %v946_v42  ;;  %v986_v52 = vmul.f32 %v575_v44, %v575_v44 }
  0xf9   : > { %v1437_v49 = vpop.f32.mrf.mxu0  ;;  %v1668_v50 = vpop.f32.mrf.mxu1 }
  0xfa   : > { %v948_v51 = vadd.f32 %v947_v48, %v575_v44  ;;  %v1016_v53 = vadd.f32 %v1015_v47, %v985_v46  ;;  %v1313_v54 = vpack.c.bf16 %v1437_v49, %v1436_v39  ;;  %v1353_v56 = vpack.c.bf16 %v1668_v50, %v1662_v40 }
  0xfb   : > { %v578_v55 = vpop.f32.mrf.mxu0  ;;  %v1672_v57 = vpop.f32.mrf.mxu1  ;;  %v989_v6 = vmul.f32 %v1437_v49, %v1437_v49 }
  0xfc   : > { %v1017_v58 = vadd.f32 %v1016_v53, %v986_v52  ;;  %1377 = vst [vmem:[%s1650_s16 + $0x18] sm:$0xff] %v1313_v54   ;;  %v1308_v59 = vpack.c.bf16 %v578_v55, %v575_v44  ;;  %v949_v60 = vadd.f32 %v948_v51, %v578_v55  ;;  %v987_v61 = vmul.f32 %v578_v55, %v578_v55 }
  0xfd   : > { %v1440_v62 = vpop.f32.mrf.mxu0  ;;  %1385 = vst [vmem:[%s1650_s16 + $0x58] sm:$0xff] %v1353_v56   ;;  %v1348_v63 = vpack.c.bf16 %v1672_v57, %v1666_v45  ;;  %v1678_v0 = vpop.f32.mrf.mxu1 }
  0xfe   : > { %1376 = vst [vmem:[%s1650_s16 + $0x10] sm:$0xff] %v1308_v59   ;;  %v950_v2 = vadd.f32 %v1436_v39, %v949_v60  ;;  %v1018_v3 = vadd.f32 %v1017_v58, %v987_v61  ;;  %v992_v26 = vmul.f32 %v1440_v62, %v1440_v62  ;;  %v998_v61 = vmul.f32 %v1643_v27, %v1643_v27 }
  0xff   : > { %v591_v4 = vpop.f32.mrf.mxu0  ;;  %1384 = vst [vmem:[%s1650_s16 + $0x50] sm:$0xff] %v1348_v63   ;;  %v1682_v5 = vpop.f32.mrf.mxu1 }
 0x100   : > { %v1019_v7 = vadd.f32 %v1018_v3, %v988_v1  ;;  %v951_v8 = vadd.f32 %v1437_v49, %v950_v2  ;;  %v990_v12 = vmul.f32 %v591_v4, %v591_v4  ;;  %v999_v2 = vmul.f32 %v1656_v34, %v1656_v34 }
 0x101   : > { %v1441_v9 = vpop.f32.mrf.mxu0  ;;  %v1684_v10 = vpop.f32.mrf.mxu1 }
 0x102   : > { %v952_v11 = vadd.f32 %v951_v8, %v591_v4  ;;  %v1020_v13 = vadd.f32 %v1019_v7, %v989_v6  ;;  %v1323_v14 = vpack.c.bf16 %v1441_v9, %v1440_v62  ;;  %v1363_v16 = vpack.c.bf16 %v1684_v10, %v1678_v0 }
 0x103   : > { %v594_v15 = vpop.f32.mrf.mxu0  ;;  %v1688_v17 = vpop.f32.mrf.mxu1  ;;  %v993_v33 = vmul.f32 %v1441_v9, %v1441_v9  ;;  %v1001_v8 = vmul.f32 %v1652_v29, %v1652_v29 }
 0x104   : > { %v1021_v18 = vadd.f32 %v1020_v13, %v990_v12  ;;  %1379 = vst [vmem:[%s1650_s16 + $0x28] sm:$0xff] %v1323_v14   ;;  %v1318_v19 = vpack.c.bf16 %v594_v15, %v591_v4  ;;  %v953_v20 = vadd.f32 %v952_v11, %v594_v15  ;;  %v991_v21 = vmul.f32 %v594_v15, %v594_v15 }
 0x105   : > { %v1444_v22 = vpop.f32.mrf.mxu0  ;;  %1387 = vst [vmem:[%s1650_s16 + $0x68] sm:$0xff] %v1363_v16   ;;  %v1358_v23 = vpack.c.bf16 %v1688_v17, %v1682_v5  ;;  %v1694_v24 = vpop.f32.mrf.mxu1  ;;  %v1000_v4 = vmul.f32 %v1641_v25, %v1641_v25  ;;  %v1002_v12 = vmul.f32 %v1666_v45, %v1666_v45  ;;  %v1003_v15 = vmul.f32 %v1672_v57, %v1672_v57 }
 0x106   : > { %1378 = vst [vmem:[%s1650_s16 + $0x20] sm:$0xff] %v1318_v19   ;;  %v954_v28 = vadd.f32 %v1440_v62, %v953_v20  ;;  %v1022_v30 = vadd.f32 %v1021_v18, %v991_v21  ;;  %v996_v54 = vmul.f32 %v1444_v22, %v1444_v22  ;;  %v1006_v21 = vmul.f32 %v1682_v5, %v1682_v5 }
 0x107   : > { %v607_v31 = vpop.f32.mrf.mxu0  ;;  %1386 = vst [vmem:[%s1650_s16 + $0x60] sm:$0xff] %v1358_v23   ;;  %v1698_v32 = vpop.f32.mrf.mxu1 }
 0x108   : > { %v1023_v35 = vadd.f32 %v1022_v30, %v992_v26  ;;  %v955_v36 = vadd.f32 %v1441_v9, %v954_v28  ;;  %v994_v41 = vmul.f32 %v607_v31, %v607_v31  ;;  %v1007_v26 = vmul.f32 %v1688_v17, %v1688_v17 }
 0x109   : > { %v1445_v37 = vpop.f32.mrf.mxu0  ;;  %v1700_v38 = vpop.f32.mrf.mxu1 }
 0x10a   : > { %v956_v39 = vadd.f32 %v955_v36, %v607_v31  ;;  %v1024_v42 = vadd.f32 %v1023_v35, %v993_v33  ;;  %v1333_v43 = vpack.c.bf16 %v1445_v37, %v1444_v22  ;;  %v1373_v46 = vpack.c.bf16 %v1700_v38, %v1694_v24 }
 0x10b   : > { %v610_v44 = vpop.f32.mrf.mxu0  ;;  %v674_v47 = vpop.f32.mrf.mxu1  ;;  %v997_v58 = vmul.f32 %v1445_v37, %v1445_v37  ;;  %v1010_v35 = vmul.f32 %v1698_v32, %v1698_v32 }
 0x10c   : > { %v1025_v48 = vadd.f32 %v1024_v42, %v994_v41  ;;  %1381 = vst [vmem:[%s1650_s16 + $0x38] sm:$0xff] %v1333_v43   ;;  %v1328_v49 = vpack.c.bf16 %v610_v44, %v607_v31  ;;  %v957_v51 = vadd.f32 %v956_v39, %v610_v44  ;;  %v995_v52 = vmul.f32 %v610_v44, %v610_v44 }
 0x10d   : > { %1389 = vst [vmem:[%s1650_s16 + $0x78] sm:$0xff] %v1373_v46   ;;  %v1368_v53 = vpack.c.bf16 %v674_v47, %v1698_v32  ;;  %v1011_v39 = vmul.f32 %v674_v47, %v674_v47  ;;  %v1013_v43 = vmul.f32 %v1700_v38, %v1700_v38 }
 0x10e   : > { %1380 = vst [vmem:[%s1650_s16 + $0x30] sm:$0xff] %v1328_v49   ;;  %v958_v55 = vadd.f32 %v1444_v22, %v957_v51  ;;  %v1026_v56 = vadd.f32 %v1025_v48, %v995_v52 }
 0x10f   : > { %1388 = vst [vmem:[%s1650_s16 + $0x70] sm:$0xff] %v1368_v53  }
 0x110   : > { %v959_v59 = vadd.f32 %v1445_v37, %v958_v55  ;;  %v1027_v60 = vadd.f32 %v1026_v56, %v996_v54 }
 0x112   : > { %v1028_v62 = vadd.f32 %v1027_v60, %v997_v58  ;;  %v960_v63 = vadd.f32 %v959_v59, %v1643_v27 }
 0x114   : > { %v961_v1 = vadd.f32 %v960_v63, %v1656_v34  ;;  %v1029_v3 = vadd.f32 %v1028_v62, %v998_v61 }
 0x116   : > { %v962_v6 = vadd.f32 %v1641_v25, %v961_v1  ;;  %v1030_v7 = vadd.f32 %v1029_v3, %v999_v2  ;;  %v1004_v25 = vmul.f32 %v1662_v40, %v1662_v40 }
 0x118   : > { %v1031_v9 = vadd.f32 %v1030_v7, %v1000_v4  ;;  %v963_v11 = vadd.f32 %v1652_v29, %v962_v6  ;;  %v1005_v29 = vmul.f32 %v1668_v50, %v1668_v50 }
 0x11a   : > { %v964_v27 = vadd.f32 %v963_v11, %v1666_v45  ;;  %v1032_v13 = vadd.f32 %v1031_v9, %v1001_v8 }
 0x11c   : > { %v1033_v34 = vadd.f32 %v1032_v13, %v1002_v12  ;;  %v965_v14 = vadd.f32 %v964_v27, %v1672_v57 }
 0x11e   : > { %v966_v16 = vadd.f32 %v1662_v40, %v965_v14  ;;  %v1034_v18 = vadd.f32 %v1033_v34, %v1003_v15  ;;  %v1008_v40 = vmul.f32 %v1678_v0, %v1678_v0 }
 0x120   : > { %v1035_v19 = vadd.f32 %v1034_v18, %v1004_v25  ;;  %v967_v20 = vadd.f32 %v1668_v50, %v966_v16  ;;  %v1009_v50 = vmul.f32 %v1684_v10, %v1684_v10 }
 0x122   : > { %v968_v45 = vadd.f32 %v967_v20, %v1682_v5  ;;  %v1036_v22 = vadd.f32 %v1035_v19, %v1005_v29 }
 0x124   : > { %v1037_v23 = vadd.f32 %v1036_v22, %v1006_v21  ;;  %v969_v57 = vadd.f32 %v968_v45, %v1688_v17 }
 0x126   : > { %v970_v28 = vadd.f32 %v1678_v0, %v969_v57  ;;  %v1038_v30 = vadd.f32 %v1037_v23, %v1007_v26  ;;  %v1012_v0 = vmul.f32 %v1694_v24, %v1694_v24 }
 0x128   : > { %v1039_v31 = vadd.f32 %v1038_v30, %v1008_v40  ;;  %v971_v5 = vadd.f32 %v1684_v10, %v970_v28 }
 0x12a   : > { %v972_v33 = vadd.f32 %v971_v5, %v1698_v32  ;;  %v1040_v36 = vadd.f32 %v1039_v31, %v1009_v50 }
 0x12c   : > { %v1041_v17 = vadd.f32 %v1040_v36, %v1010_v35  ;;  %v973_v37 = vadd.f32 %v972_v33, %v674_v47 }
 0x12e   : > { %v974_v41 = vadd.f32 %v1694_v24, %v973_v37  ;;  %v1042_v42 = vadd.f32 %v1041_v17, %v1011_v39 }
 0x130   : > { %v975_v10 = vadd.f32 %v1700_v38, %v974_v41  ;;  %v1043_v44 = vadd.f32 %v1042_v42, %v1012_v0 }
 0x132   : > { %v976_v46 = vrot.slane %v975_v10, 4  ;;  %v1044_v48 = vadd.f32 %v1043_v44, %v1013_v43 }
 0x134   : > { %v977_v32 = vadd.f32 %v976_v46, %v975_v10  ;;  %v1045_v49 = vrot.slane %v1044_v48, 4 }
 0x136   : > { %v978_v51 = vrot.slane %v977_v32, 2  ;;  %v1046_v52 = vadd.f32 %v1045_v49, %v1044_v48 }
 0x138   : > { %v979_v47 = vadd.f32 %v978_v51, %v977_v32  ;;  %v1047_v53 = vrot.slane %v1046_v52, 2 }
 0x13a   : > { %v980_v54 = vrot.slane %v979_v47, 1  ;;  %v1048_v55 = vadd.f32 %v1047_v53, %v1046_v52 }
 0x13c   : > { %v1049_v24 = vrot.slane %v1048_v55, 1  ;;  %v981_v38 = vadd.f32 %v980_v54, %v979_v47 }
 0x13e   : > { %v1050_v56 = vadd.f32 %v1049_v24, %v1048_v55 }
 0x140   : > { %v1052_v58 = vsel %vm1051_vm0, %v981_v38, %v1050_v56 }
 0x141   : > { %1053 = vst [vmem:[%s263_s20] sm:$0x3] %v1052_v58 }
 0x142 PF: > { %s14_s14 = sadd.s32 1, %s1548_s14   ;;  %s1772_s12 = smov %s1544_s13 }
 0x143   : > { %p11_p6 = scmp.ge.s32.totalorder %s14_s14, 4   ;;  %s1773_s13 = smov %s1775_s15 }
 0x145   :  { %13 = sbr.rel (!%p11_p6) target bundleno = 2 (0x2), region = 81 }

// kernel: convolutional_set_layer.12
= control target key start
LH: loop header
LB: loop body
LE: loop exit
PB: predicated region body
PF: predicated region fallthrough
CT: control target
= control target key end

     0   :  { %s6922_s12 = smov 0   ;;  %s6924_s13 = smov 0   ;;  %s9593_s0 = inlined_call_operand.vmem [shape: bf16[2,18,18,128], index: 0, kind: input, shape index: {}]   ;;  %s9594_s1 = inlined_call_operand.vmem [shape: bf16[1152,128], index: 1, kind: input, shape index: {}]   ;;  %s9595_s2 = inlined_call_operand.vmem [shape: bf16[2,256,128], index: 2, kind: output, shape index: {0}]   ;;  %s9596_s3 = inlined_call_operand.vmem [shape: f32[2,2,128], index: 3, kind: output, shape index: {1}]  }
   0x1   :  { %s6926_s14 = smov 0  }
   0x2 LB: > { %s26_s15 = sadd.s32 1, %s6896_s13  ;;  %p5437_p0 = scmp.ge.s32.totalorder %s6900_s14, 1  ;;  %s6900_s14 = sphi %s6926_s14, %s14_s14   ;;  %s6896_s13 = sphi %s6924_s13, %s9817_s13   ;;  %s6892_s12 = sphi %s6922_s12, %s9816_s12  }
   0x3   : > { %p28_p1 = scmp.ge.s32.totalorder %s26_s15, 2  ;;  %p165_p2 = scmp.lt.s32.totalorder %s6900_s14, 3 }
   0x5   : > { %s9819_s15 = smov (%p28_p1, %s26_s15), 0  ;;  %p166_p3 = pnand %p5437_p0, %p165_p2 }
   0x7   : > { %169 = sbr.rel (%p166_p3) target bundleno = 575 (0x23f), region = 28 }
   0xc   : > { %v6749_v0 = vld [vmem:[%s9594_s1 + $0x78] sm:$0xff]   ;;  %p203_p4 = scmp.lt.s32.totalorder %s6892_s12, 1  ;;  %v6750_v1 = vld [vmem:[%s9594_s1 + $0x70] sm:$0xff]   ;;  %v6751_v2 = vld [vmem:[%s9594_s1 + $0x68] sm:$0xff]   ;;  %vm292_vm0 = vsmask.f32 3328 }
   0xd   : > { %6276 = vmatprep.subr.bf16.mxu0 %v6749_v0  ;;  %6708 = vmatprep.subr.bf16.mxu1 %v6749_v0  ;;  %v6752_v3 = vld [vmem:[%s9594_s1 + $0x60] sm:$0xff]   ;;  %vm293_vm1 = vsmask.f32 7440  ;;  %v6753_v17 = vld [vmem:[%s9594_s1 + $0x58] sm:$0xff]   ;;  %v6754_v33 = vld [vmem:[%s9594_s1 + $0x50] sm:$0xff]   ;;  %vm1321_vm3 = vcmask 1042432  }
   0xe   : > { %s9821_s12 = smov (!%p203_p4, %s6892_s12), 1  ;;  %6277 = vmatpush3.bf16.msra.mxu0 %v6749_v0  ;;  %6716 = vmatpush3.bf16.msra.mxu1 %v6749_v0  ;;  %vm6986_vm2 = vmor %vm292_vm0, %vm293_vm1  ;;  %v6755_v58 = vld [vmem:[%s9594_s1 + $0x48] sm:$0xff]   ;;  %vm1322_vm4 = vcmask 1046532   ;;  %vm5295_vm6 = vcmask 1040384  }
   0xf   : > { %6278 = vmatprep.subr.bf16.mxu0 %v6750_v1  ;;  %6709 = vmatprep.subr.bf16.mxu1 %v6750_v1  ;;  %s6724_s22 = smul.u32 216, %s9821_s12  ;;  %vm7297_vm5 = vmor %vm1321_vm3, %vm1322_vm4  ;;  %s5441_s8 = sshll.u32 %s9821_s12, 1 }
  0x10   : > { %s226_s11 = scalar_lea.vmem %s9596_s3, %s5441_s8 }
  0x11   : > { %s6955_s25 = scalar_lea.vmem %s9593_s0, %s6724_s22 }
  0x12   : > { %6279 = vmatpush3.bf16.msra.mxu0 %v6750_v1  ;;  %6717 = vmatpush3.bf16.msra.mxu1 %v6750_v1  ;;  %v6961_v4 = vld [vmem:[%s6955_s25] sm:$0xf]  ;;  %v6964_v5 = vld [vmem:[%s6955_s25 + $0x4] sm:$0xf]  ;;  %v6967_v6 = vld [vmem:[%s6955_s25 + $0x8] sm:$0x1] }
  0x13   : > { %6280 = vmatprep.subr.bf16.mxu0 %v6751_v2  ;;  %6710 = vmatprep.subr.bf16.mxu1 %v6751_v2  ;;  %v296_v7 = vshrl.u32 %v6961_v4, 16  ;;  %v299_v8 = vshll.u32 %v6961_v4, 16  ;;  %v305_v9 = vshll.u32 %v6964_v5, 16  ;;  %v309_v10 = vshrl.u32 %v6964_v5, 16  ;;  %v244_v12 = vld [vmem:[%s6955_s25 + $0x60] sm:$0xf] }
  0x14   : > { %v315_v11 = vshll.u32 %v6967_v6, 16  ;;  %v245_v15 = vld [vmem:[%s6955_s25 + $0x64] sm:$0xf]  ;;  %v284_v16 = vld [vmem:[%s6955_s25 + $0x68] sm:$0x1]  ;;  %v488_v21 = vshrl.u32 %v244_v12, 16 }
  0x15   : > { %v298_v13 = vrot.slane %v296_v7, 4  ;;  %v301_v14 = vrot.slane %v299_v8, 5  ;;  %v307_v18 = vrot.slane %v305_v9, 5  ;;  %v311_v19 = vrot.slane %v309_v10, 4  ;;  %v6982_v26 = vld [vmem:[%s6955_s25 + $0xc] sm:$0xf] }
  0x16   : > { %6281 = vmatpush3.bf16.msra.mxu0 %v6751_v2  ;;  %6718 = vmatpush3.bf16.msra.mxu1 %v6751_v2  ;;  %v491_v23 = vshll.u32 %v244_v12, 16  ;;  %v497_v24 = vshll.u32 %v245_v15, 16  ;;  %v501_v25 = vshrl.u32 %v245_v15, 16  ;;  %v317_v29 = vrot.slane %v315_v11, 5  ;;  %v6991_v32 = vld [vmem:[%s6955_s25 + $0x10] sm:$0xf] }
  0x17   : > { %6282 = vmatprep.subr.bf16.mxu0 %v6752_v3  ;;  %6711 = vmatprep.subr.bf16.mxu1 %v6752_v3  ;;  %v302_v22 = vor.u32 %v301_v14, %v298_v13  ;;  %v312_v28 = vor.u32 %v311_v19, %v307_v18  ;;  %v490_v30 = vrot.slane %v488_v21, 4  ;;  %v507_v31 = vshll.u32 %v284_v16, 16  ;;  %v6997_v40 = vld [vmem:[%s6955_s25 + $0x14] sm:$0x1]  ;;  %v246_v47 = vld [vmem:[%s6955_s25 + $0x6c] sm:$0xf] }
  0x18   : > { %v493_v35 = vrot.slane %v491_v23, 5  ;;  %v499_v36 = vrot.slane %v497_v24, 5  ;;  %v503_v37 = vrot.slane %v501_v25, 4  ;;  %v320_v41 = vshrl.u32 %v6982_v26, 16  ;;  %v247_v52 = vld [vmem:[%s6955_s25 + $0x70] sm:$0xf] }
  0x19   : > { %v303_v34 = vrot.slane %v302_v22, 4  ;;  %v313_v38 = vrot.slane %v312_v28, 4  ;;  %v509_v39 = vrot.slane %v507_v31, 5  ;;  %v323_v42 = vshll.u32 %v6982_v26, 16  ;;  %v285_v57 = vld [vmem:[%s6955_s25 + $0x74] sm:$0x1] }
  0x1a   : > { %6283 = vmatpush3.bf16.msra.mxu0 %v6752_v3  ;;  %6719 = vmatpush3.bf16.msra.mxu1 %v6752_v3  ;;  %v494_v44 = vor.u32 %v493_v35, %v490_v30  ;;  %v504_v45 = vor.u32 %v503_v37, %v499_v36  ;;  %v329_v46 = vshll.u32 %v6991_v32, 16  ;;  %v322_v49 = vrot.slane %v320_v41, 4  ;;  %v7020_v14 = vld [vmem:[%s6955_s25 + $0x18] sm:$0xf]  ;;  %v6756_v15 = vld [vmem:[%s9594_s1 + $0x40] sm:$0xff]  }
  0x1b   : > { %6284 = vmatprep.subr.bf16.mxu0 %v6753_v17  ;;  %6712 = vmatprep.subr.bf16.mxu1 %v6753_v17  ;;  %v308_v43 = vsel %vm6986_vm2, %v303_v34, %v307_v18  ;;  %v318_v48 = vsel %vm6986_vm2, %v313_v38, %v317_v29  ;;  %v325_v50 = vrot.slane %v323_v42, 5  ;;  %v333_v51 = vshrl.u32 %v6991_v32, 16  ;;  %v7028_v19 = vld [vmem:[%s6955_s25 + $0x1c] sm:$0xf]  ;;  %v7033_v25 = vld [vmem:[%s6955_s25 + $0x20] sm:$0x1] }
  0x1c   : > { %v5442_v53 = vcombine.low %v308_v43, %v318_v48  ;;  %v495_v54 = vrot.slane %v494_v44, 4  ;;  %v505_v55 = vrot.slane %v504_v45, 4  ;;  %v331_v56 = vrot.slane %v329_v46, 5  ;;  %v248_v34 = vld [vmem:[%s6955_s25 + $0x78] sm:$0xf] }
  0x1d   : > { %v326_v59 = vor.u32 %v325_v50, %v322_v49  ;;  %v335_v60 = vrot.slane %v333_v51, 4  ;;  %v339_v61 = vshll.u32 %v6997_v40, 16  ;;  %v512_v1 = vshrl.u32 %v246_v47, 16  ;;  %v6757_v41 = vld [vmem:[%s9594_s1 + $0x38] sm:$0xff]   ;;  %v286_v49 = vld [vmem:[%s6955_s25 + $0x80] sm:$0x1] }
  0x1e   : > { %6285 = vmatpush3.bf16.msra.mxu0 %v6753_v17  ;;  %6720 = vmatpush3.bf16.msra.mxu1 %v6753_v17  ;;  %v500_v63 = vsel %vm6986_vm2, %v495_v54, %v499_v36  ;;  %v510_v0 = vsel %vm6986_vm2, %v505_v55, %v509_v39  ;;  %v515_v2 = vshll.u32 %v246_v47, 16  ;;  %v521_v12 = vshll.u32 %v247_v52, 16  ;;  %v7042_v39 = vld [vmem:[%s6955_s25 + $0x7c] sm:$0xf] }
  0x1f   : > { %6286 = vmatprep.subr.bf16.mxu0 %v6754_v33  ;;  %6713 = vmatprep.subr.bf16.mxu1 %v6754_v33  ;;  %v5450_v3 = vcombine.low %v500_v63, %v510_v0  ;;  %v327_v7 = vrot.slane %v326_v59, 4  ;;  %v336_v8 = vor.u32 %v335_v60, %v331_v56  ;;  %v341_v9 = vrot.slane %v339_v61, 5  ;;  %v6758_v42 = vld [vmem:[%s9594_s1 + $0xb8] sm:$0xff]   ;;  %v6760_v59 = vld [vmem:[%s9594_s1 + $0xb0] sm:$0xff]   ;;  %v7069_v0 = vld [vmem:[%s6955_s25 + $0x28] sm:$0xf] }
  0x20   : > { %6292 = vmatprep.mubr.bf16.mxu0 %v5442_v53  ;;  %v514_v10 = vrot.slane %v512_v1, 4  ;;  %v517_v11 = vrot.slane %v515_v2, 5  ;;  %v525_v13 = vshrl.u32 %v247_v52, 16  ;;  %v531_v18 = vshll.u32 %v285_v57, 16  ;;  %v6759_v52 = vld [vmem:[%s9594_s1 + $0x30] sm:$0xff]  }
  0x21   : > { %v332_v16 = vsel %vm6986_vm2, %v327_v7, %v331_v56  ;;  %v337_v17 = vrot.slane %v336_v8, 4  ;;  %6308 = vmatprep.mubr.bf16.mxu1 %v5450_v3  ;;  %v523_v23 = vrot.slane %v521_v12, 5  ;;  %v344_v28 = vshrl.u32 %v7020_v14, 16  ;;  %v7060_v57 = vld [vmem:[%s6955_s25 + $0x24] sm:$0xf] }
  0x22   : > { %6287 = vmatpush3.bf16.msra.mxu0 %v6754_v33  ;;  %6721 = vmatpush3.bf16.msra.mxu1 %v6754_v33  ;;  %v518_v22 = vor.u32 %v517_v11, %v514_v10  ;;  %v527_v24 = vrot.slane %v525_v13, 4  ;;  %v533_v30 = vrot.slane %v531_v18, 5  ;;  %v347_v31 = vshll.u32 %v7020_v14, 16  ;;  %v7072_v8 = vld [vmem:[%s6955_s25 + $0x2c] sm:$0x1] }
  0x23   : > { %6288 = vmatprep.subr.bf16.mxu0 %v6755_v58  ;;  %6714 = vmatprep.subr.bf16.mxu1 %v6755_v58  ;;  %v342_v29 = vsel %vm6986_vm2, %v337_v17, %v341_v9  ;;  %v353_v33 = vshll.u32 %v7028_v19, 16  ;;  %v346_v38 = vrot.slane %v344_v28, 4  ;;  %v357_v45 = vshrl.u32 %v7028_v19, 16  ;;  %v7076_v13 = vld [vmem:[%s6955_s25 + $0x84] sm:$0xf] }
  0x24   : > { %v5443_v35 = vcombine.low %v332_v16, %v342_v29  ;;  %v519_v36 = vrot.slane %v518_v22, 4  ;;  %v528_v37 = vor.u32 %v527_v24, %v523_v23  ;;  %v349_v43 = vrot.slane %v347_v31, 5  ;;  %v7083_v22 = vld [vmem:[%s6955_s25 + $0x88] sm:$0xf] }
  0x25   : > { %v355_v44 = vrot.slane %v353_v33, 5  ;;  %v363_v46 = vshll.u32 %v7033_v25, 16  ;;  %v536_v50 = vshrl.u32 %v248_v34, 16  ;;  %v539_v51 = vshll.u32 %v248_v34, 16 }
  0x26   : > { %6289 = vmatpush3.bf16.msra.mxu0 %v6755_v58  ;;  %6722 = vmatpush3.bf16.msra.mxu1 %v6755_v58  ;;  %v524_v47 = vsel %vm6986_vm2, %v519_v36, %v523_v23  ;;  %v529_v48 = vrot.slane %v528_v37, 4  ;;  %v350_v53 = vor.u32 %v349_v43, %v346_v38  ;;  %v359_v54 = vrot.slane %v357_v45, 4  ;;  %v7092_v36 = vld [vmem:[%s6955_s25 + $0x8c] sm:$0x1] }
  0x27   : > { %6290 = vmatprep.subr.bf16.mxu0 %v6756_v15  ;;  %6715 = vmatprep.subr.bf16.mxu1 %v6756_v15  ;;  %v365_v55 = vrot.slane %v363_v46, 5  ;;  %v545_v56 = vshll.u32 %v7042_v39, 16  ;;  %v538_v60 = vrot.slane %v536_v50, 4  ;;  %v541_v61 = vrot.slane %v539_v51, 5  ;;  %v6762_v37 = vld [vmem:[%s9594_s1 + $0xa8] sm:$0xff]  }
  0x28   : > { %v534_v58 = vsel %vm6986_vm2, %v529_v48, %v533_v30  ;;  %v549_v63 = vshrl.u32 %v7042_v39, 16  ;;  %v351_v2 = vrot.slane %v350_v53, 4  ;;  %v360_v3 = vor.u32 %v359_v54, %v355_v44  ;;  %v6761_v30 = vld [vmem:[%s9594_s1 + $0x28] sm:$0xff]   ;;  %v7107_v53 = vld [vmem:[%s6955_s25 + $0x30] sm:$0xf] }
  0x29   : > { %v5451_v1 = vcombine.low %v524_v47, %v534_v58  ;;  %v547_v7 = vrot.slane %v545_v56, 5  ;;  %v542_v9 = vor.u32 %v541_v61, %v538_v60  ;;  %v555_v11 = vshll.u32 %v286_v49, 16  ;;  %v7116_v60 = vld [vmem:[%s6955_s25 + $0x34] sm:$0xf] }
  0x2a   : > { %6291 = vmatpush3.bf16.msra.mxu0 %v6756_v15  ;;  %6723 = vmatpush3.bf16.msra.mxu1 %v6756_v15  ;;  %v551_v10 = vrot.slane %v549_v63, 4  ;;  %v368_v12 = vshrl.u32 %v7060_v57, 16  ;;  %v356_v15 = vsel %vm6986_vm2, %v351_v2, %v355_v44  ;;  %v361_v16 = vrot.slane %v360_v3, 4 }
  0x2b   : > { %6324 = vmatprep.subr.bf16.mxu1 %v6757_v41  ;;  %6372 = vmatprep.subr.bf16.mxu0 %v6758_v42  ;;  %v371_v17 = vshll.u32 %v7060_v57, 16  ;;  %v377_v18 = vshll.u32 %v7069_v0, 16  ;;  %v543_v23 = vrot.slane %v542_v9, 4  ;;  %v557_v28 = vrot.slane %v555_v11, 5 }
  0x2c   : > { %v552_v24 = vor.u32 %v551_v10, %v547_v7  ;;  %v370_v29 = vrot.slane %v368_v12, 4  ;;  %v366_v31 = vsel %vm6986_vm2, %v361_v16, %v365_v55  ;;  %v387_v43 = vshll.u32 %v7072_v8, 16  ;;  %v7124_v16 = vld [vmem:[%s6955_s25 + $0x38] sm:$0x1] }
  0x2d   : > { %6293 = vmatmul.mubr.bf16.vlgmr.msra.gmra.mxu0 %v5443_v35  ;;  %6309 = vmatmul.mubr.bf16.vlgmr.msra.gmra.mxu1 %v5451_v1  ;;  %v373_v33 = vrot.slane %v371_v17, 5  ;;  %v379_v34 = vrot.slane %v377_v18, 5  ;;  %v381_v35 = vshrl.u32 %v7069_v0, 16  ;;  %v5444_v38 = vcombine.low %v356_v15, %v366_v31  ;;  %v7128_v18 = vld [vmem:[%s6955_s25 + $0x90] sm:$0xf] }
  0x2e   : > { %6325 = vmatpush3.bf16.msra.mxu1 %v6757_v41  ;;  %6373 = vmatpush3.bf16.msra.mxu0 %v6758_v42  ;;  %v548_v41 = vsel %vm6986_vm2, %v543_v23, %v547_v7  ;;  %v553_v42 = vrot.slane %v552_v24, 4  ;;  %v560_v46 = vshrl.u32 %v7076_v13, 16  ;;  %v563_v47 = vshll.u32 %v7076_v13, 16  ;;  %v7134_v31 = vld [vmem:[%s6955_s25 + $0x94] sm:$0xf] }
  0x2f   : > { %6326 = vmatprep.subr.bf16.mxu1 %v6759_v52  ;;  %6374 = vmatprep.subr.bf16.mxu0 %v6760_v59  ;;  %v374_v44 = vor.u32 %v373_v33, %v370_v29  ;;  %v383_v45 = vrot.slane %v381_v35, 4  ;;  %v389_v49 = vrot.slane %v387_v43, 5  ;;  %v569_v50 = vshll.u32 %v7083_v22, 16 }
  0x30   : > { %v558_v48 = vsel %vm6986_vm2, %v553_v42, %v557_v28  ;;  %v573_v51 = vshrl.u32 %v7083_v22, 16  ;;  %6296 = vmatprep.mubr.bf16.mxu0 %v5444_v38  ;;  %v562_v58 = vrot.slane %v560_v46, 4  ;;  %v565_v61 = vrot.slane %v563_v47, 5  ;;  %v6766_v38 = vld [vmem:[%s9594_s1 + $0x98] sm:$0xff]   ;;  %v6767_v46 = vld [vmem:[%s9594_s1 + $0x10] sm:$0xff]  }
  0x31   : > { %v5452_v54 = vcombine.low %v548_v41, %v558_v48  ;;  %v375_v55 = vrot.slane %v374_v44, 4  ;;  %v384_v56 = vor.u32 %v383_v45, %v379_v34  ;;  %v571_v63 = vrot.slane %v569_v50, 5  ;;  %v7144_v44 = vld [vmem:[%s6955_s25 + $0x98] sm:$0x1] }
  0x32   : > { %6327 = vmatpush3.bf16.msra.mxu1 %v6759_v52  ;;  %6375 = vmatpush3.bf16.msra.mxu0 %v6760_v59  ;;  %v6763_v52 = vld [vmem:[%s9594_s1 + $0x20] sm:$0xff]   ;;  %v575_v1 = vrot.slane %v573_v51, 4  ;;  %v579_v2 = vshll.u32 %v7092_v36, 16  ;;  %v392_v9 = vshrl.u32 %v7107_v53, 16  ;;  %v395_v10 = vshll.u32 %v7107_v53, 16 }
  0x33   : > { %6328 = vmatprep.subr.bf16.mxu1 %v6761_v30  ;;  %v6764_v59 = vld [vmem:[%s9594_s1 + $0xa0] sm:$0xff]   ;;  %6376 = vmatprep.subr.bf16.mxu0 %v6762_v37  ;;  %v380_v3 = vsel %vm6986_vm2, %v375_v55, %v379_v34  ;;  %v385_v7 = vrot.slane %v384_v56, 4  ;;  %v566_v11 = vor.u32 %v565_v61, %v562_v58  ;;  %v401_v17 = vshll.u32 %v7116_v60, 16  ;;  %v7157_v51 = vld [vmem:[%s6955_s25 + $0x3c] sm:$0xf]  ;;  %v6768_v55 = vld [vmem:[%s9594_s1 + $0x90] sm:$0xff]  }
  0x34   : > { %6312 = vmatprep.mubr.bf16.mxu1 %v5452_v54  ;;  %v576_v12 = vor.u32 %v575_v1, %v571_v63  ;;  %v581_v15 = vrot.slane %v579_v2, 5  ;;  %v394_v24 = vrot.slane %v392_v9, 4  ;;  %v397_v28 = vrot.slane %v395_v10, 5  ;;  %v7160_v54 = vld [vmem:[%s6955_s25 + $0x40] sm:$0xf] }
  0x35   : > { %v390_v23 = vsel %vm6986_vm2, %v385_v7, %v389_v49  ;;  %v405_v29 = vshrl.u32 %v7116_v60, 16  ;;  %v567_v34 = vrot.slane %v566_v11, 4  ;;  %v411_v43 = vshll.u32 %v7124_v16, 16  ;;  %v7167_v7 = vld [vmem:[%s6955_s25 + $0x44] sm:$0x1] }
  0x36   : > { %6329 = vmatpush3.bf16.msra.mxu1 %v6761_v30  ;;  %6377 = vmatpush3.bf16.msra.mxu0 %v6762_v37  ;;  %v6765_v30 = vld [vmem:[%s9594_s1 + $0x18] sm:$0xff]   ;;  %v5445_v33 = vcombine.low %v380_v3, %v390_v23  ;;  %v577_v35 = vrot.slane %v576_v12, 4  ;;  %v403_v37 = vrot.slane %v401_v17, 5  ;;  %v398_v41 = vor.u32 %v397_v28, %v394_v24  ;;  %v7179_v28 = vld [vmem:[%s6955_s25 + $0xa0] sm:$0xf] }
  0x37   : > { %6330 = vmatprep.subr.bf16.mxu1 %v6763_v52  ;;  %6378 = vmatprep.subr.bf16.mxu0 %v6764_v59  ;;  %v407_v42 = vrot.slane %v405_v29, 4  ;;  %v584_v45 = vshrl.u32 %v7128_v18, 16  ;;  %v572_v47 = vsel %vm6986_vm2, %v567_v34, %v571_v63  ;;  %v587_v49 = vshll.u32 %v7128_v18, 16  ;;  %v7170_v9 = vld [vmem:[%s6955_s25 + $0x9c] sm:$0xf]  ;;  %v6769_v29 = vld [vmem:[%s9594_s1 + $0x8] sm:$0xff]  }
  0x38   : > { %6297 = vmatmul.mubr.bf16.gmra.mxu0 %v5445_v33  ;;  %v582_v48 = vsel %vm6986_vm2, %v577_v35, %v581_v15  ;;  %v593_v50 = vshll.u32 %v7134_v31, 16  ;;  %v399_v58 = vrot.slane %v398_v41, 4  ;;  %v413_v63 = vrot.slane %v411_v43, 5  ;;  %v6770_v41 = vld [vmem:[%s9594_s1 + $0x88] sm:$0xff]  }
  0x39   : > { %v5453_v56 = vcombine.low %v572_v47, %v582_v48  ;;  %v408_v61 = vor.u32 %v407_v42, %v403_v37  ;;  %v589_v1 = vrot.slane %v587_v49, 5  ;;  %v597_v3 = vshrl.u32 %v7134_v31, 16 }
  0x3a   : > { %6331 = vmatpush3.bf16.msra.mxu1 %v6763_v52  ;;  %6379 = vmatpush3.bf16.msra.mxu0 %v6764_v59  ;;  %v586_v52 = vrot.slane %v584_v45, 4  ;;  %v595_v2 = vrot.slane %v593_v50, 5  ;;  %v404_v10 = vsel %vm6986_vm2, %v399_v58, %v403_v37  ;;  %v603_v11 = vshll.u32 %v7144_v44, 16 }
  0x3b   : > { %6332 = vmatprep.subr.bf16.mxu1 %v6765_v30  ;;  %6380 = vmatprep.subr.bf16.mxu0 %v6766_v38  ;;  %v409_v59 = vrot.slane %v408_v61, 4  ;;  %v416_v12 = vshrl.u32 %v7157_v51, 16  ;;  %v599_v17 = vrot.slane %v597_v3, 4  ;;  %v419_v23 = vshll.u32 %v7157_v51, 16  ;;  %v7195_v61 = vld [vmem:[%s6955_s25 + $0xa4] sm:$0x1] }
  0x3c   : > { %6313 = vmatmul.mubr.bf16.gmra.mxu1 %v5453_v56  ;;  %v590_v15 = vor.u32 %v589_v1, %v586_v52  ;;  %v425_v24 = vshll.u32 %v7160_v54, 16  ;;  %v605_v34 = vrot.slane %v603_v11, 5  ;;  %v429_v37 = vshrl.u32 %v7160_v54, 16 }
  0x3d   : > { %v414_v33 = vsel %vm6986_vm2, %v409_v59, %v413_v63  ;;  %v418_v35 = vrot.slane %v416_v12, 4  ;;  %v600_v43 = vor.u32 %v599_v17, %v595_v2  ;;  %v421_v45 = vrot.slane %v419_v23, 5  ;;  %v7200_v59 = vld [vmem:[%s6955_s25 + $0x48] sm:$0xf]  ;;  %v7209_v17 = vld [vmem:[%s6955_s25 + $0x4c] sm:$0xf] }
  0x3e   : > { %6333 = vmatpush3.bf16.msra.mxu1 %v6765_v30  ;;  %6381 = vmatpush3.bf16.msra.mxu0 %v6766_v38  ;;  %v5446_v42 = vcombine.low %v404_v10, %v414_v33  ;;  %v591_v30 = vrot.slane %v590_v15, 4  ;;  %v427_v47 = vrot.slane %v425_v24, 5  ;;  %v431_v48 = vrot.slane %v429_v37, 4 }
  0x3f   : > { %6334 = vmatprep.subr.bf16.mxu1 %v6767_v46  ;;  %6382 = vmatprep.subr.bf16.mxu0 %v6768_v55  ;;  %v435_v49 = vshll.u32 %v7167_v7, 16  ;;  %v608_v50 = vshrl.u32 %v7170_v9, 16  ;;  %v601_v56 = vrot.slane %v600_v43, 4  ;;  %v422_v58 = vor.u32 %v421_v45, %v418_v35 }
  0x40   : > { %6300 = vmatprep.mubr.bf16.mxu0 %v5446_v42  ;;  %v596_v38 = vsel %vm6986_vm2, %v591_v30, %v595_v2  ;;  %v611_v63 = vshll.u32 %v7170_v9, 16  ;;  %v432_v52 = vor.u32 %v431_v48, %v427_v47  ;;  %v617_v10 = vshll.u32 %v7179_v28, 16  ;;  %v6771_v2 = vld [vmem:[%s9594_s1] sm:$0xff]   ;;  %v7218_v30 = vld [vmem:[%s6955_s25 + $0x50] sm:$0x1] }
  0x41   : > { %v437_v1 = vrot.slane %v435_v49, 5  ;;  %v610_v3 = vrot.slane %v608_v50, 4  ;;  %v606_v11 = vsel %vm6986_vm2, %v601_v56, %v605_v34  ;;  %v423_v12 = vrot.slane %v422_v58, 4 }
  0x42   : > { %6335 = vmatpush3.bf16.msra.mxu1 %v6767_v46  ;;  %6383 = vmatpush3.bf16.msra.mxu0 %v6768_v55  ;;  %v613_v15 = vrot.slane %v611_v63, 5  ;;  %v621_v46 = vshrl.u32 %v7179_v28, 16  ;;  %v6772_v55 = vld [vmem:[%s9594_s1 + $0x80] sm:$0xff]   ;;  %v5454_v23 = vcombine.low %v596_v38, %v606_v11  ;;  %v433_v24 = vrot.slane %v432_v52, 4  ;;  %v7226_v38 = vld [vmem:[%s6955_s25 + $0xa8] sm:$0xf] }
  0x43   : > { %6336 = vmatprep.subr.bf16.mxu1 %v6769_v29  ;;  %6384 = vmatprep.subr.bf16.mxu0 %v6770_v41  ;;  %v619_v33 = vrot.slane %v617_v10, 5  ;;  %v627_v35 = vshll.u32 %v7195_v61, 16  ;;  %v428_v34 = vsel %vm6986_vm2, %v423_v12, %v427_v47  ;;  %v440_v43 = vshrl.u32 %v7200_v59, 16  ;;  %9623 = vst [vmem:[#allocation2_spill] sm:$0xff] %v7226_v38  ;;  %v7231_v47 = vld [vmem:[%s9594_s1 + $0xf8] sm:$0xff]  }
  0x44   : > { %v614_v37 = vor.u32 %v613_v15, %v610_v3  ;;  %v623_v42 = vrot.slane %v621_v46, 4  ;;  %6316 = vmatprep.mubr.bf16.mxu1 %v5454_v23  ;;  %v438_v45 = vsel %vm6986_vm2, %v433_v24, %v437_v1  ;;  %v443_v49 = vshll.u32 %v7200_v59, 16  ;;  %v7234_v52 = vld [vmem:[%s6955_s25 + $0xac] sm:$0xf]  ;;  %v7239_v1 = vld [vmem:[%s9594_s1 + $0x138] sm:$0xff]  }
  0x45   : > { %v629_v48 = vrot.slane %v627_v35, 5  ;;  %v449_v50 = vshll.u32 %v7209_v17, 16  ;;  %v442_v63 = vrot.slane %v440_v43, 4  ;;  %v453_v10 = vshrl.u32 %v7209_v17, 16  ;;  %v7244_v12 = vld [vmem:[%s6955_s25 + $0xb0] sm:$0x1] }
  0x46   : > { %6337 = vmatpush3.bf16.msra.mxu1 %v6769_v29  ;;  %6385 = vmatpush3.bf16.msra.mxu0 %v6770_v41  ;;  %v5447_v29 = vcombine.low %v428_v34, %v438_v45  ;;  %v615_v56 = vrot.slane %v614_v37, 4  ;;  %v624_v58 = vor.u32 %v623_v42, %v619_v33  ;;  %v445_v41 = vrot.slane %v443_v49, 5  ;;  %9624 = vst [vmem:[#allocation3_spill] sm:$0xff] %v7244_v12  ;;  %v7247_v15 = vld [vmem:[%s6955_s25 + $0x54] sm:$0xf] }
  0x47   : > { %6338 = vmatprep.subr.bf16.mxu1 %v6771_v2  ;;  %6386 = vmatprep.subr.bf16.mxu0 %v6772_v55  ;;  %v451_v3 = vrot.slane %v449_v50, 5  ;;  %v459_v11 = vshll.u32 %v7218_v30, 16  ;;  %v632_v24 = vshrl.u32 %v7226_v38, 16  ;;  %v635_v35 = vshll.u32 %v7226_v38, 16  ;;  %v7254_v34 = vld [vmem:[%s6955_s25 + $0x58] sm:$0xf] }
  0x48   : > { %6301 = vmatmul.mubr.bf16.gmra.mxu0 %v5447_v29  ;;  %v620_v46 = vsel %vm6986_vm2, %v615_v56, %v619_v33  ;;  %v625_v23 = vrot.slane %v624_v58, 4  ;;  %v446_v37 = vor.u32 %v445_v41, %v442_v63  ;;  %v455_v42 = vrot.slane %v453_v10, 4 }
  0x49   : > { %v461_v43 = vrot.slane %v459_v11, 5  ;;  %v641_v45 = vshll.u32 %v7234_v52, 16  ;;  %v634_v49 = vrot.slane %v632_v24, 4  ;;  %v637_v50 = vrot.slane %v635_v35, 5 }
  0x4a   : > { %6339 = vmatpush3.bf16.msra.mxu1 %v6771_v2  ;;  %6387 = vmatpush3.bf16.msra.mxu0 %v6772_v55  ;;  %v630_v33 = vsel %vm6986_vm2, %v625_v23, %v629_v48  ;;  %v645_v29 = vshrl.u32 %v7234_v52, 16  ;;  %v447_v56 = vrot.slane %v446_v37, 4  ;;  %v456_v58 = vor.u32 %v455_v42, %v451_v3  ;;  %v7263_v55 = vld [vmem:[%s6955_s25 + $0x5c] sm:$0x1]  ;;  %v7268_v48 = vld [vmem:[%s6955_s25 + $0xb4] sm:$0xf] }
  0x4b   : > { %6420 = vmatprep.subr.bf16.mxu1 %v7231_v47  ;;  %6468 = vmatprep.subr.bf16.mxu0 %v7239_v1  ;;  %v5455_v2 = vcombine.low %v620_v46, %v630_v33  ;;  %v643_v63 = vrot.slane %v641_v45, 5  ;;  %v638_v41 = vor.u32 %v637_v50, %v634_v49  ;;  %v651_v11 = vshll.u32 %v7244_v12, 16  ;;  %9625 = vst [vmem:[#allocation4_spill] sm:$0xff] %v7268_v48  ;;  %v7275_v37 = vld [vmem:[%s6955_s25 + $0xb8] sm:$0xf] }
  0x4c   : > { %v647_v10 = vrot.slane %v645_v29, 4  ;;  %v464_v21 = vshrl.u32 %v7247_v15, 16  ;;  %v452_v23 = vsel %vm6986_vm2, %v447_v56, %v451_v3  ;;  %v457_v24 = vrot.slane %v456_v58, 4  ;;  %9626 = vst [vmem:[#allocation5_spill] sm:$0xff] %v7275_v37  ;;  %v7281_v3 = vld [vmem:[%s6955_s25 + $0xbc] sm:$0x1] }
  0x4d   : > { %6317 = vmatmul.mubr.bf16.gmra.mxu1 %v5455_v2  ;;  %v467_v46 = vshll.u32 %v7247_v15, 16  ;;  %v473_v35 = vshll.u32 %v7254_v34, 16  ;;  %v639_v42 = vrot.slane %v638_v41, 4  ;;  %v653_v33 = vrot.slane %v651_v11, 5  ;;  %9627 = vst [vmem:[#allocation6_spill] sm:$0xff] %v7281_v3 }
  0x4e   : > { %v648_v45 = vor.u32 %v647_v10, %v643_v63  ;;  %v466_v49 = vrot.slane %v464_v21, 4  ;;  %v462_v50 = vsel %vm6986_vm2, %v457_v24, %v461_v43  ;;  %v477_v62 = vshrl.u32 %v7254_v34, 16  ;;  %v1273_v10 = vld [vmem:[%s6955_s25] sm:$0xe] }
  0x4f   : > { %v469_v29 = vrot.slane %v467_v46, 5  ;;  %v475_v2 = vrot.slane %v473_v35, 5  ;;  %v5448_v56 = vcombine.low %v452_v23, %v462_v50  ;;  %v644_v58 = vsel %vm6986_vm2, %v639_v42, %v643_v63 }
  0x50   : > { %v649_v20 = vrot.slane %v648_v45, 4  ;;  %v483_v41 = vshll.u32 %v7263_v55, 16  ;;  %v479_v21 = vrot.slane %v477_v62, 4  ;;  %v656_v12 = vshrl.u32 %v7268_v48, 16 }
  0x51   : > { %v470_v11 = vor.u32 %v469_v29, %v466_v49  ;;  %v659_v43 = vshll.u32 %v7268_v48, 16  ;;  %6304 = vmatprep.mubr.bf16.mxu0 %v5448_v56  ;;  %v665_v46 = vshll.u32 %v7275_v37, 16  ;;  %v669_v63 = vshrl.u32 %v7275_v37, 16  ;;  %v1274_v49 = vld [vmem:[%s6955_s25 + $0xc] sm:$0xe] }
  0x52   : > { %v654_v24 = vsel %vm6986_vm2, %v649_v20, %v653_v33  ;;  %v485_v23 = vrot.slane %v483_v41, 5  ;;  %v480_v45 = vor.u32 %v479_v21, %v475_v2  ;;  %v658_v50 = vrot.slane %v656_v12, 4  ;;  %v1275_v20 = vld [vmem:[%s6955_s25 + $0x18] sm:$0xe] }
  0x53   : > { %v5456_v35 = vcombine.low %v644_v58, %v654_v24  ;;  %v471_v42 = vrot.slane %v470_v11, 4  ;;  %v661_v62 = vrot.slane %v659_v43, 5  ;;  %v667_v29 = vrot.slane %v665_v46, 5 }
  0x54   : > { %v671_v38 = vrot.slane %v669_v63, 4  ;;  %v675_v48 = vshll.u32 %v7281_v3, 16  ;;  %v481_v58 = vrot.slane %v480_v45, 4  ;;  %v5490_v41 = vrot.slane %v1273_v10, 9 }
  0x55   : > { %6320 = vmatprep.mubr.bf16.mxu1 %v5456_v35  ;;  %v476_v33 = vsel %vm6986_vm2, %v471_v42, %v475_v2  ;;  %v1326_v12 = vrot.slane %v6964_v5, 5  ;;  %v662_v11 = vor.u32 %v661_v62, %v658_v50  ;;  %v5491_v24 = vrot.slane %v1274_v49, 9 }
  0x56   : > { %v672_v21 = vor.u32 %v671_v38, %v667_v29  ;;  %v677_v43 = vrot.slane %v675_v48, 5  ;;  %v486_v46 = vsel %vm6986_vm2, %v481_v58, %v485_v23  ;;  %v1333_v35 = vrot.slane %v6991_v32, 5 }
  0x57   : > { %v1327_v63 = vsel %vm7297_vm5, %v5490_v41, %v1326_v12  ;;  %v1328_v3 = vrot.slane %v1326_v12, 4  ;;  %v5449_v37 = vcombine.low %v476_v33, %v486_v46  ;;  %v663_v2 = vrot.slane %v662_v11, 4  ;;  %v1277_v12 = vld [vmem:[%s6955_s25 + $0x30] sm:$0xe]  ;;  %v1279_v46 = vld [vmem:[%s6955_s25 + $0x48] sm:$0xe] }
  0x58   : > { %v673_v42 = vrot.slane %v672_v21, 4  ;;  %v5466_v10 = vcombine.low %v6961_v4, %v6964_v5  ;;  %v9630_v38 = vrot.slane %v6967_v6, 5  ;;  %v1335_v45 = vrot.slane %v1333_v35, 4 }
  0x59   : > { %v5492_v23 = vrot.slane %v1275_v20, 9  ;;  %6305 = vmatmul.mubr.bf16.gmra.mxu0 %v5449_v37  ;;  %v668_v50 = vsel %vm6986_vm2, %v663_v2, %v667_v29  ;;  %v1340_v33 = vrot.slane %v7028_v19, 5  ;;  %v1334_v4 = vsel %vm7297_vm5, %v5491_v24, %v1333_v35  ;;  %v1278_v24 = vld [vmem:[%s6955_s25 + $0x3c] sm:$0xe] }
  0x5a   : > { %v1330_v48 = vsel %vm7297_vm5, %v1328_v3, %v9630_v38  ;;  %v678_v49 = vsel %vm6986_vm2, %v673_v42, %v677_v43  ;;  %v9631_v5 = vrot.slane %v6997_v40, 5  ;;  %v1343_v37 = vrot.slane %v7033_v25, 5  ;;  %v1276_v3 = vld [vmem:[%s6955_s25 + $0x24] sm:$0xe]  ;;  %v6780_v25 = vld [vmem:[%s9594_s1 + $0x130] sm:$0xff]  }
  0x5b   : > { %v5506_v62 = vcombine.low %v1327_v63, %v1330_v48  ;;  %v5457_v58 = vcombine.low %v668_v50, %v678_v49  ;;  %v1341_v29 = vsel %vm7297_vm5, %v5492_v23, %v1340_v33  ;;  %v1342_v20 = vrot.slane %v1340_v33, 4  ;;  %v6779_v23 = vld [vmem:[%s9594_s1 + $0xf0] sm:$0xff]  }
  0x5c   : > { %v1337_v6 = vsel %vm7297_vm5, %v1335_v45, %v9631_v5  ;;  %v1347_v41 = vrot.slane %v7069_v0, 5  ;;  %v5493_v21 = vrot.slane %v1276_v3, 9  ;;  %v1354_v43 = vrot.slane %v7116_v60, 5  ;;  %v7372_v3 = vld [vmem:[%s6955_s25 + $0x68] sm:$0x1] }
  0x5d   : > { %6388 = vmatprep.mubr.bf16.mxu0 %v5506_v62  ;;  %6321 = vmatmul.mubr.bf16.gmra.mxu1 %v5457_v58  ;;  %v5507_v11 = vcombine.low %v1334_v4, %v1337_v6  ;;  %v1344_v40 = vsel %vm7297_vm5, %v1342_v20, %v1343_v37  ;;  %v1350_v2 = vrot.slane %v7072_v8, 5  ;;  %v5494_v42 = vrot.slane %v1277_v12, 9  ;;  %v1280_v37 = vld [vmem:[%s6955_s25 + $0x54] sm:$0xe]  ;;  %v7396_v12 = vld [vmem:[%s6955_s25 + $0x60] sm:$0xe] }
  0x5e   : > { %6340 = vmatprep.mubr.bf16.mxu1 %v5466_v10  ;;  %v5508_v63 = vcombine.low %v1341_v29, %v1344_v40  ;;  %v1349_v35 = vrot.slane %v1347_v41, 4  ;;  %v1356_v38 = vrot.slane %v1354_v43, 4  ;;  %v1357_v10 = vrot.slane %v7124_v16, 5 }
  0x5f   : > { %v1361_v48 = vrot.slane %v7160_v54, 5  ;;  %v5468_v45 = vcombine.low %v7020_v14, %v7028_v19  ;;  %v1368_v50 = vrot.slane %v7209_v17, 5  ;;  %v5495_v49 = vrot.slane %v1278_v24, 9  ;;  %v6788_v24 = vld [vmem:[%s9594_s1 + $0x120] sm:$0xff]  }
  0x60   : > { %v1364_v8 = vrot.slane %v7167_v7, 5  ;;  %v5496_v33 = vrot.slane %v1279_v46, 9  ;;  %v1348_v14 = vsel %vm7297_vm5, %v5493_v21, %v1347_v41  ;;  %v1351_v19 = vsel %vm7297_vm5, %v1349_v35, %v1350_v2  ;;  %v7408_v46 = vld [vmem:[%s6955_s25 + $0x78] sm:$0xe]  ;;  %v6787_v2 = vld [vmem:[%s9594_s1 + $0xe0] sm:$0xff]  }
  0x61   : > { %6389 = vmatmul.mubr.bf16.vlgmr.msra.gmra.mxu0 %v5507_v11  ;;  %v1363_v62 = vrot.slane %v1361_v48, 4  ;;  %v1370_v16 = vrot.slane %v1368_v50, 4  ;;  %v1371_v58 = vrot.slane %v7218_v30, 5  ;;  %v1355_v4 = vsel %vm7297_vm5, %v5494_v42, %v1354_v43  ;;  %v7399_v11 = vld [vmem:[%s6955_s25 + $0x6c] sm:$0xe] }
  0x62   : > { %6469 = vmatpush3.bf16.msra.mxu0 %v7239_v1  ;;  %6392 = vmatprep.mubr.bf16.mxu0 %v5508_v63  ;;  %v1358_v7 = vsel %vm7297_vm5, %v1356_v38, %v1357_v10  ;;  %v6784_v1 = vld [vmem:[%s9594_s1 + $0x128] sm:$0xff]   ;;  %v1375_v5 = vrot.slane %v7254_v34, 5  ;;  %v9632_v6 = vcombine.low %v6982_v26, %v6991_v32  ;;  %v5469_v30 = vcombine.low %v7060_v57, %v7069_v0  ;;  %v1284_v63 = vld [vmem:[%s6955_s25 + $0x84] sm:$0xe]  ;;  %v1285_v42 = vld [vmem:[%s6955_s25 + $0x90] sm:$0xe] }
  0x63   : > { %6470 = vmatprep.subr.bf16.mxu0 %v6780_v25  ;;  %v1385_v29 = vrot.slane %v7372_v3, 5  ;;  %v5509_v20 = vcombine.low %v1348_v14, %v1351_v19  ;;  %v7378_v41 = vsel %vm7297_vm5, %v5495_v49, %v1361_v48  ;;  %v7382_v26 = vsel %vm7297_vm5, %v1363_v62, %v1364_v8  ;;  %v6783_v32 = vld [vmem:[%s9594_s1 + $0xe8] sm:$0xff]   ;;  %v7427_v48 = vld [vmem:[%s6955_s25 + $0x64] sm:$0xf]  ;;  %v1286_v49 = vld [vmem:[%s6955_s25 + $0x9c] sm:$0xe] }
  0x64   : > { %v5510_v57 = vcombine.low %v1355_v4, %v1358_v7  ;;  %v7389_v0 = vsel %vm7297_vm5, %v5496_v33, %v1368_v50  ;;  %v5470_v40 = vcombine.low %v7107_v53, %v7116_v60  ;;  %v5497_v21 = vrot.slane %v1280_v37, 9  ;;  %v7449_v4 = vld [vmem:[%s6955_s25 + $0x74] sm:$0x1] }
  0x65   : > { %6341 = vmatmul.mubr.bf16.vlgmr.msra.gmra.mxu1 %v9632_v6  ;;  %v1378_v43 = vrot.slane %v7263_v55, 5  ;;  %v5471_v35 = vcombine.low %v7157_v51, %v7160_v54  ;;  %v5511_v53 = vcombine.low %v7378_v41, %v7382_v26  ;;  %v5472_v60 = vcombine.low %v7200_v59, %v7209_v17  ;;  %v6873_v54 = vld [vmem:[%s6955_s25 + $0x80] sm:$0x1] }
  0x66   : > { %6421 = vmatpush3.bf16.msra.mxu1 %v7231_v47  ;;  %6344 = vmatprep.mubr.bf16.mxu1 %v5468_v45  ;;  %v7393_v47 = vsel %vm7297_vm5, %v1370_v16, %v1371_v58  ;;  %v5473_v55 = vcombine.low %v7247_v15, %v7254_v34  ;;  %v5498_v10 = vrot.slane %v7396_v12, 9  ;;  %v1382_v45 = vrot.slane %v7427_v48, 5  ;;  %v7445_v16 = vld [vmem:[%s6955_s25 + $0x70] sm:$0xf]  ;;  %v6874_v17 = vld [vmem:[%s6955_s25 + $0x60] sm:$0xf] }
  0x67   : > { %6422 = vmatprep.subr.bf16.mxu1 %v6779_v23  ;;  %6471 = vmatpush3.bf16.msra.mxu0 %v6780_v25  ;;  %v1377_v25 = vrot.slane %v1375_v5, 4  ;;  %v5512_v38 = vcombine.low %v7389_v0, %v7393_v47  ;;  %v5499_v62 = vrot.slane %v7399_v11, 9  ;;  %v1403_v8 = vrot.slane %v7083_v22, 5  ;;  %v1287_v0 = vld [vmem:[%s6955_s25 + $0xa8] sm:$0xe]  ;;  %v7629_v15 = vld [vmem:[%s9594_s1 + $0x1b8] sm:$0xff]  }
  0x68   : > { %6472 = vmatprep.subr.bf16.mxu0 %v6784_v1  ;;  %v1406_v33 = vrot.slane %v7092_v36, 5  ;;  %v7438_v14 = vsel %vm7297_vm5, %v5497_v21, %v1375_v5  ;;  %v1389_v58 = vrot.slane %v7445_v16, 5  ;;  %v1392_v7 = vrot.slane %v7449_v4, 5  ;;  %v6791_v36 = vld [vmem:[%s9594_s1 + $0xd8] sm:$0xff]  }
  0x69   : > { %6393 = vmatmul.mubr.bf16.gmra.mxu0 %v5509_v20  ;;  %v7442_v19 = vsel %vm7297_vm5, %v1377_v25, %v1378_v43  ;;  %v5500_v5 = vrot.slane %v7408_v46, 9  ;;  %v1405_v37 = vrot.slane %v1403_v8, 4  ;;  %v5502_v41 = vrot.slane %v1285_v42, 9  ;;  %v5586_v42 = vld [vmem:[%s6955_s25 + $0xc] sm:$0xf] }
  0x6a   : > { %6423 = vmatpush3.bf16.msra.mxu1 %v6779_v23  ;;  %6396 = vmatprep.mubr.bf16.mxu0 %v5510_v57  ;;  %v5501_v23 = vrot.slane %v1284_v63, 9  ;;  %v1410_v26 = vrot.slane %v7134_v31, 5  ;;  %v1413_v57 = vrot.slane %v7144_v44, 5  ;;  %v1396_v47 = vrot.slane %v7042_v39, 5 }
  0x6b   : > { %6424 = vmatprep.subr.bf16.mxu1 %v6783_v32  ;;  %6473 = vmatpush3.bf16.msra.mxu0 %v6784_v1  ;;  %v6792_v1 = vld [vmem:[%s9594_s1 + $0x118] sm:$0xff]   ;;  %v7473_v21 = vsel %vm7297_vm5, %v1405_v37, %v1406_v33  ;;  %v1417_v63 = vrot.slane %v7179_v28, 5  ;;  %v5504_v33 = vrot.slane %v1287_v0, 9  ;;  %v1424_v37 = vrot.slane %v7234_v52, 5  ;;  %v6795_v0 = vld [vmem:[%s9594_s1 + $0xd0] sm:$0xff]  }
  0x6c   : > { %6474 = vmatprep.subr.bf16.mxu0 %v6788_v24  ;;  %v7461_v6 = vsel %vm7297_vm5, %v5501_v23, %v1403_v8  ;;  %v7481_v44 = vsel %vm7297_vm5, %v5502_v41, %v1410_v26  ;;  %v1412_v43 = vrot.slane %v1410_v26, 4  ;;  %v6796_v23 = vld [vmem:[%s9594_s1 + $0x110] sm:$0xff]   ;;  %v1420_v8 = vrot.slane %v7195_v61, 5  ;;  %v9634_v61 = vld [vmem:[#allocation3_spill] sm:$0xff] }
  0x6d   : > { %6345 = vmatmul.mubr.bf16.gmra.mxu1 %v5469_v30  ;;  %v1384_v30 = vrot.slane %v1382_v45, 4  ;;  %v1419_v20 = vrot.slane %v1417_v63, 4  ;;  %v1427_v50 = vrot.slane %v9634_v61, 5  ;;  %v1383_v61 = vsel %vm7297_vm5, %v5498_v10, %v1382_v45  ;;  %v5589_v45 = vld [vmem:[%s6955_s25 + $0x18] sm:$0xf] }
  0x6e   : > { %6348 = vmatprep.mubr.bf16.mxu1 %v5470_v40  ;;  %6425 = vmatpush3.bf16.msra.mxu1 %v6783_v32  ;;  %v5503_v40 = vrot.slane %v1286_v49, 9  ;;  %v7493_v32 = vld [vmem:[%s6955_s25 + $0x10] sm:$0xf]  ;;  %v7497_v41 = vsel %vm7297_vm5, %v1412_v43, %v1413_v57  ;;  %v1426_v57 = vrot.slane %v1424_v37, 4  ;;  %v2192_v12 = vshrl.u32 %v5586_v42, 16 }
  0x6f   : > { %6426 = vmatprep.subr.bf16.mxu1 %v6787_v2  ;;  %6475 = vmatpush3.bf16.msra.mxu0 %v6788_v24  ;;  %v9633_v24 = vld [vmem:[#allocation2_spill] sm:$0xff]  ;;  %v9636_v43 = vld [vmem:[#allocation4_spill] sm:$0xff]  ;;  %v2195_v10 = vshll.u32 %v5586_v42, 16  ;;  %v1391_v51 = vrot.slane %v1389_v58, 4  ;;  %v2201_v59 = vshll.u32 %v7493_v32, 16  ;;  %v1397_v4 = vsel %vm7297_vm5, %v5500_v5, %v1396_v47 }
  0x70   : > { %6476 = vmatprep.subr.bf16.mxu0 %v6792_v1  ;;  %v7501_v26 = vsel %vm7297_vm5, %v5503_v40, %v1417_v63  ;;  %v9635_v40 = vld [vmem:[#allocation5_spill] sm:$0xff]  ;;  %v7567_v42 = vld [vmem:[%s6955_s25 + $0x14] sm:$0x1]  ;;  %v2194_v63 = vrot.slane %v2192_v12, 4  ;;  %v9638_v5 = vld [vmem:[#allocation6_spill] sm:$0xff] }
  0x71   : > { %6397 = vmatmul.mubr.bf16.gmra.mxu0 %v5511_v53  ;;  %v2197_v49 = vrot.slane %v2195_v10, 5  ;;  %v5592_v53 = vld [vmem:[%s6955_s25 + $0x24] sm:$0xf]  ;;  %v1393_v11 = vsel %vm7297_vm5, %v1391_v51, %v1392_v7 }
  0x72   : > { %6427 = vmatpush3.bf16.msra.mxu1 %v6787_v2  ;;  %6400 = vmatprep.mubr.bf16.mxu0 %v5512_v38  ;;  %v7511_v2 = vsel %vm7297_vm5, %v5504_v33, %v1424_v37  ;;  %v5513_v38 = vcombine.low %v7438_v14, %v7442_v19  ;;  %v1386_v33 = vsel %vm7297_vm5, %v1384_v30, %v1385_v29  ;;  %v6800_v14 = vld [vmem:[%s9594_s1 + $0x108] sm:$0xff]   ;;  %v6804_v30 = vld [vmem:[%s9594_s1 + $0x100] sm:$0xff]   ;;  %v7586_v19 = vrot.slane %v2201_v59, 5 }
  0x73   : > { %6428 = vmatprep.subr.bf16.mxu1 %v6791_v36  ;;  %6477 = vmatpush3.bf16.msra.mxu0 %v6792_v1  ;;  %v7529_v37 = vsel %vm7297_vm5, %v1419_v20, %v1420_v8  ;;  %v7541_v29 = vsel %vm7297_vm5, %v1426_v57, %v1427_v50  ;;  %v6799_v50 = vld [vmem:[%s9594_s1 + $0xc8] sm:$0xff]   ;;  %v7556_v1 = vld [vmem:[%s6955_s25 + $0xb4] sm:$0xe]  ;;  %v5514_v20 = vcombine.low %v1383_v61, %v1386_v33  ;;  %v2205_v8 = vshrl.u32 %v7493_v32, 16  ;;  %v7584_v61 = vld [vmem:[%s6955_s25 + $0x1c] sm:$0xf] }
  0x74   : > { %6478 = vmatprep.subr.bf16.mxu0 %v6796_v23  ;;  %v7571_v57 = vld [vmem:[%s6955_s25 + $0x6c] sm:$0xf]  ;;  %v2216_v33 = vshrl.u32 %v5589_v45, 16  ;;  %v2225_v51 = vshll.u32 %v7584_v61, 16  ;;  %v2229_v39 = vshrl.u32 %v7584_v61, 16  ;;  %v2240_v59 = vshrl.u32 %v5592_v53, 16 }
  0x75   : > { %6349 = vmatmul.mubr.bf16.gmra.mxu1 %v5471_v35  ;;  %v1399_v35 = vrot.slane %v6873_v54, 5  ;;  %v5475_v54 = vcombine.low %v7571_v57, %v7445_v16  ;;  %v2207_v3 = vrot.slane %v2205_v8, 4  ;;  %v2243_v46 = vshll.u32 %v5592_v53, 16  ;;  %v6877_v8 = vld [vmem:[%s6955_s25 + $0x7c] sm:$0xf] }
  0x76   : > { %6352 = vmatprep.mubr.bf16.mxu1 %v5472_v60  ;;  %6429 = vmatpush3.bf16.msra.mxu1 %v6791_v36  ;;  %v5474_v60 = vcombine.low %v6874_v17, %v7427_v48  ;;  %v1398_v36 = vrot.slane %v1396_v47, 4  ;;  %v7581_v48 = vsel %vm7297_vm5, %v5499_v62, %v1389_v58  ;;  %v2219_v17 = vshll.u32 %v5589_v45, 16  ;;  %v6803_v58 = vld [vmem:[%s9594_s1 + $0xc0] sm:$0xff]   ;;  %v7611_v45 = vld [vmem:[%s6955_s25 + $0x28] sm:$0xf] }
  0x77   : > { %6430 = vmatprep.subr.bf16.mxu1 %v6795_v0  ;;  %6479 = vmatpush3.bf16.msra.mxu0 %v6796_v23  ;;  %v9606_v62 = vrot.slane %v9635_v40, 5  ;;  %v7598_v23 = vld [vmem:[%s6955_s25 + $0x20] sm:$0x1]  ;;  %v2218_v12 = vrot.slane %v2216_v33, 4  ;;  %9637 = vst [vmem:[#allocation2_spill] sm:$0xff] %v7611_v45  ;;  %v5515_v34 = vcombine.low %v7581_v48, %v1393_v11  ;;  %v2249_v53 = vshll.u32 %v7611_v45, 16 }
  0x78   : > { %6480 = vmatprep.subr.bf16.mxu0 %v6800_v14  ;;  %v2221_v10 = vrot.slane %v2219_v17, 5  ;;  %v1400_v7 = vsel %vm7297_vm5, %v1398_v36, %v1399_v35  ;;  %v2198_v35 = vor.u32 %v2197_v49, %v2194_v63  ;;  %v7624_v36 = vld [vmem:[%s9594_s1 + $0x178] sm:$0xff]   ;;  %v5595_v63 = vld [vmem:[%s6955_s25 + $0x30] sm:$0xf]  ;;  %v7645_v48 = vld [vmem:[%s6955_s25 + $0x34] sm:$0xf] }
  0x79   : > { %6401 = vmatmul.mubr.bf16.gmra.mxu0 %v5513_v38  ;;  %v2211_v38 = vshll.u32 %v7567_v42, 16  ;;  %v5516_v17 = vcombine.low %v1397_v4, %v1400_v7  ;;  %9640 = vst [vmem:[#allocation5_spill] sm:$0xff] %v7645_v48  ;;  %v7647_v11 = vrot.slane %v2225_v51, 5  ;;  %v2245_v47 = vrot.slane %v2243_v46, 5  ;;  %v7666_v46 = vld [vmem:[%s6955_s25 + $0x40] sm:$0xf] }
  0x7a   : > { %6431 = vmatpush3.bf16.msra.mxu1 %v6795_v0  ;;  %6404 = vmatprep.mubr.bf16.mxu0 %v5514_v20  ;;  %v2208_v20 = vor.u32 %v2207_v3, %v7586_v19  ;;  %v2222_v49 = vor.u32 %v2221_v10, %v2218_v12  ;;  %v6876_v3 = vld [vmem:[%s6955_s25 + $0x78] sm:$0xf]  ;;  %v2231_v12 = vrot.slane %v2229_v39, 4  ;;  %v2242_v10 = vrot.slane %v2240_v59, 4  ;;  %9641 = vst [vmem:[#allocation4_spill] sm:$0xff] %v7666_v46 }
  0x7b   : > { %6432 = vmatprep.subr.bf16.mxu1 %v6799_v50  ;;  %6481 = vmatpush3.bf16.msra.mxu0 %v6800_v14  ;;  %v2235_v14 = vshll.u32 %v7598_v23, 16  ;;  %v5476_v33 = vcombine.low %v6876_v3, %v6877_v8  ;;  %v7638_v25 = vrot.slane %v2211_v38, 5  ;;  %v7650_v0 = vld [vmem:[%s6955_s25 + $0x38] sm:$0x1]  ;;  %v7652_v4 = vrot.slane %v2198_v35, 4 }
  0x7c   : > { %6482 = vmatprep.subr.bf16.mxu0 %v6804_v30  ;;  %v7654_v7 = vrot.slane %v2208_v20, 4  ;;  %v2264_v3 = vshrl.u32 %v5595_v63, 16  ;;  %v5598_v8 = vld [vmem:[%s6955_s25 + $0x3c] sm:$0xf]  ;;  %v7662_v51 = vrot.slane %v2249_v53, 5  ;;  %v2267_v39 = vshll.u32 %v5595_v63, 16 }
  0x7d   : > { %6353 = vmatmul.mubr.bf16.gmra.mxu1 %v5473_v55  ;;  %v1433_v55 = vrot.slane %v9606_v62, 4  ;;  %v7656_v38 = vrot.slane %v2235_v14, 5  ;;  %v2273_v59 = vshll.u32 %v7645_v48, 16  ;;  %v2277_v20 = vshrl.u32 %v7645_v48, 16 }
  0x7e   : > { %6356 = vmatprep.mubr.bf16.mxu1 %v5474_v60  ;;  %6433 = vmatpush3.bf16.msra.mxu1 %v6799_v50  ;;  %v7641_v60 = vld [vmem:[%s6955_s25 + $0x2c] sm:$0x1]  ;;  %v2253_v50 = vshrl.u32 %v7611_v45, 16  ;;  %v2232_v14 = vor.u32 %v2231_v12, %v7647_v11  ;;  %v2266_v53 = vrot.slane %v2264_v3, 4  ;;  %v2269_v63 = vrot.slane %v2267_v39, 5 }
  0x7f   : > { %6434 = vmatprep.subr.bf16.mxu1 %v6803_v58  ;;  %9639 = vst [vmem:[#allocation3_spill] sm:$0xff] %v7641_v60  ;;  %6483 = vmatpush3.bf16.msra.mxu0 %v6804_v30  ;;  %v7660_v30 = vrot.slane %v2222_v49, 4  ;;  %v2288_v49 = vshrl.u32 %v5598_v8, 16  ;;  %v2291_v62 = vshll.u32 %v5598_v8, 16  ;;  %v2279_v48 = vrot.slane %v2277_v20, 4 }
  0x80   : > { %6564 = vmatprep.subr.bf16.mxu0 %v7629_v15  ;;  %v2255_v35 = vrot.slane %v2253_v50, 4  ;;  %v7676_v50 = vrot.slane %v2273_v59, 5  ;;  %v7679_v45 = vld [vmem:[%s6955_s25 + $0x44] sm:$0x1]  ;;  %v2301_v12 = vshrl.u32 %v7666_v46, 16  ;;  %v9642_v16 = vrot.slane %v9635_v40, 5 }
  0x81   : > { %6405 = vmatmul.mubr.bf16.gmra.mxu0 %v5515_v34  ;;  %v2259_v34 = vshll.u32 %v7641_v60, 16  ;;  %v9643_v57 = vrot.slane %v7556_v1, 9  ;;  %v7700_v39 = vld [vmem:[%s6955_s25 + $0x4c] sm:$0xf]  ;;  %v2290_v59 = vrot.slane %v2288_v49, 4  ;;  %v2293_v20 = vrot.slane %v2291_v62, 5 }
  0x82   : > { %6435 = vmatpush3.bf16.msra.mxu1 %v6803_v58  ;;  %6408 = vmatprep.mubr.bf16.mxu0 %v5516_v17  ;;  %v2246_v58 = vor.u32 %v2245_v47, %v2242_v10  ;;  %v2283_v17 = vshll.u32 %v7650_v0, 16  ;;  %v2297_v47 = vshll.u32 %v7666_v46, 16  ;;  %v5601_v10 = vld [vmem:[%s6955_s25 + $0x48] sm:$0xf]  ;;  %v2256_v8 = vor.u32 %v2255_v35, %v7662_v51 }
  0x83   : > { %6516 = vmatprep.subr.bf16.mxu1 %v7624_v36  ;;  %v2303_v1 = vrot.slane %v2301_v12, 4  ;;  %v7704_v46 = vrot.slane %v2232_v14, 4  ;;  %v2204_v62 = vsel %vm6986_vm2, %v7652_v4, %v7586_v19  ;;  %v2214_v35 = vsel %vm6986_vm2, %v7654_v7, %v7638_v25  ;;  %v5604_v4 = vld [vmem:[%s6955_s25 + $0x54] sm:$0xf] }
  0x84   : > { %v7702_v60 = vrot.slane %v2297_v47, 5  ;;  %v2315_v14 = vshll.u32 %v5601_v10, 16  ;;  %v2307_v49 = vshll.u32 %v7679_v45, 16  ;;  %v2325_v19 = vshrl.u32 %v7700_v39, 16 }
  0x85   : > { %6357 = vmatmul.mubr.bf16.gmra.mxu1 %v5475_v54  ;;  %v7690_v54 = vsel %vm7297_vm5, %v9643_v57, %v9642_v16  ;;  %v7706_v16 = vrot.slane %v2246_v58, 4  ;;  %v7708_v57 = vrot.slane %v2259_v34, 5  ;;  %v2321_v58 = vshll.u32 %v7700_v39, 16 }
  0x86   : > { %6360 = vmatprep.mubr.bf16.mxu1 %v5476_v33  ;;  %v9644_v33 = vrot.slane %v9638_v5, 5  ;;  %v2312_v5 = vshrl.u32 %v5601_v10, 16  ;;  %v9646_v34 = vcombine.low %v7481_v44, %v7497_v41  ;;  %v7729_v47 = vrot.slane %v2256_v8, 4  ;;  %v7735_v10 = vld [vmem:[%s6955_s25 + $0x58] sm:$0xf] }
  0x87   : > { %v7731_v12 = vrot.slane %v2283_v17, 5  ;;  %v2294_v25 = vor.u32 %v2293_v20, %v2290_v59  ;;  %v2304_v7 = vor.u32 %v2303_v1, %v7702_v60  ;;  %v9647_v44 = vcombine.low %v7076_v13, %v7083_v22  ;;  %v7741_v41 = vld [vmem:[%s6955_s25 + $0x50] sm:$0x1] }
  0x88   : > { %v7696_v3 = vsel %vm7297_vm5, %v1433_v55, %v9644_v33  ;;  %v9645_v55 = vcombine.low %v7461_v6, %v7473_v21  ;;  %v2270_v6 = vor.u32 %v2269_v63, %v2266_v53  ;;  %v2280_v21 = vor.u32 %v2279_v48, %v7676_v50 }
  0x89   : > { %v2314_v48 = vrot.slane %v2312_v5, 4  ;;  %v2317_v53 = vrot.slane %v2315_v14, 5  ;;  %v7743_v63 = vrot.slane %v2321_v58, 5  ;;  %v2327_v17 = vrot.slane %v2325_v19, 4  ;;  %v5607_v5 = vld [vmem:[%s6955_s25 + $0x60] sm:$0xf] }
  0x8a   : > { %6409 = vmatmul.mubr.bf16.gmra.mxu0 %v9645_v55  ;;  %v9648_v33 = vcombine.low %v7128_v18, %v7134_v31  ;;  %v2336_v8 = vshrl.u32 %v5604_v4, 16  ;;  %v2339_v59 = vshll.u32 %v5604_v4, 16  ;;  %v7748_v20 = vrot.slane %v2270_v6, 4  ;;  %v7765_v31 = vld [vmem:[%s6955_s25 + $0x64] sm:$0xf] }
  0x8b   : > { %6412 = vmatprep.mubr.bf16.mxu0 %v9646_v34  ;;  %v7750_v1 = vrot.slane %v2280_v21, 4  ;;  %v7752_v13 = vrot.slane %v2307_v49, 5  ;;  %v2345_v22 = vshll.u32 %v7735_v10, 16  ;;  %v5521_v55 = vcombine.low %v7690_v54, %v7696_v3  ;;  %v7761_v34 = vld [vmem:[%s6955_s25 + $0x5c] sm:$0x1] }
  0x8c   : > { %v5634_v14 = vcombine.low %v2204_v62, %v2214_v35  ;;  %v7758_v58 = vrot.slane %v2294_v25, 4  ;;  %v2349_v18 = vshrl.u32 %v7735_v10, 16  ;;  %v7767_v6 = vrot.slane %v2304_v7, 4 }
  0x8d   : > { %6361 = vmatmul.mubr.bf16.gmra.mxu1 %v9647_v44  ;;  %v2331_v21 = vshll.u32 %v7741_v41, 16  ;;  %v2360_v49 = vshrl.u32 %v5607_v5, 16  ;;  %v2363_v19 = vshll.u32 %v5607_v5, 16  ;;  %v9649_v4 = vcombine.low %v7501_v26, %v7529_v37 }
  0x8e   : > { %6364 = vmatprep.mubr.bf16.mxu1 %v9648_v33  ;;  %v2318_v54 = vor.u32 %v2317_v53, %v2314_v48  ;;  %v2328_v3 = vor.u32 %v2327_v17, %v7743_v63  ;;  %v2338_v62 = vrot.slane %v2336_v8, 4  ;;  %v2341_v35 = vrot.slane %v2339_v59, 5  ;;  %v7805_v8 = vld [vmem:[%s6955_s25 + $0x70] sm:$0xf] }
  0x8f   : > { %v9650_v25 = vcombine.low %v7511_v2, %v7541_v29  ;;  %v7777_v7 = vrot.slane %v2345_v22, 5  ;;  %v2351_v44 = vrot.slane %v2349_v18, 4  ;;  %v2355_v33 = vshll.u32 %v7761_v34, 16 }
  0x90   : > { %v2369_v26 = vshll.u32 %v7765_v31, 16  ;;  %v2228_v37 = vsel %vm6986_vm2, %v7660_v30, %v7647_v11  ;;  %v2238_v2 = vsel %vm6986_vm2, %v7704_v46, %v7656_v38  ;;  %v2362_v29 = vrot.slane %v2360_v49, 4  ;;  %v5610_v46 = vld [vmem:[%s6955_s25 + $0x6c] sm:$0xf] }
  0x91   : > { %v2365_v48 = vrot.slane %v2363_v19, 5  ;;  %v9651_v53 = vcombine.low %v7170_v9, %v7179_v28  ;;  %v2252_v17 = vsel %vm6986_vm2, %v7706_v16, %v7662_v51  ;;  %v2262_v11 = vsel %vm6986_vm2, %v7729_v47, %v7708_v57  ;;  %v7813_v16 = vld [vmem:[%s6955_s25 + $0x68] sm:$0x1] }
  0x92   : > { %6413 = vmatmul.mubr.bf16.gmra.mxu0 %v9649_v4  ;;  %v7800_v30 = vrot.slane %v2331_v21, 5  ;;  %v2373_v38 = vshrl.u32 %v7765_v31, 16  ;;  %v9652_v9 = vcombine.low %v9633_v24, %v7234_v52  ;;  %v7810_v28 = vrot.slane %v2318_v54, 4  ;;  %v6805_v52 = vld [vmem:[%s6955_s25 + $0xc] sm:$0xff]  }
  0x93   : > { %6416 = vmatprep.mubr.bf16.mxu0 %v9650_v25  ;;  %v2342_v51 = vor.u32 %v2341_v35, %v2338_v62  ;;  %v2384_v59 = vshrl.u32 %v5610_v46, 16  ;;  %v2387_v57 = vshll.u32 %v5610_v46, 16  ;;  %v7815_v47 = vrot.slane %v2328_v3, 4  ;;  %v7826_v62 = vld [vmem:[%s6955_s25 + $0x74] sm:$0x1] }
  0x94   : > { %v2352_v22 = vor.u32 %v2351_v44, %v7777_v7  ;;  %v7818_v5 = vrot.slane %v2355_v33, 5  ;;  %v2393_v18 = vshll.u32 %v7805_v8, 16  ;;  %v2366_v24 = vor.u32 %v2365_v48, %v2362_v29  ;;  %v5613_v25 = vld [vmem:[%s6955_s25 + $0x78] sm:$0xf]  ;;  %v7830_v44 = vld [vmem:[%s6955_s25 + $0x7c] sm:$0xf] }
  0x95   : > { %6365 = vmatmul.mubr.bf16.gmra.mxu1 %v9651_v53  ;;  %v7822_v21 = vrot.slane %v2369_v26, 5  ;;  %v2375_v49 = vrot.slane %v2373_v38, 4  ;;  %v2397_v19 = vshrl.u32 %v7805_v8, 16  ;;  %v5635_v4 = vcombine.low %v2228_v37, %v2238_v2  ;;  %v7837_v26 = vld [vmem:[%s6955_s25 + $0x80] sm:$0x1] }
  0x96   : > { %6368 = vmatprep.mubr.bf16.mxu1 %v9652_v9  ;;  %v5636_v54 = vcombine.low %v2252_v17, %v2262_v11  ;;  %v2386_v3 = vrot.slane %v2384_v59, 4  ;;  %v2389_v35 = vrot.slane %v2387_v57, 5  ;;  %v7832_v33 = vrot.slane %v2342_v51, 4 }
  0x97   : > { %v7834_v53 = vrot.slane %v2393_v18, 5  ;;  %v2399_v29 = vrot.slane %v2397_v19, 4  ;;  %v2408_v48 = vshrl.u32 %v5613_v25, 16  ;;  %v2379_v37 = vshll.u32 %v7813_v16, 16  ;;  %v5616_v19 = vld [vmem:[%s6955_s25 + $0x84] sm:$0xf] }
  0x98   : > { %v2411_v2 = vshll.u32 %v5613_v25, 16  ;;  %v2417_v17 = vshll.u32 %v7830_v44, 16  ;;  %v2421_v11 = vshrl.u32 %v7830_v44, 16  ;;  %v7842_v38 = vrot.slane %v2352_v22, 4  ;;  %v6809_v25 = vld [vmem:[%s6955_s25 + $0x24] sm:$0xff]  }
  0x99   : > { %v7844_v46 = vrot.slane %v2366_v24, 4  ;;  %v2410_v9 = vrot.slane %v2408_v48, 4  ;;  %v9653_v51 = vcombine.low %v9636_v43, %v9635_v40  ;;  %v2276_v22 = vsel %vm6986_vm2, %v7748_v20, %v7676_v50 }
  0x9a   : > { %6417 = vmatmul.mubr.bf16.gmra.mxu0 %v5521_v55  ;;  %v2376_v55 = vor.u32 %v2375_v49, %v7822_v21  ;;  %v2413_v59 = vrot.slane %v2411_v2, 5  ;;  %v7850_v57 = vrot.slane %v2417_v17, 5  ;;  %v2423_v18 = vrot.slane %v2421_v11, 4  ;;  %v7899_v17 = vld [vmem:[%s6955_s25 + $0x8c] sm:$0x1] }
  0x9b   : > { %6484 = vmatprep.mubr.bf16.mxu0 %v5634_v14  ;;  %v2390_v14 = vor.u32 %v2389_v35, %v2386_v3  ;;  %v2400_v24 = vor.u32 %v2399_v29, %v7834_v53  ;;  %v2403_v49 = vshll.u32 %v7826_v62, 16  ;;  %v2427_v40 = vshll.u32 %v7837_v26, 16  ;;  %v7873_v3 = vld [vmem:[%s6955_s25 + $0x88] sm:$0xf]  ;;  %v6806_v35 = vld [vmem:[%s6955_s25 + $0x18] sm:$0xff]  }
  0x9c   : > { %v2286_v43 = vsel %vm6986_vm2, %v7750_v1, %v7731_v12  ;;  %v2310_v50 = vsel %vm6986_vm2, %v7767_v6, %v7752_v13  ;;  %v2414_v20 = vor.u32 %v2413_v59, %v2410_v9  ;;  %v6812_v12 = vld [vmem:[%s9594_s1 + $0x1b0] sm:$0xff]   ;;  %v7880_v1 = vrot.slane %v2379_v37, 5  ;;  %v7904_v11 = vld [vmem:[%s9594_s1 + $0x1a8] sm:$0xff]  }
  0x9d   : > { %6369 = vmatmul.mubr.bf16.gmra.mxu1 %v9653_v51  ;;  %v2435_v29 = vshll.u32 %v5616_v19, 16  ;;  %v6811_v13 = vld [vmem:[%s9594_s1 + $0x170] sm:$0xff]   ;;  %v2324_v6 = vsel %vm6986_vm2, %v7810_v28, %v7743_v63  ;;  %v2334_v48 = vsel %vm6986_vm2, %v7815_v47, %v7800_v30  ;;  %v7894_v37 = vrot.slane %v2376_v55, 4 }
  0x9e   : > { %6436 = vmatprep.mubr.bf16.mxu1 %v6805_v52  ;;  %v2300_v52 = vsel %vm6986_vm2, %v7758_v58, %v7702_v60  ;;  %v2424_v60 = vor.u32 %v2423_v18, %v7850_v57  ;;  %v2432_v58 = vshrl.u32 %v5616_v19, 16  ;;  %v7896_v2 = vrot.slane %v2390_v14, 4  ;;  %v5619_v14 = vld [vmem:[%s6955_s25 + $0x90] sm:$0xf]  ;;  %v7927_v59 = vld [vmem:[%s6955_s25 + $0x94] sm:$0xf] }
  0x9f   : > { %v7906_v63 = vrot.slane %v2400_v24, 4  ;;  %v7908_v28 = vrot.slane %v2403_v49, 5  ;;  %v2441_v30 = vshll.u32 %v7873_v3, 16  ;;  %v2445_v47 = vshrl.u32 %v7873_v3, 16  ;;  %9654 = vst [vmem:[#allocation6_spill] sm:$0xff] %v7927_v59 }
  0xa0   : > { %v2358_v55 = vsel %vm6986_vm2, %v7842_v38, %v7818_v5  ;;  %v7921_v9 = vrot.slane %v2414_v20, 4  ;;  %v7923_v51 = vrot.slane %v2427_v40, 5  ;;  %v2437_v18 = vrot.slane %v2435_v29, 5  ;;  %v6815_v5 = vld [vmem:[%s9594_s1 + $0x168] sm:$0xff]  }
  0xa1   : > { %v2459_v38 = vshll.u32 %v5619_v14, 16  ;;  %v2465_v24 = vshll.u32 %v7927_v59, 16  ;;  %v2469_v49 = vshrl.u32 %v7927_v59, 16  ;;  %v5637_v40 = vcombine.low %v2276_v22, %v2286_v43 }
  0xa2   : > { %6485 = vmatmul.mubr.bf16.vlgmr.msra.gmra.mxu0 %v5635_v4  ;;  %v2348_v4 = vsel %vm6986_vm2, %v7832_v33, %v7777_v7  ;;  %v2451_v7 = vshll.u32 %v7899_v17, 16  ;;  %v2456_v33 = vshrl.u32 %v5619_v14, 16  ;;  %v5638_v20 = vcombine.low %v2300_v52, %v2310_v50 }
  0xa3   : > { %6565 = vmatpush3.bf16.msra.mxu0 %v7629_v15  ;;  %6488 = vmatprep.mubr.bf16.mxu0 %v5636_v54  ;;  %v7929_v15 = vrot.slane %v2424_v60, 4  ;;  %v2434_v54 = vrot.slane %v2432_v58, 4  ;;  %v7938_v19 = vrot.slane %v2441_v30, 5  ;;  %v6810_v60 = vld [vmem:[%s6955_s25 + $0x30] sm:$0xff]   ;;  %v6820_v58 = vld [vmem:[%s9594_s1 + $0x1a0] sm:$0xff]   ;;  %v2461_v14 = vrot.slane %v2459_v38, 5 }
  0xa4   : > { %6566 = vmatprep.subr.bf16.mxu0 %v6812_v12  ;;  %v2458_v29 = vrot.slane %v2456_v33, 4  ;;  %v2471_v22 = vrot.slane %v2469_v49, 4  ;;  %v7946_v43 = vcombine.low %v2324_v6, %v2334_v48  ;;  %v7949_v52 = vcombine.low %v2348_v4, %v2358_v55  ;;  %v5622_v30 = vld [vmem:[%s6955_s25 + $0x9c] sm:$0xf]  ;;  %v7971_v4 = vld [vmem:[%s6955_s25 + $0xa4] sm:$0x1] }
  0xa5   : > { %6437 = vmatmul.mubr.bf16.vlgmr.msra.gmra.mxu1 %v6806_v35  ;;  %v2447_v35 = vrot.slane %v2445_v47, 4  ;;  %v2438_v48 = vor.u32 %v2437_v18, %v2434_v54  ;;  %v7968_v47 = vld [vmem:[%s6955_s25 + $0xa0] sm:$0xf]  ;;  %9657 = vst [vmem:[#allocation9_spill] sm:$0xff] %v7971_v4  ;;  %v2480_v55 = vshrl.u32 %v5622_v30, 16  ;;  %v2483_v33 = vshll.u32 %v5622_v30, 16 }
  0xa6   : > { %6517 = vmatpush3.bf16.msra.mxu1 %v7624_v36  ;;  %6440 = vmatprep.mubr.bf16.mxu1 %v6809_v25  ;;  %v7944_v36 = vrot.slane %v2465_v24, 5  ;;  %v2382_v25 = vsel %vm6986_vm2, %v7894_v37, %v7880_v1  ;;  %9656 = vst [vmem:[#allocation8_spill] sm:$0xff] %v7968_v47  ;;  %v6813_v38 = vld [vmem:[%s6955_s25 + $0x3c] sm:$0xff]   ;;  %v2489_v37 = vshll.u32 %v7968_v47, 16  ;;  %v2493_v24 = vshrl.u32 %v7968_v47, 16 }
  0xa7   : > { %6518 = vmatprep.subr.bf16.mxu1 %v6811_v13  ;;  %6567 = vmatpush3.bf16.msra.mxu0 %v6812_v12  ;;  %v7960_v12 = vld [vmem:[%s6955_s25 + $0x98] sm:$0x1]  ;;  %v2448_v1 = vor.u32 %v2447_v35, %v7938_v19  ;;  %v6819_v54 = vld [vmem:[%s9594_s1 + $0x160] sm:$0xff]   ;;  %v2462_v18 = vor.u32 %v2461_v14, %v2458_v29  ;;  %v2482_v30 = vrot.slane %v2480_v55, 4  ;;  %v2485_v49 = vrot.slane %v2483_v33, 5 }
  0xa8   : > { %6568 = vmatprep.subr.bf16.mxu0 %v7904_v11  ;;  %9655 = vst [vmem:[#allocation7_spill] sm:$0xff] %v7960_v12  ;;  %v2475_v35 = vshll.u32 %v7960_v12, 16  ;;  %v2495_v6 = vrot.slane %v2493_v24, 4  ;;  %v2499_v50 = vshll.u32 %v7971_v4, 16  ;;  %v5625_v47 = vld [vmem:[%s6955_s25 + $0xa8] sm:$0xf] }
  0xa9   : > { %v6823_v29 = vld [vmem:[%s9594_s1 + $0x158] sm:$0xff]   ;;  %v7994_v14 = vrot.slane %v2438_v48, 4  ;;  %v2504_v55 = vshrl.u32 %v5625_v47, 16  ;;  %v2507_v33 = vshll.u32 %v5625_v47, 16  ;;  %v8007_v4 = vld [vmem:[%s6955_s25 + $0xb0] sm:$0x1] }
  0xaa   : > { %6489 = vmatmul.mubr.bf16.gmra.mxu0 %v5637_v40  ;;  %6519 = vmatpush3.bf16.msra.mxu1 %v6811_v13  ;;  %v6824_v13 = vld [vmem:[%s9594_s1 + $0x198] sm:$0xff]   ;;  %v2472_v40 = vor.u32 %v2471_v22, %v7944_v36  ;;  %v7996_v22 = vrot.slane %v2451_v7, 5  ;;  %v6814_v48 = vld [vmem:[%s6955_s25 + $0x48] sm:$0xff]   ;;  %v8010_v7 = vrot.slane %v2448_v1, 4  ;;  %v8012_v12 = vrot.slane %v2462_v18, 4 }
  0xab   : > { %6492 = vmatprep.mubr.bf16.mxu0 %v5638_v20  ;;  %6520 = vmatprep.subr.bf16.mxu1 %v6815_v5  ;;  %v7987_v20 = vrot.slane %v2489_v37, 5  ;;  %v2486_v37 = vor.u32 %v2485_v49, %v2482_v30  ;;  %v8014_v59 = vrot.slane %v2475_v35, 5  ;;  %v6827_v49 = vld [vmem:[%s9594_s1 + $0x150] sm:$0xff]   ;;  %v8031_v18 = vrot.slane %v2507_v33, 5 }
  0xac   : > { %6569 = vmatpush3.bf16.msra.mxu0 %v7904_v11  ;;  %v7999_v11 = vld [vmem:[%s6955_s25 + $0xac] sm:$0xf]  ;;  %v2523_v35 = vshll.u32 %v8007_v4, 16 }
  0xad   : > { %6441 = vmatmul.mubr.bf16.gmra.mxu1 %v6810_v60  ;;  %6570 = vmatprep.subr.bf16.mxu0 %v6820_v58  ;;  %9658 = vst [vmem:[#allocation10_spill] sm:$0xff] %v7999_v11  ;;  %v2406_v60 = vsel %vm6986_vm2, %v7906_v63, %v7908_v28  ;;  %v2496_v24 = vor.u32 %v2495_v6, %v7987_v20  ;;  %v2513_v47 = vshll.u32 %v7999_v11, 16  ;;  %v6817_v63 = vld [vmem:[%s6955_s25 + $0x54] sm:$0xff]   ;;  %v8021_v28 = vrot.slane %v2472_v40, 4 }
  0xae   : > { %6444 = vmatprep.mubr.bf16.mxu1 %v6813_v38  ;;  %6521 = vmatpush3.bf16.msra.mxu1 %v6815_v5  ;;  %v6828_v5 = vld [vmem:[%s9594_s1 + $0x190] sm:$0xff]   ;;  %v8023_v6 = vrot.slane %v2499_v50, 5  ;;  %v8025_v38 = vrot.slane %v2504_v55, 4  ;;  %v2517_v1 = vshrl.u32 %v7999_v11, 16  ;;  %v8040_v40 = vrot.slane %v2486_v37, 4 }
  0xaf   : > { %6522 = vmatprep.subr.bf16.mxu1 %v6819_v54  ;;  %v8042_v30 = vrot.slane %v2496_v24, 4  ;;  %v5628_v55 = vld [vmem:[%s6955_s25 + $0xb4] sm:$0xf]  ;;  %v8046_v11 = vld [vmem:[%s6955_s25 + $0xb8] sm:$0xf]  ;;  %v6831_v24 = vld [vmem:[%s9594_s1 + $0x148] sm:$0xff]  }
  0xb0   : > { %6571 = vmatpush3.bf16.msra.mxu0 %v6820_v58  ;;  %v9659_v58 = vsel %vm6986_vm2, %v7844_v46, %v7822_v21  ;;  %9660 = vst [vmem:[#allocation11_spill] sm:$0xff] %v8046_v11  ;;  %v2420_v21 = vsel %vm6986_vm2, %v7921_v9, %v7850_v57  ;;  %v8058_v46 = vrot.slane %v2513_v47, 5  ;;  %v5631_v37 = vld [vmem:[%s6955_s25 + $0xc0] sm:$0xf]  ;;  %v2430_v57 = vsel %vm6986_vm2, %v7929_v15, %v7923_v51  ;;  %v8085_v47 = vld [vmem:[%s6955_s25 + $0xc4] sm:$0xf] }
  0xb1   : > { %6572 = vmatprep.subr.bf16.mxu0 %v6824_v13  ;;  %v5641_v50 = vcombine.low %v9659_v58, %v2382_v25  ;;  %v2528_v25 = vshrl.u32 %v5628_v55, 16  ;;  %v2444_v9 = vsel %vm6986_vm2, %v7994_v14, %v7938_v19  ;;  %9663 = vst [vmem:[#allocation13_spill] sm:$0xff] %v8085_v47  ;;  %v8088_v51 = vld [vmem:[%s6955_s25 + $0xc8] sm:$0x1]  ;;  %v2561_v58 = vshll.u32 %v8085_v47, 16 }
  0xb2   : > { %6493 = vmatmul.mubr.bf16.gmra.mxu0 %v7946_v43  ;;  %6523 = vmatpush3.bf16.msra.mxu1 %v6819_v54  ;;  %v9661_v43 = vsel %vm6986_vm2, %v7896_v2, %v7834_v53  ;;  %v2519_v54 = vrot.slane %v2517_v1, 4  ;;  %v2531_v53 = vshll.u32 %v5628_v55, 16  ;;  %v2537_v2 = vshll.u32 %v8046_v11, 16 }
  0xb3   : > { %6496 = vmatprep.mubr.bf16.mxu0 %v7949_v52  ;;  %v5642_v33 = vcombine.low %v9661_v43, %v2406_v60  ;;  %6524 = vmatprep.subr.bf16.mxu1 %v6823_v29  ;;  %v6832_v52 = vld [vmem:[%s9594_s1 + $0x188] sm:$0xff]   ;;  %v2541_v60 = vshrl.u32 %v8046_v11, 16  ;;  %v2530_v15 = vrot.slane %v2528_v25, 4  ;;  %v9664_v55 = vrot.slane %v7493_v32, 5 }
  0xb4   : > { %6573 = vmatpush3.bf16.msra.mxu0 %v6824_v13  ;;  %v2454_v13 = vsel %vm6986_vm2, %v8010_v7, %v7996_v22  ;;  %v2533_v19 = vrot.slane %v2531_v53, 5  ;;  %v8090_v14 = vrot.slane %v2537_v2, 5  ;;  %v2552_v22 = vshrl.u32 %v5631_v37, 16  ;;  %v6818_v2 = vld [vmem:[%s6955_s25 + $0x60] sm:$0xff]  }
  0xb5   : > { %6445 = vmatmul.mubr.bf16.gmra.mxu1 %v6814_v48  ;;  %6574 = vmatprep.subr.bf16.mxu0 %v6828_v5  ;;  %v8082_v48 = vld [vmem:[%s6955_s25 + $0xbc] sm:$0x1]  ;;  %v2543_v1 = vrot.slane %v2541_v60, 4  ;;  %v2555_v7 = vshll.u32 %v5631_v37, 16  ;;  %v8095_v43 = vrot.slane %v9664_v55, 4  ;;  %v8100_v25 = vrot.slane %v2523_v35, 5 }
  0xb6   : > { %9662 = vst [vmem:[#allocation12_spill] sm:$0xff] %v8082_v48  ;;  %6448 = vmatprep.mubr.bf16.mxu1 %v6817_v63  ;;  %6525 = vmatpush3.bf16.msra.mxu1 %v6823_v29  ;;  %v2510_v63 = vor.u32 %v8031_v18, %v8025_v38  ;;  %v2520_v29 = vor.u32 %v2519_v54, %v8058_v46  ;;  %v2565_v53 = vshrl.u32 %v8085_v47, 16  ;;  %v2547_v60 = vshll.u32 %v8082_v48, 16  ;;  %v6821_v38 = vld [vmem:[%s6955_s25 + $0x6c] sm:$0xff]   ;;  %v8120_v48 = vld [vmem:[%s6955_s25 + $0x18] sm:$0xe] }
  0xb7   : > { %6526 = vmatprep.subr.bf16.mxu1 %v6827_v49  ;;  %v2554_v37 = vrot.slane %v2552_v22, 4  ;;  %v2557_v11 = vrot.slane %v2555_v7, 5  ;;  %v8105_v55 = vrot.slane %v2561_v58, 5  ;;  %v2534_v18 = vor.u32 %v2533_v19, %v2530_v15  ;;  %v6835_v22 = vld [vmem:[%s9594_s1 + $0x140] sm:$0xff]   ;;  %v8117_v58 = vld [vmem:[%s6955_s25 + $0xc] sm:$0xe] }
  0xb8   : > { %6575 = vmatpush3.bf16.msra.mxu0 %v6828_v5  ;;  %v6836_v5 = vld [vmem:[%s9594_s1 + $0x180] sm:$0xff]   ;;  %v2544_v35 = vor.u32 %v2543_v1, %v8090_v14  ;;  %v2567_v54 = vrot.slane %v2565_v53, 4  ;;  %v2571_v47 = vshll.u32 %v8088_v51, 16  ;;  %v5643_v15 = vcombine.low %v2420_v21, %v2430_v57 }
  0xb9   : > { %6576 = vmatprep.subr.bf16.mxu0 %v6832_v52  ;;  %v2558_v7 = vor.u32 %v2557_v11, %v2554_v37  ;;  %v5644_v19 = vcombine.low %v2444_v9, %v2454_v13  ;;  %v8128_v1 = vrot.slane %v2510_v63, 4  ;;  %v8130_v11 = vrot.slane %v2520_v29, 4  ;;  %v6822_v9 = vld [vmem:[%s6955_s25 + $0x78] sm:$0xff]   ;;  %v6825_v37 = vld [vmem:[%s6955_s25 + $0x84] sm:$0xff]  }
  0xba   : > { %6497 = vmatmul.mubr.bf16.gmra.mxu0 %v5641_v50  ;;  %6527 = vmatpush3.bf16.msra.mxu1 %v6827_v49  ;;  %v8125_v49 = vld [vmem:[%s9594_s1 + $0x238] sm:$0xff]   ;;  %v2568_v50 = vor.u32 %v2567_v54, %v8105_v55  ;;  %v8139_v53 = vrot.slane %v2544_v35, 4  ;;  %v8141_v21 = vrot.slane %v2547_v60, 5  ;;  %v8147_v63 = vrot.slane %v2571_v47, 5  ;;  %v5661_v60 = vld [vmem:[%s6955_s25 + $0x30] sm:$0xe] }
  0xbb   : > { %6500 = vmatprep.mubr.bf16.mxu0 %v5642_v33  ;;  %6528 = vmatprep.subr.bf16.mxu1 %v6831_v24  ;;  %v8135_v33 = vld [vmem:[%s9594_s1 + $0x1f8] sm:$0xff]   ;;  %v8145_v13 = vrot.slane %v2558_v7, 4  ;;  %v2965_v29 = vrot.slane %v7567_v42, 5  ;;  %v9665_v35 = vld [vmem:[#allocation2_spill] sm:$0xff]  ;;  %v5677_v47 = vrot.slane %v5661_v60, 9  ;;  %v9668_v60 = vld [vmem:[#allocation3_spill] sm:$0xff] }
  0xbc   : > { %6577 = vmatpush3.bf16.msra.mxu0 %v6832_v52  ;;  %v8137_v52 = vrot.slane %v2534_v18, 4  ;;  %v9666_v7 = vld [vmem:[#allocation5_spill] sm:$0xff]  ;;  %v2986_v18 = vrot.slane %v7650_v0, 5  ;;  %v2502_v0 = vsel %vm6986_vm2, %v8042_v30, %v8023_v6  ;;  %v3000_v30 = vrot.slane %v7741_v41, 5 }
  0xbd   : > { %6449 = vmatmul.mubr.bf16.gmra.mxu1 %v6818_v2  ;;  %6578 = vmatprep.subr.bf16.mxu0 %v6836_v5  ;;  %v2983_v57 = vrot.slane %v9666_v7, 5  ;;  %v9667_v2 = vld [vmem:[#allocation4_spill] sm:$0xff] }
  0xbe   : > { %6452 = vmatprep.mubr.bf16.mxu1 %v6821_v38  ;;  %6529 = vmatpush3.bf16.msra.mxu1 %v6831_v24  ;;  %v8152_v24 = vrot.slane %v2568_v50, 4  ;;  %v2969_v38 = vrot.slane %v7584_v61, 5  ;;  %v2468_v50 = vsel %vm6986_vm2, %v8012_v12, %v7944_v36  ;;  %v2990_v54 = vrot.slane %v9667_v2, 5  ;;  %v5662_v12 = vld [vmem:[%s6955_s25 + $0x3c] sm:$0xe] }
  0xbf   : > { %6530 = vmatprep.subr.bf16.mxu1 %v6835_v22  ;;  %v8174_v7 = vsel %vm7297_vm5, %v5677_v47, %v2983_v57  ;;  %v2985_v36 = vrot.slane %v2983_v57, 4  ;;  %v5678_v2 = vrot.slane %v5662_v12, 9  ;;  %v6826_v47 = vld [vmem:[%s6955_s25 + $0x90] sm:$0xff]   ;;  %v3007_v12 = vrot.slane %v7761_v34, 5 }
  0xc0   : > { %6579 = vmatpush3.bf16.msra.mxu0 %v6836_v5  ;;  %v2478_v5 = vsel %vm6986_vm2, %v8021_v28, %v8014_v59  ;;  %v2492_v59 = vsel %vm6986_vm2, %v8040_v40, %v7987_v20  ;;  %v2992_v28 = vrot.slane %v2990_v54, 4  ;;  %v2997_v20 = vrot.slane %v7700_v39, 5 }
  0xc1   : > { %6660 = vmatprep.subr.bf16.mxu0 %v8125_v49  ;;  %v8188_v57 = vsel %vm7297_vm5, %v2985_v36, %v2986_v18  ;;  %v5646_v18 = vcombine.low %v2492_v59, %v2502_v0  ;;  %v8203_v39 = vsel %vm7297_vm5, %v5678_v2, %v2990_v54  ;;  %v2516_v36 = vsel %vm6986_vm2, %v8128_v1, %v8058_v46  ;;  %v5664_v54 = vld [vmem:[%s6955_s25 + $0x54] sm:$0xe] }
  0xc2   : > { %6501 = vmatmul.mubr.bf16.gmra.mxu0 %v5643_v15  ;;  %6531 = vmatpush3.bf16.msra.mxu1 %v6835_v22  ;;  %v2979_v15 = vrot.slane %v9668_v60, 5  ;;  %v2993_v22 = vrot.slane %v7679_v45, 5  ;;  %v5693_v40 = vcombine.low %v8174_v7, %v8188_v57  ;;  %v5663_v45 = vld [vmem:[%s6955_s25 + $0x48] sm:$0xe]  ;;  %v2526_v46 = vsel %vm6986_vm2, %v8130_v11, %v8100_v25  ;;  %v6846_v7 = vld [vmem:[%s6955_s25 + $0x54] sm:$0xff]  }
  0xc3   : > { %6504 = vmatprep.mubr.bf16.mxu0 %v5644_v19  ;;  %6612 = vmatprep.subr.bf16.mxu1 %v8135_v33  ;;  %v5645_v19 = vcombine.low %v2468_v50, %v2478_v5  ;;  %v2999_v50 = vrot.slane %v2997_v20, 4  ;;  %v6829_v5 = vld [vmem:[%s6955_s25 + $0x9c] sm:$0xff]   ;;  %v3011_v2 = vrot.slane %v7765_v31, 5  ;;  %v2540_v34 = vsel %vm6986_vm2, %v8137_v52, %v8090_v14 }
  0xc4   : > { %v8195_v6 = vsel %vm7297_vm5, %v2992_v28, %v2993_v22  ;;  %v5680_v28 = vrot.slane %v5664_v54, 9  ;;  %v5665_v22 = vld [vmem:[%s6955_s25 + $0x60] sm:$0xe]  ;;  %v3014_v25 = vrot.slane %v7813_v16, 5  ;;  %v2550_v11 = vsel %vm6986_vm2, %v8139_v53, %v8141_v21 }
  0xc5   : > { %6453 = vmatmul.mubr.bf16.gmra.mxu1 %v6822_v9  ;;  %v3004_v9 = vrot.slane %v7735_v10, 5  ;;  %v5694_v41 = vcombine.low %v8203_v39, %v8195_v6  ;;  %v8218_v59 = vsel %vm7297_vm5, %v2999_v50, %v3000_v30  ;;  %v3018_v14 = vrot.slane %v7805_v8, 5  ;;  %v5843_v6 = vld [vmem:[%s6955_s25 + $0x24] sm:$0xe] }
  0xc6   : > { %6456 = vmatprep.mubr.bf16.mxu1 %v6825_v37  ;;  %v5679_v37 = vrot.slane %v5663_v45, 9  ;;  %v3013_v45 = vrot.slane %v3011_v2, 4  ;;  %v5647_v52 = vcombine.low %v2516_v36, %v2526_v46  ;;  %v3021_v8 = vrot.slane %v7826_v62, 5  ;;  %v5667_v36 = vld [vmem:[%s6955_s25 + $0x78] sm:$0xe] }
  0xc7   : > { %v3006_v0 = vrot.slane %v3004_v9, 4  ;;  %v8245_v31 = vsel %vm7297_vm5, %v5680_v28, %v3004_v9  ;;  %v3020_v9 = vrot.slane %v3018_v14, 4  ;;  %v3025_v54 = vrot.slane %v7830_v44, 5 }
  0xc8   : > { %v8214_v10 = vsel %vm7297_vm5, %v5679_v37, %v2997_v20  ;;  %v5681_v20 = vrot.slane %v5665_v22, 9  ;;  %v8257_v53 = vsel %vm7297_vm5, %v3013_v45, %v3014_v25  ;;  %v5648_v37 = vcombine.low %v2540_v34, %v2550_v11 }
  0xc9   : > { %v8273_v46 = vsel %vm7297_vm5, %v3020_v9, %v3021_v8  ;;  %v5683_v62 = vrot.slane %v5667_v36, 9  ;;  %v3032_v28 = vrot.slane %v7873_v3, 5  ;;  %v3027_v44 = vrot.slane %v3025_v54, 4  ;;  %v6837_v8 = vld [vmem:[%s6955_s25 + $0x18] sm:$0xff]   ;;  %v9673_v36 = vld [vmem:[#allocation8_spill] sm:$0xff] }
  0xca   : > { %6505 = vmatmul.mubr.bf16.gmra.mxu0 %v5645_v19  ;;  %v8236_v19 = vsel %vm7297_vm5, %v3006_v0, %v3007_v12  ;;  %v8252_v16 = vsel %vm7297_vm5, %v5681_v20, %v3011_v2  ;;  %v3028_v0 = vrot.slane %v7837_v26, 5  ;;  %v3035_v26 = vrot.slane %v7899_v17, 5  ;;  %v5668_v20 = vld [vmem:[%s6955_s25 + $0x84] sm:$0xe] }
  0xcb   : > { %6508 = vmatprep.mubr.bf16.mxu0 %v5646_v18  ;;  %v5666_v18 = vld [vmem:[%s6955_s25 + $0x6c] sm:$0xe]  ;;  %v2564_v2 = vsel %vm6986_vm2, %v8145_v13, %v8105_v55  ;;  %v8285_v34 = vsel %vm7297_vm5, %v5683_v62, %v3025_v54  ;;  %v2574_v3 = vsel %vm6986_vm2, %v8152_v24, %v8147_v63  ;;  %v5684_v25 = vrot.slane %v5668_v20, 9  ;;  %v9671_v63 = vld [vmem:[#allocation6_spill] sm:$0xff] }
  0xcc   : > { %v5682_v21 = vrot.slane %v5666_v18, 9  ;;  %v8294_v17 = vsel %vm7297_vm5, %v3027_v44, %v3028_v0  ;;  %v3034_v11 = vrot.slane %v3032_v28, 4  ;;  %v9669_v45 = vrot.slane %v7493_v32, 5  ;;  %v5669_v18 = vld [vmem:[%s6955_s25 + $0x90] sm:$0xe]  ;;  %v6849_v62 = vld [vmem:[%s6955_s25 + $0x60] sm:$0xff]  }
  0xcd   : > { %6457 = vmatmul.mubr.bf16.gmra.mxu1 %v6826_v47  ;;  %v6830_v47 = vld [vmem:[%s6955_s25 + $0xa8] sm:$0xff]   ;;  %v9670_v55 = vrot.slane %v8117_v58, 9  ;;  %v3039_v24 = vrot.slane %v9671_v63, 5  ;;  %v8311_v32 = vsel %vm7297_vm5, %v5684_v25, %v3032_v28  ;;  %v3046_v54 = vrot.slane %v9673_v36, 5 }
  0xce   : > { %6460 = vmatprep.mubr.bf16.mxu1 %v6829_v5  ;;  %v6833_v5 = vld [vmem:[%s6955_s25 + $0xb4] sm:$0xff]   ;;  %v8269_v12 = vsel %vm7297_vm5, %v5682_v21, %v3018_v14  ;;  %v5660_v14 = vld [vmem:[%s6955_s25 + $0x24] sm:$0xe]  ;;  %v9672_v21 = vld [vmem:[#allocation7_spill] sm:$0xff]  ;;  %v8315_v58 = vsel %vm7297_vm5, %v3034_v11, %v3035_v26  ;;  %v5649_v0 = vcombine.low %v2564_v2, %v2574_v3  ;;  %v2966_v28 = vsel %vm7297_vm5, %v8095_v43, %v2965_v29 }
  0xcf   : > { %v2963_v13 = vsel %vm7297_vm5, %v9670_v55, %v9669_v45  ;;  %v3042_v9 = vrot.slane %v9672_v21, 5  ;;  %v3041_v44 = vrot.slane %v3039_v24, 4  ;;  %v6834_v45 = vld [vmem:[%s6955_s25 + $0xc0] sm:$0xff]   ;;  %v2971_v26 = vrot.slane %v2969_v38, 4  ;;  %v5670_v2 = vld [vmem:[%s6955_s25 + $0x9c] sm:$0xe] }
  0xd0   : > { %v3048_v3 = vrot.slane %v3046_v54, 4  ;;  %v5686_v11 = vrot.slane %v5670_v2, 9  ;;  %v9675_v55 = vld [vmem:[#allocation10_spill] sm:$0xff]  ;;  %v5671_v63 = vld [vmem:[%s6955_s25 + $0xa8] sm:$0xe]  ;;  %v5690_v21 = vcombine.low %v2963_v13, %v2966_v28  ;;  %v9679_v28 = vrot.slane %v8120_v48, 9 }
  0xd1   : > { %v8336_v25 = vsel %vm7297_vm5, %v3041_v44, %v3042_v9  ;;  %v3053_v42 = vrot.slane %v9675_v55, 5  ;;  %v8459_v43 = vld [vmem:[%s6955_s25 + $0x34] sm:$0xf] }
  0xd2   : > { %6509 = vmatmul.mubr.bf16.gmra.mxu0 %v5647_v52  ;;  %v8349_v9 = vsel %vm7297_vm5, %v5686_v11, %v3046_v54  ;;  %v5672_v54 = vld [vmem:[%s6955_s25 + $0xb4] sm:$0xe]  ;;  %v3885_v39 = vshll.u32 %v8459_v43, 16 }
  0xd3   : > { %6512 = vmatprep.mubr.bf16.mxu0 %v5648_v37  ;;  %v5685_v37 = vrot.slane %v5669_v18, 9  ;;  %v5676_v18 = vrot.slane %v5660_v14, 9  ;;  %v3055_v36 = vrot.slane %v3053_v42, 4  ;;  %v9676_v14 = vrot.slane %v9665_v35, 5 }
  0xd4   : > { %v5688_v55 = vrot.slane %v5672_v54, 9 }
  0xd5   : > { %6461 = vmatmul.mubr.bf16.gmra.mxu1 %v6830_v47  ;;  %v9674_v47 = vld [vmem:[#allocation9_spill] sm:$0xff]  ;;  %v2978_v44 = vrot.slane %v9676_v14, 4  ;;  %v9681_v61 = vmov %v9676_v14  ;;  %v3070_v14 = vrot.slane %v8088_v51, 5  ;;  %v5776_v51 = vld [vmem:[%s6955_s25 + $0x30] sm:$0xf] }
  0xd6   : > { %6464 = vmatprep.mubr.bf16.mxu1 %v6833_v5  ;;  %v3049_v20 = vrot.slane %v9674_v47, 5  ;;  %v8331_v5 = vsel %vm7297_vm5, %v5685_v37, %v3039_v24  ;;  %v3056_v24 = vrot.slane %v8007_v4, 5  ;;  %v5687_v37 = vrot.slane %v5671_v63, 9 }
  0xd7   : > { %v9680_v63 = vrot.slane %v7598_v23, 5  ;;  %v2977_v48 = vsel %vm7297_vm5, %v5676_v18, %v9681_v61  ;;  %v2980_v23 = vsel %vm7297_vm5, %v2978_v44, %v2979_v15  ;;  %v8429_v61 = vld [vmem:[%s6955_s25 + $0x28] sm:$0xf] }
  0xd8   : > { %v8343_v29 = vsel %vm7297_vm5, %v3048_v3, %v3049_v20  ;;  %v9677_v20 = vld [vmem:[#allocation11_spill] sm:$0xff]  ;;  %v8358_v4 = vsel %vm7297_vm5, %v5687_v37, %v3053_v42  ;;  %v8362_v13 = vsel %vm7297_vm5, %v3055_v36, %v3056_v24  ;;  %v2970_v3 = vsel %vm7297_vm5, %v9679_v28, %v2969_v38  ;;  %v5673_v37 = vld [vmem:[%s6955_s25 + $0xc0] sm:$0xe]  ;;  %v9682_v38 = vld [vmem:[#allocation13_spill] sm:$0xff] }
  0xd9   : > { %v3060_v2 = vrot.slane %v9677_v20, 5  ;;  %v2973_v24 = vsel %vm7297_vm5, %v2971_v26, %v9680_v63  ;;  %v3067_v36 = vrot.slane %v9682_v38, 5  ;;  %v5689_v18 = vrot.slane %v5673_v37, 9  ;;  %v6844_v20 = vld [vmem:[%s9594_s1 + $0x230] sm:$0xff]   ;;  %v5773_v63 = vld [vmem:[%s6955_s25 + $0x24] sm:$0xf] }
  0xda   : > { %6513 = vmatmul.mubr.bf16.gmra.mxu0 %v5649_v0  ;;  %v5691_v15 = vcombine.low %v2970_v3, %v2973_v24  ;;  %v5692_v54 = vcombine.low %v2977_v48, %v2980_v23  ;;  %v6843_v28 = vld [vmem:[%s9594_s1 + $0x1f0] sm:$0xff]   ;;  %v6842_v48 = vld [vmem:[%s6955_s25 + $0x3c] sm:$0xff]   ;;  %v3852_v37 = vshrl.u32 %v5773_v63, 16  ;;  %v6845_v38 = vld [vmem:[%s6955_s25 + $0x48] sm:$0xff]   ;;  %v3861_v23 = vshll.u32 %v8429_v61, 16 }
  0xdb   : > { %6580 = vmatprep.mubr.bf16.mxu0 %v6837_v8  ;;  %v9678_v8 = vld [vmem:[#allocation12_spill] sm:$0xff]  ;;  %v3062_v42 = vrot.slane %v3060_v2, 4  ;;  %v8393_v26 = vsel %vm7297_vm5, %v5688_v55, %v3060_v2  ;;  %v3069_v60 = vrot.slane %v3067_v36, 4  ;;  %v8406_v44 = vsel %vm7297_vm5, %v5689_v18, %v3067_v36  ;;  %v5770_v2 = vld [vmem:[%s6955_s25 + $0x18] sm:$0xf]  ;;  %v6848_v55 = vld [vmem:[%s9594_s1 + $0x228] sm:$0xff]  }
  0xdc   : > { %v3063_v0 = vrot.slane %v9678_v8, 5  ;;  %v3831_v24 = vshll.u32 %v5770_v2, 16  ;;  %v6847_v36 = vld [vmem:[%s9594_s1 + $0x1e8] sm:$0xff]   ;;  %v5772_v18 = vld [vmem:[%s6955_s25 + $0x20] sm:$0x1]  ;;  %v3854_v11 = vrot.slane %v3852_v37, 4 }
  0xdd   : > { %6465 = vmatmul.mubr.bf16.gmra.mxu1 %v6834_v45  ;;  %v6838_v45 = vld [vmem:[%s6955_s25 + $0x24] sm:$0xff]   ;;  %v8411_v8 = vsel %vm7297_vm5, %v3069_v60, %v3070_v14  ;;  %v3855_v14 = vshll.u32 %v5773_v63, 16  ;;  %v8449_v63 = vld [vmem:[%s6955_s25 + $0x2c] sm:$0x1]  ;;  %v3876_v37 = vshrl.u32 %v5776_v51, 16 }
  0xde   : > { %6532 = vmatprep.mubr.bf16.mxu1 %v5690_v21  ;;  %v6841_v21 = vld [vmem:[%s6955_s25 + $0x30] sm:$0xff]   ;;  %v8397_v35 = vsel %vm7297_vm5, %v3062_v42, %v3063_v0  ;;  %v8414_v0 = vld [vmem:[%s6955_s25 + $0x1c] sm:$0xf]  ;;  %v3828_v42 = vshrl.u32 %v5770_v2, 16 }
  0xdf   : > { %v4598_v3 = vrot.slane %v8414_v0, 5  ;;  %v3857_v47 = vrot.slane %v3855_v14, 5 }
  0xe0   : > { %v3830_v60 = vrot.slane %v3828_v42, 4  ;;  %v6851_v42 = vld [vmem:[%s9594_s1 + $0x1e0] sm:$0xff]  }
  0xe2   : > { %6581 = vmatmul.mubr.bf16.vlgmr.msra.gmra.mxu0 %v6838_v45  ;;  %v3841_v45 = vshrl.u32 %v8414_v0, 16 }
  0xe3   : > { %6661 = vmatpush3.bf16.msra.mxu0 %v8125_v49  ;;  %6584 = vmatprep.mubr.bf16.mxu0 %v6841_v21  ;;  %v3837_v49 = vshll.u32 %v8414_v0, 16  ;;  %v3865_v21 = vshrl.u32 %v8429_v61, 16 }
  0xe4   : > { %6662 = vmatprep.subr.bf16.mxu0 %v6844_v20 }
  0xe5   : > { %6533 = vmatmul.mubr.bf16.vlgmr.msra.gmra.mxu1 %v5691_v15  ;;  %v5842_v15 = vld [vmem:[%s6955_s25 + $0x18] sm:$0xe]  ;;  %v8444_v2 = vrot.slane %v3837_v49, 5  ;;  %v3847_v49 = vshll.u32 %v5772_v18, 16  ;;  %v3867_v0 = vrot.slane %v3865_v21, 4 }
  0xe6   : > { %6613 = vmatpush3.bf16.msra.mxu1 %v8135_v33  ;;  %6536 = vmatprep.mubr.bf16.mxu1 %v5692_v54  ;;  %v6852_v33 = vld [vmem:[%s9594_s1 + $0x220] sm:$0xff]   ;;  %v3843_v54 = vrot.slane %v3841_v45, 4  ;;  %v8456_v45 = vrot.slane %v3861_v23, 5  ;;  %v6856_v23 = vld [vmem:[%s9594_s1 + $0x218] sm:$0xff]  }
  0xe7   : > { %6614 = vmatprep.subr.bf16.mxu1 %v6843_v28  ;;  %6663 = vmatpush3.bf16.msra.mxu0 %v6844_v20  ;;  %v3833_v20 = vrot.slane %v3831_v24, 5 }
  0xe8   : > { %6664 = vmatprep.subr.bf16.mxu0 %v6848_v55  ;;  %v3844_v21 = vor.u32 %v3843_v54, %v8444_v2  ;;  %v3868_v54 = vor.u32 %v3867_v0, %v8456_v45 }
  0xea   : > { %6585 = vmatmul.mubr.bf16.gmra.mxu0 %v6842_v48  ;;  %6615 = vmatpush3.bf16.msra.mxu1 %v6843_v28  ;;  %v5858_v48 = vrot.slane %v5842_v15, 9  ;;  %v4601_v28 = vrot.slane %v5772_v18, 5  ;;  %v4600_v18 = vrot.slane %v4598_v3, 4  ;;  %v3871_v15 = vshll.u32 %v8449_v63, 16 }
  0xeb   : > { %6588 = vmatprep.mubr.bf16.mxu0 %v6845_v38  ;;  %6616 = vmatprep.subr.bf16.mxu1 %v6847_v36  ;;  %v3879_v38 = vshll.u32 %v5776_v51, 16  ;;  %v4605_v51 = vrot.slane %v8429_v61, 5  ;;  %v3889_v61 = vshrl.u32 %v8459_v43, 16 }
  0xec   : > { %6665 = vmatpush3.bf16.msra.mxu0 %v6848_v55  ;;  %v3834_v55 = vor.u32 %v3833_v20, %v3830_v60  ;;  %v6855_v60 = vld [vmem:[%s9594_s1 + $0x1d8] sm:$0xff]   ;;  %v8482_v20 = vrot.slane %v3847_v49, 5  ;;  %v6860_v49 = vld [vmem:[%s9594_s1 + $0x210] sm:$0xff]  }
  0xed   : > { %v8454_v24 = vpop.f32.mrf.mxu0  ;;  %6537 = vmatmul.mubr.bf16.gmra.mxu1 %v5693_v40  ;;  %6666 = vmatprep.subr.bf16.mxu0 %v6852_v33  ;;  %v8464_v14 = vpop.f32.mrf.mxu1  ;;  %v3858_v40 = vor.u32 %v3857_v47, %v3854_v11  ;;  %v3878_v47 = vrot.slane %v3876_v37, 4  ;;  %v3881_v11 = vrot.slane %v3879_v38, 5  ;;  %v8509_v37 = vld [vmem:[%s6955_s25 + $0x40] sm:$0xf]  ;;  %v4607_v50 = vrot.slane %v4605_v51, 4 }
  0xee   : > { %9683 = vst [vmem:[#allocation2_spill] sm:$0xff] %v8464_v14  ;;  %6540 = vmatprep.mubr.bf16.mxu1 %v5694_v41  ;;  %6617 = vmatpush3.bf16.msra.mxu1 %v6847_v36  ;;  %v8489_v41 = vsel %vm7297_vm5, %v5858_v48, %v4598_v3  ;;  %v5779_v36 = vld [vmem:[%s6955_s25 + $0x3c] sm:$0xf]  ;;  %v8498_v0 = vrot.slane %v3834_v55, 4  ;;  %v8504_v3 = vsel %vm7297_vm5, %v4600_v18, %v4601_v28  ;;  %v8506_v48 = vrot.slane %v3871_v15, 5  ;;  %v6859_v55 = vld [vmem:[%s9594_s1 + $0x1d0] sm:$0xff]  }
  0xef   : > { %v8475_v57 = vpop.f32.mrf.mxu0  ;;  %6618 = vmatprep.subr.bf16.mxu1 %v6851_v42  ;;  %v8493_v52 = vpop.f32.mrf.mxu1  ;;  %v8516_v22 = vrot.slane %v3858_v40, 4  ;;  %v4608_v28 = vrot.slane %v8449_v63, 5  ;;  %v3869_v18 = vrot.slane %v3868_v54, 4  ;;  %v8520_v15 = vld [vmem:[%s6955_s25 + $0x38] sm:$0x1]  ;;  %v3903_v30 = vshll.u32 %v5779_v36, 16 }
  0xf0   : > { %6667 = vmatpush3.bf16.msra.mxu0 %v6852_v33  ;;  %9684 = vst [vmem:[#allocation5_spill] sm:$0xff] %v8493_v52  ;;  %v8500_v33 = vrot.slane %v3844_v21, 4  ;;  %v5859_v21 = vrot.slane %v5843_v6, 9  ;;  %v3882_v1 = vor.u32 %v3881_v11, %v3878_v47  ;;  %v8524_v52 = vrot.slane %v3889_v61, 4  ;;  %v5844_v40 = vld [vmem:[%s6955_s25 + $0x30] sm:$0xe] }
  0xf1   : > { %6668 = vmatprep.subr.bf16.mxu0 %v6856_v23  ;;  %v8511_v38 = vpop.f32.mrf.mxu0  ;;  %v3909_v6 = vshll.u32 %v8509_v37, 16  ;;  %v3913_v63 = vshrl.u32 %v8509_v37, 16  ;;  %v8532_v54 = vpop.f32.mrf.mxu1  ;;  %v9687_v11 = vcombine.low %v8245_v31, %v8236_v19  ;;  %v6850_v61 = vld [vmem:[%s6955_s25 + $0x6c] sm:$0xff]   ;;  %v8565_v19 = vsel %vm7297_vm5, %v4607_v50, %v4608_v28  ;;  %v8583_v28 = vld [vmem:[%s6955_s25 + $0x44] sm:$0x1] }
  0xf2   : > { %6589 = vmatmul.mubr.bf16.gmra.mxu0 %v6846_v7  ;;  %6619 = vmatpush3.bf16.msra.mxu1 %v6851_v42  ;;  %v8522_v7 = vrot.slane %v3885_v39, 5  ;;  %v3900_v42 = vshrl.u32 %v5779_v36, 16  ;;  %9686 = vst [vmem:[#allocation4_spill] sm:$0xff] %v8532_v54  ;;  %v3840_v39 = vsel %vm6986_vm2, %v8498_v0, %v8444_v2  ;;  %v3850_v47 = vsel %vm6986_vm2, %v8500_v33, %v8482_v20  ;;  %v6853_v36 = vld [vmem:[%s6955_s25 + $0x78] sm:$0xff]   ;;  %v8576_v33 = vld [vmem:[%s6955_s25 + $0x4c] sm:$0xf] }
  0xf3   : > { %6592 = vmatprep.mubr.bf16.mxu0 %v6849_v62  ;;  %6620 = vmatprep.subr.bf16.mxu1 %v6855_v60  ;;  %v9685_v62 = vcombine.low %v8214_v10, %v8218_v59  ;;  %v4612_v59 = vrot.slane %v8459_v43, 5  ;;  %v3864_v2 = vsel %vm6986_vm2, %v8516_v22, %v8456_v45  ;;  %v8561_v20 = vsel %vm7297_vm5, %v5859_v21, %v4605_v51  ;;  %v5782_v43 = vld [vmem:[%s6955_s25 + $0x48] sm:$0xf]  ;;  %v8587_v54 = vpop.f32.mrf.mxu1  ;;  %v5845_v14 = vld [vmem:[%s6955_s25 + $0x3c] sm:$0xe] }
  0xf4   : > { %6669 = vmatpush3.bf16.msra.mxu0 %v6856_v23  ;;  %v6864_v23 = vld [vmem:[%s9594_s1 + $0x208] sm:$0xff]   ;;  %v3895_v31 = vshll.u32 %v8520_v15, 16  ;;  %v3874_v22 = vsel %vm6986_vm2, %v3869_v18, %v8506_v48  ;;  %v5860_v45 = vrot.slane %v5844_v40, 9  ;;  %v3902_v0 = vrot.slane %v3900_v42, 4  ;;  %9689 = vst [vmem:[#allocation6_spill] sm:$0xff] %v8587_v54  ;;  %v6867_v42 = vld [vmem:[%s9594_s1 + $0x1c0] sm:$0xff]  }
  0xf5   : > { %6541 = vmatmul.mubr.bf16.gmra.mxu1 %v9685_v62  ;;  %6670 = vmatprep.subr.bf16.mxu0 %v6860_v49  ;;  %v8553_v62 = vpop.f32.mrf.mxu0  ;;  %v3905_v51 = vrot.slane %v3903_v30, 5  ;;  %v8578_v50 = vrot.slane %v3882_v1, 4  ;;  %v3892_v21 = vor.u32 %v8524_v52, %v8522_v7  ;;  %v3915_v10 = vrot.slane %v3913_v63, 4  ;;  %v6868_v30 = vld [vmem:[%s9594_s1 + $0x200] sm:$0xff]  }
  0xf6   : > { %6544 = vmatprep.mubr.bf16.mxu1 %v9687_v11  ;;  %6621 = vmatpush3.bf16.msra.mxu1 %v6855_v60  ;;  %9688 = vst [vmem:[#allocation3_spill] sm:$0xff] %v8553_v62  ;;  %v6863_v60 = vld [vmem:[%s9594_s1 + $0x1c8] sm:$0xff]   ;;  %v8585_v11 = vrot.slane %v3909_v6, 5  ;;  %v4614_v48 = vrot.slane %v4612_v59, 4  ;;  %v3924_v1 = vshrl.u32 %v5782_v43, 16  ;;  %v3927_v18 = vshll.u32 %v5782_v43, 16 }
  0xf7   : > { %6622 = vmatprep.subr.bf16.mxu1 %v6859_v55  ;;  %v8598_v40 = vcombine.low %v3840_v39, %v3850_v47  ;;  %v3937_v63 = vshrl.u32 %v8576_v33, 16  ;;  %v8606_v43 = vrot.slane %v3895_v31, 5  ;;  %v3919_v54 = vshll.u32 %v8583_v28, 16  ;;  %v5785_v39 = vld [vmem:[%s6955_s25 + $0x54] sm:$0xf]  ;;  %v6854_v6 = vld [vmem:[%s6955_s25 + $0x84] sm:$0xff]  }
  0xf8   : > { %6671 = vmatpush3.bf16.msra.mxu0 %v6860_v49  ;;  %v4615_v49 = vrot.slane %v8520_v15, 5  ;;  %v8593_v52 = vpop.f32.mrf.mxu0  ;;  %v3933_v15 = vshll.u32 %v8576_v33, 16  ;;  %v4619_v31 = vrot.slane %v8509_v37, 5  ;;  %v9693_v37 = vcombine.low %v8269_v12, %v8273_v46  ;;  %v6857_v47 = vld [vmem:[%s6955_s25 + $0x90] sm:$0xff]  }
  0xf9   : > { %6672 = vmatprep.subr.bf16.mxu0 %v6864_v23  ;;  %9690 = vst [vmem:[#allocation7_spill] sm:$0xff] %v8593_v52 }
  0xfa   : > { %6593 = vmatmul.mubr.bf16.gmra.mxu0 %v6850_v61  ;;  %6623 = vmatpush3.bf16.msra.mxu1 %v6859_v55  ;;  %v8604_v61 = vcombine.low %v3864_v2, %v3874_v22  ;;  %v3906_v55 = vor.u32 %v3905_v51, %v3902_v0  ;;  %v3916_v2 = vor.u32 %v3915_v10, %v8585_v11  ;;  %v8622_v22 = vld [vmem:[%s6955_s25 + $0x58] sm:$0xf]  ;;  %v8629_v51 = vrot.slane %v3892_v21, 4 }
  0xfb   : > { %6596 = vmatprep.mubr.bf16.mxu0 %v6853_v36  ;;  %6624 = vmatprep.subr.bf16.mxu1 %v6863_v60  ;;  %v8617_v36 = vsel %vm7297_vm5, %v5860_v45, %v4612_v59  ;;  %v9691_v0 = vcombine.low %v8252_v16, %v8257_v53  ;;  %v8633_v59 = vsel %vm7297_vm5, %v4614_v48, %v4615_v49  ;;  %v3926_v45 = vrot.slane %v3924_v1, 4  ;;  %v8640_v16 = vpop.f32.mrf.mxu0  ;;  %v5784_v1 = vld [vmem:[%s6955_s25 + $0x50] sm:$0x1] }
  0xfc   : > { %6673 = vmatpush3.bf16.msra.mxu0 %v6864_v23  ;;  %v8627_v23 = vpop.f32.mrf.mxu1  ;;  %v3929_v10 = vrot.slane %v3927_v18, 5  ;;  %9694 = vst [vmem:[#allocation9_spill] sm:$0xff] %v8640_v16  ;;  %v5861_v53 = vrot.slane %v5845_v14, 9  ;;  %v3939_v21 = vrot.slane %v3937_v63, 4  ;;  %v3907_v48 = vrot.slane %v3906_v55, 4 }
  0xfd   : > { %6545 = vmatmul.mubr.bf16.gmra.mxu1 %v9691_v0  ;;  %9692 = vst [vmem:[#allocation8_spill] sm:$0xff] %v8627_v23  ;;  %6674 = vmatprep.subr.bf16.mxu0 %v6868_v30  ;;  %v8642_v0 = vrot.slane %v3933_v15, 5  ;;  %v3948_v23 = vshrl.u32 %v5785_v39, 16  ;;  %v3921_v49 = vrot.slane %v3919_v54, 5  ;;  %v3951_v18 = vshll.u32 %v5785_v39, 16  ;;  %v8658_v39 = vpop.f32.mrf.mxu0 }
  0xfe   : > { %6548 = vmatprep.mubr.bf16.mxu1 %v9693_v37  ;;  %6625 = vmatpush3.bf16.msra.mxu1 %v6863_v60  ;;  %v3957_v52 = vshll.u32 %v8622_v22, 16  ;;  %v3917_v12 = vrot.slane %v3916_v2, 4  ;;  %v4621_v46 = vrot.slane %v4619_v31, 4  ;;  %v4622_v37 = vrot.slane %v8583_v28, 5  ;;  %v8648_v60 = vpop.f32.mrf.mxu1  ;;  %v5788_v55 = vld [vmem:[%s6955_s25 + $0x60] sm:$0xf] }
  0xff   : > { %6626 = vmatprep.subr.bf16.mxu1 %v6867_v42  ;;  %v3961_v14 = vshrl.u32 %v8622_v22, 16  ;;  %9695 = vst [vmem:[#allocation10_spill] sm:$0xff] %v8648_v60  ;;  %v3898_v15 = vsel %vm6986_vm2, %v8629_v51, %v8606_v43  ;;  %v3930_v63 = vor.u32 %v3929_v10, %v3926_v45  ;;  %v3940_v28 = vor.u32 %v3939_v21, %v8642_v0  ;;  %v5846_v60 = vld [vmem:[%s6955_s25 + $0x48] sm:$0xe] }
 0x100   : > { %6675 = vmatpush3.bf16.msra.mxu0 %v6868_v30  ;;  %v4626_v30 = vrot.slane %v8576_v33, 5  ;;  %v3943_v2 = vshll.u32 %v5784_v1, 16  ;;  %v3950_v16 = vrot.slane %v3948_v23, 4  ;;  %v3953_v62 = vrot.slane %v3951_v18, 5  ;;  %v8683_v10 = vpop.f32.mrf.mxu1 }
 0x101   : > { %v3912_v43 = vsel %vm6986_vm2, %v3907_v48, %v8585_v11  ;;  %v8667_v33 = vsel %vm7297_vm5, %v5861_v53, %v4619_v31  ;;  %v3922_v51 = vsel %vm6986_vm2, %v3917_v12, %v3921_v49  ;;  %v8675_v23 = vsel %vm7297_vm5, %v4621_v46, %v4622_v37  ;;  %9697 = vst [vmem:[#allocation11_spill] sm:$0xff] %v8683_v10  ;;  %v8686_v49 = vld [vmem:[%s6955_s25 + $0x64] sm:$0xf]  ;;  %v6858_v12 = vld [vmem:[%s6955_s25 + $0x9c] sm:$0xff]   ;;  %v8692_v46 = vpop.f32.mrf.mxu0 }
 0x102   : > { %6597 = vmatmul.mubr.bf16.gmra.mxu0 %v6854_v6  ;;  %6627 = vmatpush3.bf16.msra.mxu1 %v6867_v42  ;;  %v8669_v6 = vrot.slane %v3957_v52, 5  ;;  %v3963_v42 = vrot.slane %v3961_v14, 4  ;;  %v3972_v45 = vshrl.u32 %v5788_v55, 16  ;;  %v3975_v11 = vshll.u32 %v5788_v55, 16  ;;  %v6861_v55 = vld [vmem:[%s6955_s25 + $0xa8] sm:$0xff]  }
 0x103   : > { %6600 = vmatprep.mubr.bf16.mxu0 %v6857_v47  ;;  %v8678_v47 = vld [vmem:[%s6955_s25 + $0x5c] sm:$0x1]  ;;  %v9696_v31 = vcombine.low %v8285_v34, %v8294_v17  ;;  %v3931_v52 = vrot.slane %v3930_v63, 4  ;;  %v5862_v53 = vrot.slane %v5846_v60, 9  ;;  %v4628_v21 = vrot.slane %v4626_v30, 4 }
 0x104   : > { %v4629_v48 = vrot.slane %v5784_v1, 5  ;;  %v9698_v18 = vcombine.low %v8311_v32, %v8315_v58  ;;  %v3941_v37 = vrot.slane %v3940_v28, 4  ;;  %v3945_v14 = vrot.slane %v3943_v2, 5  ;;  %v5847_v63 = vld [vmem:[%s6955_s25 + $0x54] sm:$0xe]  ;;  %v8710_v28 = vpop.f32.mrf.mxu1 }
 0x105   : > { %6549 = vmatmul.mubr.bf16.gmra.mxu1 %v9696_v31  ;;  %v3954_v34 = vor.u32 %v3953_v62, %v3950_v16  ;;  %v4633_v17 = vrot.slane %v8622_v22, 5  ;;  %v3964_v60 = vor.u32 %v3963_v42, %v8669_v6  ;;  %v3967_v1 = vshll.u32 %v8678_v47, 16  ;;  %9700 = vst [vmem:[#allocation12_spill] sm:$0xff] %v8710_v28  ;;  %v5848_v62 = vld [vmem:[%s6955_s25 + $0x60] sm:$0xe] }
 0x106   : > { %6552 = vmatprep.mubr.bf16.mxu1 %v9698_v18  ;;  %v3974_v31 = vrot.slane %v3972_v45, 4  ;;  %v3977_v54 = vrot.slane %v3975_v11, 5  ;;  %v9699_v32 = vsel %vm6986_vm2, %v8578_v50, %v8522_v7  ;;  %v3981_v22 = vshll.u32 %v8686_v49, 16 }
 0x107   : > { %v8704_v58 = vcombine.low %v9699_v32, %v3898_v15  ;;  %v3985_v16 = vshrl.u32 %v8686_v49, 16  ;;  %v8712_v2 = vcombine.low %v3912_v43, %v3922_v51  ;;  %v3936_v42 = vsel %vm6986_vm2, %v3931_v52, %v8642_v0  ;;  %v5791_v15 = vld [vmem:[%s6955_s25 + $0x6c] sm:$0xf]  ;;  %v8730_v32 = vld [vmem:[%s6955_s25 + $0x70] sm:$0xf] }
 0x108   : > { %v8719_v7 = vsel %vm7297_vm5, %v5862_v53, %v4626_v30  ;;  %v8723_v50 = vsel %vm7297_vm5, %v4628_v21, %v4629_v48  ;;  %v8726_v45 = vpop.f32.mrf.mxu0  ;;  %v3955_v43 = vrot.slane %v3954_v34, 4  ;;  %v5863_v51 = vrot.slane %v5847_v63, 9  ;;  %v5790_v53 = vld [vmem:[%s6955_s25 + $0x68] sm:$0x1] }
 0x109   : > { %9701 = vst [vmem:[#allocation13_spill] sm:$0xff] %v8726_v45  ;;  %v4635_v11 = vrot.slane %v4633_v17, 4  ;;  %v4636_v18 = vrot.slane %v8678_v47, 5  ;;  %v3946_v0 = vsel %vm6986_vm2, %v3941_v37, %v3945_v14  ;;  %v3965_v30 = vrot.slane %v3964_v60, 4  ;;  %v5850_v45 = vld [vmem:[%s6955_s25 + $0x78] sm:$0xe] }
 0x10a   : > { %6601 = vmatmul.mubr.bf16.gmra.mxu0 %v6858_v12  ;;  %v3969_v52 = vrot.slane %v3967_v1, 5  ;;  %v3978_v21 = vor.u32 %v3977_v54, %v3974_v31  ;;  %v8735_v48 = vrot.slane %v3981_v22, 5  ;;  %v3987_v12 = vrot.slane %v3985_v16, 4  ;;  %v6862_v31 = vld [vmem:[%s6955_s25 + $0xb4] sm:$0xff]  }
 0x10b   : > { %6604 = vmatprep.mubr.bf16.mxu0 %v6861_v55  ;;  %v3996_v34 = vshrl.u32 %v5791_v15, 16  ;;  %v3999_v63 = vshll.u32 %v5791_v15, 16  ;;  %v9702_v47 = vcombine.low %v8331_v5, %v8336_v25  ;;  %v4640_v14 = vrot.slane %v8686_v49, 5  ;;  %v8752_v5 = vpop.f32.mrf.mxu0 }
 0x10c   : > { %v4005_v54 = vshll.u32 %v8730_v32, 16  ;;  %v4009_v60 = vshrl.u32 %v8730_v32, 16  ;;  %v9704_v1 = vcombine.low %v8349_v9, %v8343_v29  ;;  %9705 = vst [vmem:[#allocation15_spill] sm:$0xff] %v8752_v5  ;;  %v8754_v25 = vcombine.low %v3936_v42, %v3946_v0  ;;  %v5794_v29 = vld [vmem:[%s6955_s25 + $0x78] sm:$0xf]  ;;  %v6865_v9 = vld [vmem:[%s6955_s25 + $0xc0] sm:$0xff]  }
 0x10d   : > { %6553 = vmatmul.mubr.bf16.gmra.mxu1 %v9702_v47  ;;  %v8741_v55 = vpop.f32.mrf.mxu1  ;;  %v3960_v22 = vsel %vm6986_vm2, %v3955_v43, %v8669_v6  ;;  %v8761_v49 = vsel %vm7297_vm5, %v5863_v51, %v4633_v17  ;;  %v8765_v16 = vsel %vm7297_vm5, %v4635_v11, %v4636_v18  ;;  %v3970_v15 = vsel %vm6986_vm2, %v3965_v30, %v3969_v52  ;;  %v8778_v43 = vld [vmem:[%s6955_s25 + $0x74] sm:$0x1]  ;;  %v8835_v5 = vld [vmem:[%s6955_s25 + $0x8c] sm:$0x1] }
 0x10e   : > { %9703 = vst [vmem:[#allocation14_spill] sm:$0xff] %v8741_v55  ;;  %6556 = vmatprep.mubr.bf16.mxu1 %v9704_v1  ;;  %v8771_v47 = vrot.slane %v3978_v21, 4  ;;  %v3991_v42 = vshll.u32 %v5790_v53, 16  ;;  %v5864_v0 = vrot.slane %v5848_v62, 9  ;;  %v8774_v1 = vld [vmem:[%s6955_s25 + $0x7c] sm:$0xf]  ;;  %v3988_v6 = vor.u32 %v3987_v12, %v8735_v48  ;;  %v8784_v21 = vpop.f32.mrf.mxu0 }
 0x10f   : > { %v4643_v17 = vrot.slane %v5790_v53, 5  ;;  %v3998_v51 = vrot.slane %v3996_v34, 4  ;;  %v4001_v11 = vrot.slane %v3999_v63, 5  ;;  %v8780_v18 = vpop.f32.mrf.mxu1  ;;  %v4642_v37 = vrot.slane %v4640_v14, 4  ;;  %9707 = vst [vmem:[#allocation17_spill] sm:$0xff] %v8784_v21 }
 0x110   : > { %9706 = vst [vmem:[#allocation16_spill] sm:$0xff] %v8780_v18  ;;  %v8782_v55 = vrot.slane %v4005_v54, 5  ;;  %v4011_v30 = vrot.slane %v4009_v60, 4  ;;  %v4020_v52 = vshrl.u32 %v5794_v29, 16  ;;  %v5849_v53 = vld [vmem:[%s6955_s25 + $0x6c] sm:$0xe]  ;;  %v8791_v18 = vcombine.low %v3960_v22, %v3970_v15 }
 0x111   : > { %v4023_v12 = vshll.u32 %v5794_v29, 16  ;;  %v4029_v34 = vshll.u32 %v8774_v1, 16  ;;  %v4033_v63 = vshrl.u32 %v8774_v1, 16  ;;  %v8793_v54 = vrot.slane %v3991_v42, 5  ;;  %v5797_v62 = vld [vmem:[%s6955_s25 + $0x84] sm:$0xf]  ;;  %v8814_v42 = vpop.f32.mrf.mxu1 }
 0x112   : > { %6605 = vmatmul.mubr.bf16.gmra.mxu0 %v6862_v31  ;;  %9708 = vst [vmem:[#allocation18_spill] sm:$0xff] %v8791_v18  ;;  %v8797_v60 = vsel %vm7297_vm5, %v5864_v0, %v4640_v14  ;;  %v4015_v31 = vshll.u32 %v8778_v43, 16  ;;  %v8805_v28 = vrot.slane %v3988_v6, 4  ;;  %v4647_v22 = vrot.slane %v8730_v32, 5  ;;  %v8809_v15 = vld [vmem:[%s6955_s25 + $0x88] sm:$0xf] }
 0x113   : > { %6608 = vmatprep.mubr.bf16.mxu0 %v6865_v9  ;;  %v4002_v9 = vor.u32 %v4001_v11, %v3998_v51  ;;  %v9709_v14 = vcombine.low %v8358_v4, %v8362_v13  ;;  %9710 = vst [vmem:[#allocation19_spill] sm:$0xff] %v8814_v42  ;;  %v6866_v0 = vld [vmem:[%s6955_s25 + $0xcc] sm:$0xff]   ;;  %v8819_v10 = vsel %vm7297_vm5, %v4642_v37, %v4643_v17  ;;  %v5865_v6 = vrot.slane %v5849_v53, 9  ;;  %v8822_v11 = vpop.f32.mrf.mxu0  ;;  %v8828_v4 = vld [vmem:[%s6955_s25 + $0x80] sm:$0x1] }
 0x114   : > { %v4012_v29 = vor.u32 %v4011_v30, %v8782_v55  ;;  %v4022_v51 = vrot.slane %v4020_v52, 4  ;;  %9711 = vst [vmem:[#allocation20_spill] sm:$0xff] %v8822_v11  ;;  %v9712_v32 = vcombine.low %v8393_v26, %v8397_v35  ;;  %v4025_v13 = vrot.slane %v4023_v12, 5 }
 0x115   : > { %6557 = vmatmul.mubr.bf16.gmra.mxu1 %v9709_v14  ;;  %v8830_v14 = vrot.slane %v4029_v34, 5  ;;  %v4035_v42 = vrot.slane %v4033_v63, 4  ;;  %v4044_v21 = vshrl.u32 %v5797_v62, 16  ;;  %v4017_v37 = vrot.slane %v4015_v31, 5 }
 0x116   : > { %6560 = vmatprep.mubr.bf16.mxu1 %v9712_v32  ;;  %v4650_v17 = vrot.slane %v8778_v43, 5  ;;  %v4047_v30 = vshll.u32 %v5797_v62, 16  ;;  %v4053_v52 = vshll.u32 %v8809_v15, 16  ;;  %v4003_v53 = vrot.slane %v4002_v9, 4  ;;  %v8838_v32 = vpop.f32.mrf.mxu1 }
 0x117   : > { %v4649_v11 = vrot.slane %v4647_v22, 4  ;;  %v4046_v26 = vrot.slane %v4044_v21, 4  ;;  %v4057_v35 = vshrl.u32 %v8809_v15, 16  ;;  %v4013_v12 = vrot.slane %v4012_v29, 4 }
 0x118   : > { %v4039_v34 = vshll.u32 %v8828_v4, 16  ;;  %v4049_v63 = vrot.slane %v4047_v30, 5  ;;  %v8841_v31 = vrot.slane %v4053_v52, 5  ;;  %v4026_v62 = vor.u32 %v4025_v13, %v4022_v51  ;;  %v5851_v52 = vld [vmem:[%s6955_s25 + $0x84] sm:$0xe] }
 0x119   : > { %v8843_v43 = vpop.f32.mrf.mxu0  ;;  %v4036_v9 = vor.u32 %v4035_v42, %v8830_v14  ;;  %v4654_v21 = vrot.slane %v8774_v1, 5  ;;  %v4059_v18 = vrot.slane %v4057_v35, 4  ;;  %v9713_v29 = vcombine.low %v8489_v41, %v8504_v3 }
 0x11a   : > { %6609 = vmatmul.mubr.bf16.gmra.mxu0 %v6866_v0  ;;  %v3994_v30 = vsel %vm6986_vm2, %v8805_v28, %v8793_v54  ;;  %v8859_v51 = vsel %vm7297_vm5, %v5865_v6, %v4647_v22  ;;  %v4063_v42 = vshll.u32 %v8835_v5, 16  ;;  %v4008_v41 = vsel %vm6986_vm2, %v4003_v53, %v8782_v55  ;;  %v5800_v54 = vld [vmem:[%s6955_s25 + $0x90] sm:$0xf] }
 0x11b   : > { %6676 = vmatprep.mubr.bf16.mxu0 %v9713_v29  ;;  %v8862_v1 = vpop.f32.mrf.mxu0  ;;  %v4050_v3 = vor.u32 %v4049_v63, %v4046_v26  ;;  %v4060_v13 = vor.u32 %v4059_v18, %v8841_v31  ;;  %v4661_v28 = vrot.slane %v8809_v15, 5  ;;  %v9715_v22 = vcombine.low %v8406_v44, %v8411_v8 }
 0x11c   : > { %v4018_v6 = vsel %vm6986_vm2, %v4013_v12, %v4017_v37  ;;  %v8880_v55 = vsel %vm7297_vm5, %v4649_v11, %v4650_v17  ;;  %v4041_v53 = vrot.slane %v4039_v34, 5  ;;  %v5866_v18 = vrot.slane %v5850_v45, 9  ;;  %v8889_v12 = vld [vmem:[%s6955_s25 + $0x94] sm:$0xf] }
 0x11d   : > { %v8871_v35 = vpop.f32.mrf.mxu1  ;;  %6561 = vmatmul.mubr.bf16.gmra.mxu1 %v9715_v22  ;;  %v8882_v26 = vpop.f32.mrf.mxu0  ;;  %v4027_v15 = vrot.slane %v4026_v62, 4  ;;  %v4037_v63 = vrot.slane %v4036_v9, 4  ;;  %v4656_v29 = vrot.slane %v4654_v21, 4  ;;  %v4657_v0 = vrot.slane %v8828_v4, 5 }
 0x11e   : > { %9714 = vst [vmem:[#allocation21_spill] sm:$0xff] %v8871_v35  ;;  %6628 = vmatprep.mubr.bf16.mxu1 %v8598_v40  ;;  %v4065_v8 = vrot.slane %v4063_v42, 5  ;;  %v5867_v37 = vrot.slane %v5851_v52, 9  ;;  %v4068_v11 = vshrl.u32 %v5800_v54, 16  ;;  %v4071_v17 = vshll.u32 %v5800_v54, 16 }
 0x11f   : > { %v8886_v44 = vpop.f32.mrf.mxu1  ;;  %v8891_v34 = vpop.f32.mrf.mxu0  ;;  %v4051_v45 = vrot.slane %v4050_v3, 4  ;;  %v4061_v22 = vrot.slane %v4060_v13, 4  ;;  %v4663_v40 = vrot.slane %v4661_v28, 4  ;;  %v4664_v62 = vrot.slane %v8835_v5, 5  ;;  %v8912_v54 = vld [vmem:[%s6955_s25 + $0x98] sm:$0x1] }
 0x120   : > { %9716 = vst [vmem:[#allocation22_spill] sm:$0xff] %v8886_v44  ;;  %v9718_v4 = vsel %vm6986_vm2, %v8771_v47, %v8735_v48  ;;  %v8903_v52 = vcombine.low %v4008_v41, %v4018_v6  ;;  %v8909_v13 = vsel %vm7297_vm5, %v5866_v18, %v4654_v21  ;;  %v4032_v48 = vsel %vm6986_vm2, %v4027_v15, %v8830_v14  ;;  %v5803_v41 = vld [vmem:[%s6955_s25 + $0x9c] sm:$0xf]  ;;  %v8929_v6 = vld [vmem:[%s6955_s25 + $0xa0] sm:$0xf] }
 0x121   : > { %v8894_v9 = vpop.f32.mrf.mxu1  ;;  %v8901_v42 = vcombine.low %v9718_v4, %v3994_v30  ;;  %v6390_v5 = vpop.f32.mrf.mxu0  ;;  %v4042_v47 = vsel %vm6986_vm2, %v4037_v63, %v4041_v53  ;;  %v8924_v30 = vsel %vm7297_vm5, %v4656_v29, %v4657_v0  ;;  %v4077_v21 = vshll.u32 %v8889_v12, 16  ;;  %v9016_v35 = vld [vmem:[%s6955_s25 + $0xb0] sm:$0x1] }
 0x122   : > { %9717 = vst [vmem:[#allocation23_spill] sm:$0xff] %v8894_v9  ;;  %v9719_v9 = vcombine.low %v8561_v20, %v8565_v19  ;;  %v9721_v20 = vcombine.low %v8617_v36, %v8633_v59  ;;  %v8938_v19 = vsel %vm7297_vm5, %v5867_v37, %v4661_v28  ;;  %v4070_v14 = vrot.slane %v4068_v11, 4  ;;  %v8953_v37 = vld [vmem:[%s6955_s25 + $0x90] sm:$0xe] }
 0x123   : > { %v8931_v18 = vpop.f32.mrf.mxu1  ;;  %v4073_v53 = vrot.slane %v4071_v17, 5  ;;  %v4081_v0 = vshrl.u32 %v8889_v12, 16  ;;  %v1598_v15 = vpop.f32.mrf.mxu0  ;;  %v4056_v63 = vsel %vm6986_vm2, %v4051_v45, %v8841_v31  ;;  %v4066_v29 = vsel %vm6986_vm2, %v4061_v22, %v4065_v8 }
 0x124   : > { %6677 = vmatmul.mubr.bf16.vlgmr.msra.gmra.mxu0 %v9719_v9  ;;  %9720 = vst [vmem:[#allocation24_spill] sm:$0xff] %v8931_v18  ;;  %v8948_v36 = vsel %vm7297_vm5, %v4663_v40, %v4664_v62  ;;  %v4087_v59 = vshll.u32 %v8912_v54, 16  ;;  %v4092_v11 = vshrl.u32 %v5803_v41, 16  ;;  %v4095_v17 = vshll.u32 %v5803_v41, 16 }
 0x125   : > { %6680 = vmatprep.mubr.bf16.mxu0 %v9721_v20  ;;  %v6342_v28 = vpop.f32.mrf.mxu1  ;;  %6629 = vmatmul.mubr.bf16.vlgmr.msra.gmra.mxu1 %v8604_v61  ;;  %v4101_v9 = vshll.u32 %v8929_v6, 16  ;;  %v4105_v31 = vshrl.u32 %v8929_v6, 16  ;;  %v6391_v45 = vpop.f32.mrf.mxu0  ;;  %v8959_v22 = vcombine.low %v4032_v48, %v4042_v47  ;;  %v8963_v40 = vrot.slane %v4077_v21, 5  ;;  %v8977_v61 = vld [vmem:[%s6955_s25 + $0xa4] sm:$0x1] }
 0x126   : > { %v1155_v8 = vadd.f32 %v6342_v28, %v8454_v24  ;;  %6632 = vmatprep.mubr.bf16.mxu1 %v8704_v58  ;;  %v8965_v4 = vcombine.low %v4056_v63, %v4066_v29  ;;  %v4074_v20 = vor.u32 %v4073_v53, %v4070_v14  ;;  %v4083_v24 = vrot.slane %v4081_v0, 4  ;;  %v5806_v28 = vld [vmem:[%s6955_s25 + $0xa8] sm:$0xf]  ;;  %v8982_v14 = vld [vmem:[%s6955_s25 + $0xac] sm:$0xf] }
 0x127   : > { %v1146_v62 = vpop.f32.mrf.mxu1  ;;  %v1601_v48 = vpop.f32.mrf.mxu0  ;;  %v8973_v47 = vrot.slane %v4087_v59, 5  ;;  %v5868_v21 = vrot.slane %v8953_v37, 9  ;;  %v4094_v29 = vrot.slane %v4092_v11, 4  ;;  %v4097_v18 = vrot.slane %v4095_v17, 5 }
 0x128   : > { %v8970_v3 = vadd.f32 %v6390_v5, %v1155_v8  ;;  %v1147_v58 = vadd.f32 %v1146_v62, %v8475_v57  ;;  %v8979_v44 = vrot.slane %v4101_v9, 5  ;;  %v4107_v41 = vrot.slane %v4105_v31, 4  ;;  %v9727_v62 = vld [vmem:[#allocation3_spill] sm:$0xff] }
 0x129   : > { %v6343_v63 = vpop.f32.mrf.mxu1  ;;  %v6394_v5 = vpop.f32.mrf.mxu0  ;;  %v9724_v0 = vcombine.low %v8667_v33, %v8675_v23  ;;  %v4116_v59 = vshrl.u32 %v5806_v28, 16  ;;  %v4119_v37 = vshll.u32 %v5806_v28, 16  ;;  %v9725_v11 = vcombine.low %v8719_v7, %v8723_v50 }
 0x12a   : > { %9722 = vst [vmem:[#allocation25_spill] sm:$0xff] %v8970_v3  ;;  %v8984_v53 = vadd.f32 %v1598_v15, %v1147_v58  ;;  %v1158_v57 = vadd.f32 %v6343_v63, %v8511_v38  ;;  %v8993_v17 = vrot.slane %v4074_v20, 4  ;;  %v4084_v15 = vor.u32 %v4083_v24, %v8963_v40  ;;  %v5853_v58 = vld [vmem:[%s6955_s25 + $0x9c] sm:$0xe] }
 0x12b   : > { %v1149_v8 = vpop.f32.mrf.mxu1  ;;  %v4668_v9 = vrot.slane %v8889_v12, 5  ;;  %v4111_v38 = vshll.u32 %v8977_v61, 16  ;;  %v1614_v23 = vpop.f32.mrf.mxu0  ;;  %v4671_v28 = vrot.slane %v8912_v54, 5  ;;  %v4125_v63 = vshll.u32 %v8982_v14, 16 }
 0x12c   : > { %9723 = vst [vmem:[#allocation26_spill] sm:$0xff] %v8984_v53  ;;  %6681 = vmatmul.mubr.bf16.gmra.mxu0 %v9724_v0  ;;  %v8998_v31 = vadd.f32 %v6391_v45, %v1158_v57  ;;  %v1150_v33 = vadd.f32 %v1149_v8, %v9727_v62  ;;  %v4098_v50 = vor.u32 %v4097_v18, %v4094_v29  ;;  %v4675_v12 = vrot.slane %v8929_v6, 5  ;;  %v9728_v57 = vld [vmem:[#allocation7_spill] sm:$0xff]  ;;  %v9729_v6 = vld [vmem:[#allocation9_spill] sm:$0xff] }
 0x12d   : > { %6684 = vmatprep.mubr.bf16.mxu0 %v9725_v11  ;;  %v6346_v7 = vpop.f32.mrf.mxu1  ;;  %6633 = vmatmul.mubr.bf16.gmra.mxu1 %v8712_v2  ;;  %v4108_v20 = vor.u32 %v4107_v41, %v8979_v44  ;;  %v4129_v45 = vshrl.u32 %v8982_v14, 16  ;;  %v6395_v8 = vpop.f32.mrf.mxu0  ;;  %v4118_v54 = vrot.slane %v4116_v59, 4  ;;  %v4121_v11 = vrot.slane %v4119_v37, 5 }
 0x12e   : > { %9726 = vst [vmem:[#allocation27_spill] sm:$0xff] %v8998_v31  ;;  %v9008_v24 = vadd.f32 %v1601_v48, %v1150_v33  ;;  %v1171_v0 = vadd.f32 %v6346_v7, %v9728_v57  ;;  %6636 = vmatprep.mubr.bf16.mxu1 %v8754_v25  ;;  %v4085_v31 = vrot.slane %v4084_v15, 4  ;;  %v4670_v2 = vrot.slane %v4668_v9, 4 }
 0x12f   : > { %v1162_v62 = vpop.f32.mrf.mxu1  ;;  %v4113_v18 = vrot.slane %v4111_v38, 5  ;;  %v5869_v29 = vrot.slane %v5853_v58, 9  ;;  %v1617_v3 = vpop.f32.mrf.mxu0  ;;  %v9018_v48 = vrot.slane %v4125_v63, 5  ;;  %v4131_v33 = vrot.slane %v4129_v45, 4 }
 0x130   : > { %v9012_v41 = vadd.f32 %v6394_v5, %v1171_v0  ;;  %v1163_v53 = vadd.f32 %v1162_v62, %v9729_v6  ;;  %v4099_v57 = vrot.slane %v4098_v50, 4  ;;  %v4109_v25 = vrot.slane %v4108_v20, 4 }
 0x131   : > { %v6347_v7 = vpop.f32.mrf.mxu1  ;;  %v4677_v59 = vrot.slane %v4675_v12, 4  ;;  %v4678_v37 = vrot.slane %v8977_v61, 5  ;;  %v6398_v38 = vpop.f32.mrf.mxu0  ;;  %v9730_v58 = vcombine.low %v8761_v49, %v8765_v16  ;;  %v9029_v63 = vsel %vm7297_vm5, %v5868_v21, %v4668_v9  ;;  %v5854_v21 = vld [vmem:[%s6955_s25 + $0xa8] sm:$0xe] }
 0x132   : > { %v9021_v15 = vadd.f32 %v1614_v23, %v1163_v53  ;;  %v1174_v5 = vadd.f32 %v6347_v7, %v8658_v39  ;;  %v4122_v50 = vor.u32 %v4121_v11, %v4118_v54  ;;  %v9731_v20 = vcombine.low %v8797_v60, %v8819_v10 }
 0x133   : > { %v1165_v45 = vpop.f32.mrf.mxu1  ;;  %v4080_v39 = vsel %vm6986_vm2, %v8993_v17, %v8963_v40  ;;  %v4090_v49 = vsel %vm6986_vm2, %v4085_v31, %v8973_v47  ;;  %v9043_v16 = vsel %vm7297_vm5, %v4670_v2, %v4671_v28  ;;  %v4135_v61 = vshll.u32 %v9016_v35, 16  ;;  %v1630_v60 = vpop.f32.mrf.mxu0  ;;  %v5809_v17 = vld [vmem:[%s6955_s25 + $0xb4] sm:$0xf]  ;;  %v9732_v47 = vld [vmem:[#allocation18_spill] sm:$0xff]  ;;  %v9072_v2 = vld [vmem:[%s6955_s25 + $0xb8] sm:$0xf] }
 0x134   : > { %6685 = vmatmul.mubr.bf16.gmra.mxu0 %v9730_v58  ;;  %v9047_v53 = vadd.f32 %v6395_v8, %v1174_v5  ;;  %v1166_v10 = vadd.f32 %v1165_v45, %v8692_v46  ;;  %v4132_v9 = vor.u32 %v4131_v33, %v9018_v48  ;;  %v4682_v40 = vrot.slane %v8982_v14, 5  ;;  %v9733_v8 = vld [vmem:[#allocation13_spill] sm:$0xff] }
 0x135   : > { %6688 = vmatprep.mubr.bf16.mxu0 %v9731_v20  ;;  %v6350_v23 = vpop.f32.mrf.mxu1  ;;  %6637 = vmatmul.mubr.bf16.gmra.mxu1 %v9732_v47  ;;  %v4104_v31 = vsel %vm6986_vm2, %v4099_v57, %v8979_v44  ;;  %v4114_v28 = vsel %vm6986_vm2, %v4109_v25, %v4113_v18  ;;  %v9061_v46 = vsel %vm7297_vm5, %v5869_v29, %v4675_v12  ;;  %v6399_v11 = vpop.f32.mrf.mxu0  ;;  %v4123_v62 = vrot.slane %v4122_v50, 4  ;;  %v9734_v57 = vld [vmem:[#allocation15_spill] sm:$0xff]  ;;  %v9738_v47 = vld [vmem:[#allocation20_spill] sm:$0xff] }
 0x136   : > { %v9065_v0 = vsel %vm7297_vm5, %v4677_v59, %v4678_v37  ;;  %v9067_v14 = vadd.f32 %v1617_v3, %v1166_v10  ;;  %v1187_v54 = vadd.f32 %v6350_v23, %v9733_v8  ;;  %6640 = vmatprep.mubr.bf16.mxu1 %v8901_v42  ;;  %v5870_v44 = vrot.slane %v5854_v21, 9 }
 0x137   : > { %v1178_v18 = vpop.f32.mrf.mxu1  ;;  %v4137_v6 = vrot.slane %v4135_v61, 5  ;;  %v4685_v12 = vrot.slane %v9016_v35, 5  ;;  %v4140_v29 = vshrl.u32 %v5809_v17, 16  ;;  %v4143_v33 = vshll.u32 %v5809_v17, 16  ;;  %v1633_v25 = vpop.f32.mrf.mxu0 }
 0x138   : > { %v9075_v7 = vadd.f32 %v6398_v38, %v1187_v54  ;;  %v1179_v3 = vadd.f32 %v1178_v18, %v9734_v57  ;;  %v4133_v59 = vrot.slane %v4132_v9, 4  ;;  %v4684_v37 = vrot.slane %v4682_v40, 4  ;;  %v9735_v38 = vld [vmem:[#allocation17_spill] sm:$0xff] }
 0x139   : > { %v6351_v42 = vpop.f32.mrf.mxu1  ;;  %v9078_v5 = vcombine.low %v4080_v39, %v4090_v49  ;;  %v5884_v58 = vcombine.low %v9029_v63, %v9043_v16  ;;  %v9082_v50 = vcombine.low %v4104_v31, %v4114_v28  ;;  %v4149_v35 = vshll.u32 %v9072_v2, 16  ;;  %v6402_v61 = vpop.f32.mrf.mxu0  ;;  %v5812_v49 = vld [vmem:[%s6955_s25 + $0xc0] sm:$0xf]  ;;  %v9096_v16 = vld [vmem:[%s6955_s25 + $0xc4] sm:$0xf] }
 0x13a   : > { %v9085_v45 = vadd.f32 %v1630_v60, %v1179_v3  ;;  %v1190_v20 = vadd.f32 %v6351_v42, %v9735_v38  ;;  %v9736_v21 = vcombine.low %v8859_v51, %v8880_v55  ;;  %v5885_v39 = vcombine.low %v9061_v46, %v9065_v0  ;;  %v9743_v46 = vld [vmem:[#allocation6_spill] sm:$0xff] }
 0x13b   : > { %v4153_v63 = vshrl.u32 %v9072_v2, 16  ;;  %v1181_v10 = vpop.f32.mrf.mxu1  ;;  %v9737_v60 = vcombine.low %v8909_v13, %v8924_v30  ;;  %v4128_v51 = vsel %vm6986_vm2, %v4123_v62, %v9018_v48  ;;  %v9106_v55 = vsel %vm7297_vm5, %v5870_v44, %v4682_v40  ;;  %v1646_v28 = vpop.f32.mrf.mxu0  ;;  %v9118_v30 = vld [vmem:[%s6955_s25 + $0xbc] sm:$0x1]  ;;  %v5855_v48 = vld [vmem:[%s6955_s25 + $0xb4] sm:$0xe] }
 0x13c   : > { %6689 = vmatmul.mubr.bf16.gmra.mxu0 %v9736_v21  ;;  %v4142_v9 = vrot.slane %v4140_v29, 4  ;;  %v4145_v17 = vrot.slane %v4143_v33, 5  ;;  %v9108_v23 = vadd.f32 %v6399_v11, %v1190_v20  ;;  %v1182_v31 = vadd.f32 %v1181_v10, %v9738_v47  ;;  %v9140_v20 = vld [vmem:[%s6955_s25 + $0xc8] sm:$0x1] }
 0x13d   : > { %6692 = vmatprep.mubr.bf16.mxu0 %v9737_v60  ;;  %v4138_v8 = vsel %vm6986_vm2, %v4133_v59, %v4137_v6  ;;  %v9115_v13 = vsel %vm7297_vm5, %v4684_v37, %v4685_v12  ;;  %v6354_v54 = vpop.f32.mrf.mxu1  ;;  %6641 = vmatmul.mubr.bf16.gmra.mxu1 %v8903_v52  ;;  %v9122_v40 = vrot.slane %v4149_v35, 5  ;;  %v4164_v11 = vshrl.u32 %v5812_v49, 16  ;;  %v6403_v29 = vpop.f32.mrf.mxu0 }
 0x13e   : > { %v4167_v62 = vshll.u32 %v5812_v49, 16  ;;  %v4173_v44 = vshll.u32 %v9096_v16, 16  ;;  %v9125_v18 = vadd.f32 %v1633_v25, %v1182_v31  ;;  %v1203_v6 = vadd.f32 %v6354_v54, %v8843_v43  ;;  %6644 = vmatprep.mubr.bf16.mxu1 %v8959_v22 }
 0x13f   : > { %v4155_v12 = vrot.slane %v4153_v63, 4  ;;  %v4177_v33 = vshrl.u32 %v9096_v16, 16  ;;  %v1194_v57 = vpop.f32.mrf.mxu1  ;;  %v4146_v3 = vor.u32 %v4145_v17, %v4142_v9  ;;  %v4159_v52 = vshll.u32 %v9118_v30, 16  ;;  %v1649_v43 = vpop.f32.mrf.mxu0  ;;  %v5815_v9 = vld [vmem:[%s6955_s25 + $0xcc] sm:$0xf] }
 0x140   : > { %v5871_v59 = vrot.slane %v5855_v48, 9  ;;  %v4689_v37 = vrot.slane %v9072_v2, 5  ;;  %v9132_v42 = vadd.f32 %v6402_v61, %v1203_v6  ;;  %v1195_v25 = vadd.f32 %v1194_v57, %v8862_v1  ;;  %v5856_v48 = vld [vmem:[%s6955_s25 + $0xc0] sm:$0xe] }
 0x141   : > { %v9135_v35 = vcombine.low %v4128_v51, %v4138_v8  ;;  %v5886_v22 = vcombine.low %v9106_v55, %v9115_v13  ;;  %v6355_v38 = vpop.f32.mrf.mxu1  ;;  %v4166_v21 = vrot.slane %v4164_v11, 4  ;;  %v4169_v63 = vrot.slane %v4167_v62, 5  ;;  %v6406_v10 = vpop.f32.mrf.mxu0  ;;  %v9162_v8 = vld [vmem:[%s6955_s25 + $0xd0] sm:$0xf] }
 0x142   : > { %v9142_v49 = vrot.slane %v4173_v44, 5  ;;  %v4179_v2 = vrot.slane %v4177_v33, 4  ;;  %v9144_v61 = vadd.f32 %v1646_v28, %v1195_v25  ;;  %v1206_v1 = vadd.f32 %v6355_v38, %v8882_v26 }
 0x143   : > { %v9739_v60 = vcombine.low %v8938_v19, %v8948_v36  ;;  %v4156_v51 = vor.u32 %v4155_v12, %v9122_v40  ;;  %v4692_v55 = vrot.slane %v9118_v30, 5  ;;  %v1197_v17 = vpop.f32.mrf.mxu1  ;;  %v9153_v47 = vrot.slane %v4146_v3, 4  ;;  %v1662_v13 = vpop.f32.mrf.mxu0 }
 0x144   : > { %v9155_v31 = vrot.slane %v4159_v52, 5  ;;  %v9159_v26 = vsel %vm7297_vm5, %v5871_v59, %v4689_v37  ;;  %v4691_v28 = vrot.slane %v4689_v37, 4  ;;  %v9164_v19 = vadd.f32 %v6403_v29, %v1206_v1  ;;  %v9740_v29 = vld [vmem:[#allocation2_spill] sm:$0xff] }
 0x145   : > { %6693 = vmatmul.mubr.bf16.gmra.mxu0 %v9739_v60  ;;  %v1198_v36 = vadd.f32 %v1197_v17, %v8891_v34  ;;  %v4183_v30 = vshll.u32 %v9140_v20, 16  ;;  %v6358_v54 = vpop.f32.mrf.mxu1  ;;  %6645 = vmatmul.mubr.bf16.gmra.mxu1 %v8965_v4  ;;  %v4170_v11 = vor.u32 %v4169_v63, %v4166_v21  ;;  %v4180_v62 = vor.u32 %v4179_v2, %v9142_v49  ;;  %v6407_v57 = vpop.f32.mrf.mxu0 }
 0x146   : > { %6696 = vmatprep.mubr.bf16.mxu0 %v5884_v58  ;;  %v4696_v58 = vrot.slane %v9096_v16, 5  ;;  %v4188_v44 = vshrl.u32 %v5815_v9, 16  ;;  %v4191_v6 = vshll.u32 %v5815_v9, 16  ;;  %v1219_v33 = vadd.f32 %v6358_v54, %v9740_v29  ;;  %6648 = vmatprep.mubr.bf16.mxu1 %v9078_v5 }
 0x147   : > { %v9172_v12 = vadd.f32 %v1649_v43, %v1198_v36  ;;  %v4197_v34 = vshll.u32 %v9162_v8, 16  ;;  %v4201_v3 = vshrl.u32 %v9162_v8, 16  ;;  %v1210_v16 = vpop.f32.mrf.mxu1  ;;  %v4157_v52 = vrot.slane %v4156_v51, 4  ;;  %v9741_v43 = vld [vmem:[#allocation5_spill] sm:$0xff]  ;;  %v1665_v21 = vpop.f32.mrf.mxu0  ;;  %v9742_v36 = vld [vmem:[#allocation4_spill] sm:$0xff] }
 0x148   : > { %v4693_v4 = vsel %vm7297_vm5, %v4691_v28, %v4692_v55  ;;  %v5872_v59 = vrot.slane %v5856_v48, 9  ;;  %v4699_v37 = vrot.slane %v9140_v20, 5  ;;  %v9181_v25 = vadd.f32 %v6406_v10, %v1219_v33  ;;  %v5817_v20 = vld [vmem:[%s6955_s25 + $0xd4] sm:$0x1] }
 0x149   : > { %v1211_v38 = vadd.f32 %v1210_v16, %v9741_v43  ;;  %v4185_v63 = vrot.slane %v4183_v30, 5  ;;  %v4698_v5 = vrot.slane %v4696_v58, 4  ;;  %v6359_v2 = vpop.f32.mrf.mxu1  ;;  %v4171_v1 = vrot.slane %v4170_v11, 4 }
 0x14a   : > { %v4181_v60 = vrot.slane %v4180_v62, 4  ;;  %v4190_v9 = vrot.slane %v4188_v44, 4  ;;  %v4193_v17 = vrot.slane %v4191_v6, 5  ;;  %v1222_v55 = vadd.f32 %v6359_v2, %v9742_v36  ;;  %v6410_v28 = vpop.f32.mrf.mxu0  ;;  %v5857_v6 = vld [vmem:[%s6955_s25 + $0xcc] sm:$0xe]  ;;  %s5932_s25 = sshll.u32 %s9821_s12, 7 }
 0x14b   : > { %v9184_v51 = vadd.f32 %v1662_v13, %v1211_v38  ;;  %v9191_v10 = vrot.slane %v4197_v34, 5  ;;  %v4203_v30 = vrot.slane %v4201_v3, 4  ;;  %v1213_v48 = vpop.f32.mrf.mxu1  ;;  %v4152_v13 = vsel %vm6986_vm2, %v9153_v47, %v9122_v40  ;;  %s9498_s7 = scalar_lea.vmem %s9595_s2, %s5932_s25 }
 0x14c   : > { %v4162_v54 = vsel %vm6986_vm2, %v4157_v52, %v9155_v31  ;;  %v4703_v11 = vrot.slane %v9162_v8, 5  ;;  %v9201_v62 = vadd.f32 %v6407_v57, %v1222_v55  ;;  %v1214_v0 = vadd.f32 %v1213_v48, %v9743_v46  ;;  %v9744_v57 = vld [vmem:[#allocation8_spill] sm:$0xff] }
 0x14d   : > { %6697 = vmatmul.mubr.bf16.gmra.mxu0 %v5885_v39  ;;  %v1678_v39 = vpop.f32.mrf.mxu0  ;;  %v4697_v44 = vsel %vm7297_vm5, %v5872_v59, %v4696_v58  ;;  %v6362_v29 = vpop.f32.mrf.mxu1  ;;  %6649 = vmatmul.mubr.bf16.gmra.mxu1 %v9082_v50  ;;  %v5887_v40 = vcombine.low %v9159_v26, %v4693_v4  ;;  %v4176_v47 = vsel %vm6986_vm2, %v4171_v1, %v9142_v49  ;;  %v4207_v8 = vshll.u32 %v5817_v20, 16  ;;  %v9747_v48 = vld [vmem:[#allocation12_spill] sm:$0xff] }
 0x14e   : > { %6700 = vmatprep.mubr.bf16.mxu0 %v5886_v22  ;;  %v4700_v22 = vsel %vm7297_vm5, %v4698_v5, %v4699_v37  ;;  %v4194_v31 = vor.u32 %v4193_v17, %v4190_v9  ;;  %v9214_v33 = vadd.f32 %v1665_v21, %v1214_v0  ;;  %v1235_v34 = vadd.f32 %v6362_v29, %v9744_v57  ;;  %v9745_v37 = vld [vmem:[#allocation10_spill] sm:$0xff]  ;;  %v9746_v9 = vld [vmem:[#allocation11_spill] sm:$0xff] }
 0x14f   : > { %v6411_v58 = vpop.f32.mrf.mxu0  ;;  %6652 = vmatprep.mubr.bf16.mxu1 %v9135_v35  ;;  %v4186_v3 = vsel %vm6986_vm2, %v4181_v60, %v4185_v63  ;;  %v4204_v50 = vor.u32 %v4203_v30, %v9191_v10  ;;  %v1226_v16 = vpop.f32.mrf.mxu1  ;;  %v5888_v26 = vcombine.low %v4697_v44, %v4700_v22  ;;  %v5873_v52 = vrot.slane %v5857_v6, 9  ;;  %v9748_v44 = vld [vmem:[#allocation14_spill] sm:$0xff] }
 0x150   : > { %v4705_v4 = vrot.slane %v4703_v11, 4  ;;  %v4706_v59 = vrot.slane %v5817_v20, 5  ;;  %v9221_v49 = vadd.f32 %v6410_v28, %v1235_v34  ;;  %v1227_v43 = vadd.f32 %v1226_v16, %v9745_v37  ;;  %v9751_v37 = vld [vmem:[#allocation21_spill] sm:$0xff] }
 0x151   : > { %v1681_v38 = vpop.f32.mrf.mxu0  ;;  %v6363_v21 = vpop.f32.mrf.mxu1  ;;  %v5831_v5 = vcombine.low %v4152_v13, %v4162_v54  ;;  %v5832_v2 = vcombine.low %v4176_v47, %v4186_v3  ;;  %v4195_v1 = vrot.slane %v4194_v31, 4  ;;  %v4205_v17 = vrot.slane %v4204_v50, 4  ;;  %v9749_v47 = vld [vmem:[#allocation16_spill] sm:$0xff] }
 0x152   : > { %v9224_v35 = vadd.f32 %v1678_v39, %v1227_v43  ;;  %v1238_v63 = vadd.f32 %v6363_v21, %v9746_v9  ;;  %v4209_v36 = vrot.slane %v4207_v8, 5  ;;  %v4704_v28 = vsel %vm7297_vm5, %v5873_v52, %v4703_v11 }
 0x153   : > { %v6414_v60 = vpop.f32.mrf.mxu0  ;;  %v1229_v55 = vpop.f32.mrf.mxu1  ;;  %v4707_v20 = vsel %vm7297_vm5, %v4705_v4, %v4706_v59  ;;  %v4200_v0 = vsel %vm6986_vm2, %v4195_v1, %v9191_v10  ;;  %v9750_v10 = vld [vmem:[#allocation19_spill] sm:$0xff] }
 0x154   : > { %v9231_v30 = vadd.f32 %v6411_v58, %v1238_v63  ;;  %v1230_v13 = vadd.f32 %v1229_v55, %v9747_v48  ;;  %v4210_v56 = vsel %vm6986_vm2, %v4205_v17, %v4209_v36  ;;  %v5889_v11 = vcombine.low %v4704_v28, %v4707_v20  ;;  %v9753_v17 = vld [vmem:[#allocation23_spill] sm:$0xff]  ;;  %v9754_v20 = vld [vmem:[#allocation24_spill] sm:$0xff] }
 0x155   : > { %6701 = vmatmul.mubr.bf16.gmra.mxu0 %v5887_v40  ;;  %v1694_v54 = vpop.f32.mrf.mxu0  ;;  %v6366_v46 = vpop.f32.mrf.mxu1  ;;  %6653 = vmatmul.mubr.bf16.gmra.mxu1 %v5831_v5  ;;  %v5833_v34 = vcombine.low %v4200_v0, %v4210_v56  ;;  %v9755_v0 = vld [vmem:[#allocation25_spill] sm:$0xff] }
 0x156   : > { %6704 = vmatprep.mubr.bf16.mxu0 %v5888_v26  ;;  %v9237_v39 = vadd.f32 %v1681_v38, %v1230_v13  ;;  %v1251_v22 = vadd.f32 %v6366_v46, %v9748_v44  ;;  %6656 = vmatprep.mubr.bf16.mxu1 %v5832_v2  ;;  %v9752_v2 = vld [vmem:[#allocation22_spill] sm:$0xff] }
 0x157   : > { %v6415_v6 = vpop.f32.mrf.mxu0  ;;  %v1242_v29 = vpop.f32.mrf.mxu1 }
 0x158   : > { %v9242_v40 = vadd.f32 %v6414_v60, %v1251_v22  ;;  %v1243_v31 = vadd.f32 %v1242_v29, %v9749_v47 }
 0x159   : > { %v1697_v8 = vpop.f32.mrf.mxu0  ;;  %v6367_v57 = vpop.f32.mrf.mxu1 }
 0x15a   : > { %v9245_v58 = vadd.f32 %v1694_v54, %v1243_v31  ;;  %v1254_v3 = vadd.f32 %v6367_v57, %v9750_v10  ;;  %v9757_v57 = vld [vmem:[#allocation27_spill] sm:$0xff] }
 0x15b   : > { %v6418_v50 = vpop.f32.mrf.mxu0  ;;  %v1245_v16 = vpop.f32.mrf.mxu1 }
 0x15c   : > { %v9248_v26 = vadd.f32 %v6415_v6, %v1254_v3  ;;  %v1246_v27 = vadd.f32 %v1245_v16, %v8838_v32 }
 0x15d   : > { %6705 = vmatmul.mubr.bf16.gmra.mxu0 %v5889_v11  ;;  %v1710_v52 = vpop.f32.mrf.mxu0  ;;  %v6370_v4 = vpop.f32.mrf.mxu1  ;;  %6657 = vmatmul.mubr.bf16.gmra.mxu1 %v5833_v34  ;;  %v9756_v11 = vld [vmem:[#allocation26_spill] sm:$0xff] }
 0x15e   : > { %v9251_v59 = vadd.f32 %v1697_v8, %v1246_v27  ;;  %v1267_v43 = vadd.f32 %v6370_v4, %v9751_v37 }
 0x15f   : > { %v6419_v38 = vpop.f32.mrf.mxu0  ;;  %v1258_v21 = vpop.f32.mrf.mxu1 }
 0x160   : > { %v9254_v5 = vadd.f32 %v6418_v50, %v1267_v43  ;;  %v1259_v1 = vadd.f32 %v1258_v21, %v9752_v2 }
 0x161   : > { %v1713_v9 = vpop.f32.mrf.mxu0  ;;  %v6371_v63 = vpop.f32.mrf.mxu1 }
 0x162   : > { %v9257_v60 = vadd.f32 %v1710_v52, %v1259_v1  ;;  %v1270_v36 = vadd.f32 %v6371_v63, %v9753_v17 }
 0x163   : > { %v6486_v32 = vpop.f32.mrf.mxu0  ;;  %v1261_v55 = vpop.f32.mrf.mxu1 }
 0x164   : > { %v9260_v28 = vadd.f32 %v6419_v38, %v1270_v36  ;;  %v1262_v48 = vadd.f32 %v1261_v55, %v9754_v20 }
 0x165   : > { %v2737_v13 = vpop.f32.mrf.mxu0  ;;  %v6438_v54 = vpop.f32.mrf.mxu1 }
 0x166   : > { %v9263_v46 = vadd.f32 %v1713_v9, %v1262_v48  ;;  %v2113_v44 = vadd.f32 %v6438_v54, %v9755_v0 }
 0x167   : > { %v6487_v22 = vpop.f32.mrf.mxu0  ;;  %v1984_v6 = vpop.f32.mrf.mxu1 }
 0x168   : > { %v9266_v56 = vadd.f32 %v6486_v32, %v2113_v44  ;;  %v2111_v29 = vadd.f32 %v1984_v6, %v9756_v11 }
 0x169   : > { %v2740_v47 = vpop.f32.mrf.mxu0  ;;  %v6439_v31 = vpop.f32.mrf.mxu1 }
 0x16a   : > { %v9269_v8 = vadd.f32 %v2737_v13, %v2111_v29  ;;  %v2114_v34 = vadd.f32 %v6439_v31, %v9757_v57 }
 0x16b   : > { %v6490_v10 = vpop.f32.mrf.mxu0  ;;  %v1987_v3 = vpop.f32.mrf.mxu1 }
 0x16c   : > { %v9272_v50 = vadd.f32 %v6487_v22, %v2114_v34  ;;  %v2112_v16 = vadd.f32 %v1987_v3, %v9008_v24 }
 0x16d   : > { %v2753_v27 = vpop.f32.mrf.mxu0  ;;  %v6442_v52 = vpop.f32.mrf.mxu1 }
 0x16e   : > { %v9275_v4 = vadd.f32 %v2740_v47, %v2112_v16  ;;  %v2117_v37 = vadd.f32 %v6442_v52, %v9012_v41 }
 0x16f   : > { %v6491_v43 = vpop.f32.mrf.mxu0  ;;  %v2000_v38 = vpop.f32.mrf.mxu1 }
 0x170   : > { %v9278_v21 = vadd.f32 %v6490_v10, %v2117_v37  ;;  %v2115_v2 = vadd.f32 %v2000_v38, %v9021_v15 }
 0x171   : > { %v2756_v1 = vpop.f32.mrf.mxu0  ;;  %v6443_v9 = vpop.f32.mrf.mxu1 }
 0x172   : > { %v9281_v63 = vadd.f32 %v2753_v27, %v2115_v2  ;;  %v2118_v17 = vadd.f32 %v6443_v9, %v9047_v53 }
 0x173   : > { %v6494_v36 = vpop.f32.mrf.mxu0  ;;  %v2003_v24 = vpop.f32.mrf.mxu1 }
 0x174   : > { %v9284_v32 = vadd.f32 %v6491_v43, %v2118_v17  ;;  %v2116_v55 = vadd.f32 %v2003_v24, %v9067_v14 }
 0x175   : > { %v2769_v20 = vpop.f32.mrf.mxu0  ;;  %v6446_v41 = vpop.f32.mrf.mxu1 }
 0x176   : > { %v9287_v48 = vadd.f32 %v2756_v1, %v2116_v55  ;;  %v2121_v13 = vadd.f32 %v6446_v41, %v9075_v7 }
 0x177   : > { %v6495_v54 = vpop.f32.mrf.mxu0  ;;  %v2016_v15 = vpop.f32.mrf.mxu1 }
 0x178   : > { %v9290_v0 = vadd.f32 %v6494_v36, %v2121_v13  ;;  %v2119_v44 = vadd.f32 %v2016_v15, %v9085_v45 }
 0x179   : > { %v2772_v22 = vpop.f32.mrf.mxu0  ;;  %v6447_v53 = vpop.f32.mrf.mxu1 }
 0x17a   : > { %v9293_v6 = vadd.f32 %v2769_v20, %v2119_v44  ;;  %v2122_v11 = vadd.f32 %v6447_v53, %v9108_v23 }
 0x17b   : > { %v6498_v29 = vpop.f32.mrf.mxu0  ;;  %v2019_v14 = vpop.f32.mrf.mxu1 }
 0x17c   : > { %v9296_v47 = vadd.f32 %v6495_v54, %v2122_v11  ;;  %v2120_v31 = vadd.f32 %v2019_v14, %v9125_v18 }
 0x17d   : > { %v2785_v57 = vpop.f32.mrf.mxu0  ;;  %v6450_v7 = vpop.f32.mrf.mxu1 }
 0x17e   : > { %v9299_v34 = vadd.f32 %v2772_v22, %v2120_v31  ;;  %v2125_v10 = vadd.f32 %v6450_v7, %v9132_v42 }
 0x17f   : > { %v6499_v3 = vpop.f32.mrf.mxu0  ;;  %v2032_v45 = vpop.f32.mrf.mxu1 }
 0x180   : > { %v9302_v16 = vadd.f32 %v6498_v29, %v2125_v10  ;;  %v2123_v27 = vadd.f32 %v2032_v45, %v9144_v61 }
 0x181   : > { %v2788_v52 = vpop.f32.mrf.mxu0  ;;  %v6451_v23 = vpop.f32.mrf.mxu1 }
 0x182   : > { %v9305_v37 = vadd.f32 %v2785_v57, %v2123_v27  ;;  %v2126_v43 = vadd.f32 %v6451_v23, %v9164_v19 }
 0x183   : > { %v6502_v38 = vpop.f32.mrf.mxu0  ;;  %v2035_v18 = vpop.f32.mrf.mxu1 }
 0x184   : > { %v9308_v2 = vadd.f32 %v6499_v3, %v2126_v43  ;;  %v2124_v1 = vadd.f32 %v2035_v18, %v9172_v12 }
 0x185   : > { %v2801_v9 = vpop.f32.mrf.mxu0  ;;  %v6454_v42 = vpop.f32.mrf.mxu1 }
 0x186   : > { %v9311_v17 = vadd.f32 %v2788_v52, %v2124_v1  ;;  %v2129_v36 = vadd.f32 %v6454_v42, %v9181_v25 }
 0x187   : > { %v6503_v24 = vpop.f32.mrf.mxu0  ;;  %v2048_v61 = vpop.f32.mrf.mxu1 }
 0x188   : > { %v9314_v55 = vadd.f32 %v6502_v38, %v2129_v36  ;;  %v2127_v20 = vadd.f32 %v2048_v61, %v9184_v51 }
 0x189   : > { %v2804_v41 = vpop.f32.mrf.mxu0  ;;  %v6455_v19 = vpop.f32.mrf.mxu1 }
 0x18a   : > { %v9317_v13 = vadd.f32 %v2801_v9, %v2127_v20  ;;  %v2130_v54 = vadd.f32 %v6455_v19, %v9201_v62 }
 0x18b   : > { %v6506_v15 = vpop.f32.mrf.mxu0  ;;  %v2051_v12 = vpop.f32.mrf.mxu1 }
 0x18c   : > { %v9320_v44 = vadd.f32 %v6503_v24, %v2130_v54  ;;  %v2128_v22 = vadd.f32 %v2051_v12, %v9214_v33 }
 0x18d   : > { %v2817_v53 = vpop.f32.mrf.mxu0  ;;  %v6458_v25 = vpop.f32.mrf.mxu1 }
 0x18e   : > { %v9323_v11 = vadd.f32 %v2804_v41, %v2128_v22  ;;  %v2133_v29 = vadd.f32 %v6458_v25, %v9221_v49 }
 0x18f   : > { %v6507_v14 = vpop.f32.mrf.mxu0  ;;  %v2064_v51 = vpop.f32.mrf.mxu1 }
 0x190   : > { %v9326_v31 = vadd.f32 %v6506_v15, %v2133_v29  ;;  %v2131_v57 = vadd.f32 %v2064_v51, %v9224_v35 }
 0x191   : > { %v2820_v7 = vpop.f32.mrf.mxu0  ;;  %v6459_v62 = vpop.f32.mrf.mxu1 }
 0x192   : > { %v9329_v10 = vadd.f32 %v2817_v53, %v2131_v57  ;;  %v2134_v3 = vadd.f32 %v6459_v62, %v9231_v30 }
 0x193   : > { %v6510_v45 = vpop.f32.mrf.mxu0  ;;  %v2067_v33 = vpop.f32.mrf.mxu1 }
 0x194   : > { %9758 = vst [vmem:[#allocation3_spill] sm:$0xff] %v9329_v10  ;;  %v9332_v27 = vadd.f32 %v6507_v14, %v2134_v3  ;;  %v2132_v52 = vadd.f32 %v2067_v33, %v9237_v39 }
 0x195   : > { %v2833_v23 = vpop.f32.mrf.mxu0  ;;  %v6462_v49 = vpop.f32.mrf.mxu1 }
 0x196   : > { %9759 = vst [vmem:[#allocation7_spill] sm:$0xff] %v9332_v27  ;;  %v9335_v43 = vadd.f32 %v2820_v7, %v2132_v52  ;;  %v2137_v38 = vadd.f32 %v6462_v49, %v9242_v40 }
 0x197   : > { %v6511_v18 = vpop.f32.mrf.mxu0  ;;  %v2080_v35 = vpop.f32.mrf.mxu1 }
 0x198   : > { %9760 = vst [vmem:[#allocation9_spill] sm:$0xff] %v9335_v43  ;;  %v9338_v1 = vadd.f32 %v6510_v45, %v2137_v38  ;;  %v2135_v9 = vadd.f32 %v2080_v35, %v9245_v58 }
 0x199   : > { %v2836_v42 = vpop.f32.mrf.mxu0  ;;  %v6463_v30 = vpop.f32.mrf.mxu1 }
 0x19a   : > { %v9341_v36 = vadd.f32 %v2833_v23, %v2135_v9  ;;  %v2138_v24 = vadd.f32 %v6463_v30, %v9248_v26 }
 0x19b   : > { %v6514_v61 = vpop.f32.mrf.mxu0  ;;  %v2083_v39 = vpop.f32.mrf.mxu1 }
 0x19c   : > { %9761 = vst [vmem:[#allocation18_spill] sm:$0xff] %v9341_v36  ;;  %v9344_v20 = vadd.f32 %v6511_v18, %v2138_v24  ;;  %v2136_v41 = vadd.f32 %v2083_v39, %v9251_v59 }
 0x19d   : > { %v2849_v19 = vpop.f32.mrf.mxu0  ;;  %v6466_v40 = vpop.f32.mrf.mxu1 }
 0x19e   : > { %9762 = vst [vmem:[#allocation13_spill] sm:$0xff] %v9344_v20  ;;  %v9347_v54 = vadd.f32 %v2836_v42, %v2136_v41  ;;  %v2141_v15 = vadd.f32 %v6466_v40, %v9254_v5 }
 0x19f   : > { %v6515_v12 = vpop.f32.mrf.mxu0  ;;  %v2096_v58 = vpop.f32.mrf.mxu1 }
 0x1a0   : > { %9763 = vst [vmem:[#allocation15_spill] sm:$0xff] %v9347_v54  ;;  %v9350_v22 = vadd.f32 %v6514_v61, %v2141_v15  ;;  %v2139_v53 = vadd.f32 %v2096_v58, %v9257_v60 }
 0x1a1   : > { %v2852_v25 = vpop.f32.mrf.mxu0  ;;  %v6467_v26 = vpop.f32.mrf.mxu1 }
 0x1a2   : > { %v9353_v29 = vadd.f32 %v2849_v19, %v2139_v53  ;;  %v2142_v14 = vadd.f32 %v6467_v26, %v9260_v28 }
 0x1a3   : > { %v6582_v51 = vpop.f32.mrf.mxu0  ;;  %v2099_v59 = vpop.f32.mrf.mxu1 }
 0x1a4   : > { %9764 = vst [vmem:[#allocation17_spill] sm:$0xff] %v9353_v29  ;;  %v9356_v57 = vadd.f32 %v6515_v12, %v2142_v14  ;;  %v2140_v7 = vadd.f32 %v2099_v59, %v9263_v46 }
 0x1a5   : > { %v3620_v62 = vpop.f32.mrf.mxu0  ;;  %v6534_v5 = vpop.f32.mrf.mxu1 }
 0x1a6   : > { %9765 = vst [vmem:[#allocation20_spill] sm:$0xff] %v9356_v57  ;;  %v9359_v3 = vadd.f32 %v2852_v25, %v2140_v7  ;;  %v3363_v45 = vadd.f32 %v6534_v5, %v9266_v56 }
 0x1a7   : > { %v9362_v33 = vpop.f32.mrf.mxu0  ;;  %v3234_v60 = vpop.f32.mrf.mxu1 }
 0x1a8   : > { %9766 = vst [vmem:[#allocation2_spill] sm:$0xff] %v9359_v3  ;;  %v9364_v52 = vadd.f32 %v6582_v51, %v3363_v45  ;;  %v3361_v23 = vadd.f32 %v3234_v60, %v9269_v8 }
 0x1a9   : > { %v9367_v28 = vpop.f32.mrf.mxu0  ;;  %v9369_v49 = vpop.f32.mrf.mxu1 }
 0x1aa   : > { %v9371_v38 = vadd.f32 %v3620_v62, %v3361_v23 }
 0x1ab   : > { %v6586_v46 = vpop.f32.mrf.mxu0  ;;  %v9373_v18 = vpop.f32.mrf.mxu1 }
 0x1ad   : > { %v9375_v35 = vpop.f32.mrf.mxu0  ;;  %v6538_v9 = vpop.f32.mrf.mxu1 }
 0x1ae   : > { %v3367_v56 = vadd.f32 %v6538_v9, %v9278_v21 }
 0x1af   : > { %v9378_v42 = vpop.f32.mrf.mxu0  ;;  %v9380_v30 = vpop.f32.mrf.mxu1 }
 0x1b0   : > { %v9382_v24 = vadd.f32 %v6586_v46, %v3367_v56 }
 0x1b1   : > { %v9384_v8 = vpop.f32.mrf.mxu0  ;;  %v9386_v61 = vpop.f32.mrf.mxu1 }
 0x1b3   : > { %v6590_v39 = vpop.f32.mrf.mxu0  ;;  %v9388_v41 = vpop.f32.mrf.mxu1 }
 0x1b5   : > { %v9390_v19 = vpop.f32.mrf.mxu0  ;;  %v6542_v40 = vpop.f32.mrf.mxu1 }
 0x1b6   : > { %v3371_v15 = vadd.f32 %v6542_v40, %v9290_v0 }
 0x1b7   : > { %v9393_v12 = vpop.f32.mrf.mxu0  ;;  %v9395_v21 = vpop.f32.mrf.mxu1 }
 0x1b8   : > { %v9397_v58 = vadd.f32 %v6590_v39, %v3371_v15 }
 0x1b9   : > { %v9399_v53 = vpop.f32.mrf.mxu0  ;;  %v9401_v25 = vpop.f32.mrf.mxu1 }
 0x1bb   : > { %v6594_v26 = vpop.f32.mrf.mxu0  ;;  %v9403_v14 = vpop.f32.mrf.mxu1 }
 0x1bd   : > { %v9405_v51 = vpop.f32.mrf.mxu0  ;;  %v6546_v59 = vpop.f32.mrf.mxu1 }
 0x1be   : > { %v3375_v7 = vadd.f32 %v6546_v59, %v9302_v16 }
 0x1bf   : > { %v9408_v62 = vpop.f32.mrf.mxu0  ;;  %v9410_v0 = vpop.f32.mrf.mxu1 }
 0x1c0   : > { %v9412_v5 = vadd.f32 %v6594_v26, %v3375_v7 }
 0x1c1   : > { %v9414_v45 = vpop.f32.mrf.mxu0  ;;  %v9416_v60 = vpop.f32.mrf.mxu1 }
 0x1c3   : > { %v6598_v23 = vpop.f32.mrf.mxu0  ;;  %v9418_v46 = vpop.f32.mrf.mxu1 }
 0x1c5   : > { %v9420_v9 = vpop.f32.mrf.mxu0  ;;  %v6550_v56 = vpop.f32.mrf.mxu1 }
 0x1c6   : > { %v3379_v39 = vadd.f32 %v6550_v56, %v9314_v55 }
 0x1c7   : > { %v9423_v40 = vpop.f32.mrf.mxu0  ;;  %v9425_v16 = vpop.f32.mrf.mxu1 }
 0x1c8   : > { %v9427_v15 = vadd.f32 %v6598_v23, %v3379_v39 }
 0x1c9   : > { %v9429_v26 = vpop.f32.mrf.mxu0  ;;  %v9431_v59 = vpop.f32.mrf.mxu1 }
 0x1ca   : > { %9767 = vst [vmem:[#allocation5_spill] sm:$0xff] %v9429_v26 }
 0x1cb   : > { %v6602_v7 = vpop.f32.mrf.mxu0  ;;  %v9433_v3 = vpop.f32.mrf.mxu1 }
 0x1cd   : > { %v9435_v57 = vpop.f32.mrf.mxu0  ;;  %v6554_v29 = vpop.f32.mrf.mxu1 }
 0x1ce   : > { %9768 = vst [vmem:[#allocation4_spill] sm:$0xff] %v9435_v57  ;;  %v3383_v54 = vadd.f32 %v6554_v29, %v9326_v31 }
 0x1cf   : > { %v9438_v20 = vpop.f32.mrf.mxu0  ;;  %v9440_v55 = vpop.f32.mrf.mxu1 }
 0x1d0   : > { %9769 = vst [vmem:[#allocation6_spill] sm:$0xff] %v9438_v20  ;;  %v9442_v56 = vadd.f32 %v6602_v7, %v3383_v54 }
 0x1d1   : > { %v9444_v23 = vpop.f32.mrf.mxu0  ;;  %v9446_v39 = vpop.f32.mrf.mxu1 }
 0x1d2   : > { %9770 = vst [vmem:[#allocation8_spill] sm:$0xff] %v9442_v56  ;;  %9771 = vst [vmem:[#allocation10_spill] sm:$0xff] %v9444_v23 }
 0x1d3   : > { %9772 = vst [vmem:[#allocation11_spill] sm:$0xff] %v9446_v39  ;;  %v6606_v36 = vpop.f32.mrf.mxu0  ;;  %v9448_v43 = vpop.f32.mrf.mxu1 }
 0x1d4   : > { %9773 = vst [vmem:[#allocation12_spill] sm:$0xff] %v9448_v43 }
 0x1d5   : > { %v9450_v27 = vpop.f32.mrf.mxu0  ;;  %v6558_v10 = vpop.f32.mrf.mxu1 }
 0x1d6   : > { %9774 = vst [vmem:[#allocation14_spill] sm:$0xff] %v9450_v27  ;;  %v3387_v57 = vadd.f32 %v6558_v10, %v9338_v1 }
 0x1d7   : > { %v9453_v26 = vpop.f32.mrf.mxu0  ;;  %v9455_v31 = vpop.f32.mrf.mxu1 }
 0x1d8   : > { %9775 = vst [vmem:[#allocation16_spill] sm:$0xff] %v9453_v26  ;;  %v9457_v29 = vadd.f32 %v6606_v36, %v3387_v57 }
 0x1d9   : > { %v9459_v54 = vpop.f32.mrf.mxu0  ;;  %v9461_v7 = vpop.f32.mrf.mxu1 }
 0x1da   : > { %9776 = vst [vmem:[#allocation19_spill] sm:$0xff] %v9457_v29  ;;  %9777 = vst [vmem:[#allocation21_spill] sm:$0xff] %v9459_v54 }
 0x1db   : > { %9778 = vst [vmem:[#allocation22_spill] sm:$0xff] %v9461_v7  ;;  %v6610_v23 = vpop.f32.mrf.mxu0  ;;  %v9463_v56 = vpop.f32.mrf.mxu1 }
 0x1dc   : > { %9779 = vst [vmem:[#allocation23_spill] sm:$0xff] %v9463_v56 }
 0x1dd   : > { %v9465_v20 = vpop.f32.mrf.mxu0  ;;  %v6562_v43 = vpop.f32.mrf.mxu1 }
 0x1de   : > { %9780 = vst [vmem:[#allocation24_spill] sm:$0xff] %v9465_v20  ;;  %v3391_v27 = vadd.f32 %v6562_v43, %v9350_v22  ;;  %v3364_v20 = vadd.f32 %v9369_v49, %v9272_v50  ;;  %v3362_v43 = vadd.f32 %v9373_v18, %v9275_v4  ;;  %v3365_v49 = vadd.f32 %v9380_v30, %v9281_v63 }
 0x1df   : > { %v9468_v39 = vpop.f32.mrf.mxu0  ;;  %v9470_v10 = vpop.f32.mrf.mxu1  ;;  %v3368_v4 = vadd.f32 %v9386_v61, %v9284_v32 }
 0x1e0   : > { %9781 = vst [vmem:[#allocation25_spill] sm:$0xff] %v9468_v39  ;;  %9782 = vst [vmem:[#allocation26_spill] sm:$0xff] %v9470_v10  ;;  %v9472_v1 = vadd.f32 %v6610_v23, %v3391_v27  ;;  %v3750_v27 = vadd.f32 %v9362_v33, %v3364_v20  ;;  %v3751_v32 = vadd.f32 %v9375_v35, %v3365_v49 }
 0x1e1   : > { %v9474_v36 = vpop.f32.mrf.mxu0  ;;  %v9476_v57 = vpop.f32.mrf.mxu1  ;;  %v3754_v61 = vadd.f32 %v9378_v42, %v3368_v4  ;;  %v3372_v49 = vadd.f32 %v9401_v25, %v9296_v47 }
 0x1e2   : > { %9783 = vst [vmem:[#allocation27_spill] sm:$0xff] %v9472_v1  ;;  %9784 = vst [vmem:[#allocation28_spill] sm:$0xff] %v9474_v36 }
 0x1e3   : > { %9785 = vst [vmem:[#allocation29_spill] sm:$0xff] %v9476_v57  ;;  %v9478_v29 = vpop.f32.mrf.mxu1 }
 0x1e4   : > { %v6678_v54 = vpop.f32.mrf.mxu0  ;;  %9786 = vst [vmem:[#allocation30_spill] sm:$0xff] %v9478_v29  ;;  %v3748_v29 = vadd.f32 %v9367_v28, %v3362_v43 }
 0x1e5   : > { %v6630_v56 = vpop.f32.mrf.mxu1 }
 0x1e6   : > { %v4870_v26 = vpop.f32.mrf.mxu0  ;;  %v4502_v23 = vadd.f32 %v6630_v56, %v9364_v52 }
 0x1e7   : > { %v4373_v39 = vpop.f32.mrf.mxu1 }
 0x1e8   : > { %v6679_v22 = vpop.f32.mrf.mxu0  ;;  %v4500_v36 = vadd.f32 %v4373_v39, %v9371_v38  ;;  %v4999_v7 = vadd.f32 %v6678_v54, %v4502_v23  ;;  %v3366_v38 = vadd.f32 %v9388_v41, %v9287_v48 }
 0x1e9   : > { %v6631_v57 = vpop.f32.mrf.mxu1 }
 0x1ea   : > { %v4873_v1 = vpop.f32.mrf.mxu0  ;;  %v4503_v10 = vadd.f32 %v6631_v57, %v3750_v27  ;;  %v4997_v20 = vadd.f32 %v4870_v26, %v4500_v36  ;;  %v3752_v57 = vadd.f32 %v9384_v8, %v3366_v38  ;;  %v5228_v27 = vmul.f32 %v4999_v7, %v4999_v7 }
 0x1eb   : > { %v4376_v18 = vpop.f32.mrf.mxu1 }
 0x1ec   : > { %v6682_v50 = vpop.f32.mrf.mxu0  ;;  %v5000_v33 = vadd.f32 %v6679_v22, %v4503_v10  ;;  %v4501_v52 = vadd.f32 %v4376_v18, %v3748_v29  ;;  %v5226_v54 = vmul.f32 %v4997_v20, %v4997_v20 }
 0x1ed   : > { %v6634_v28 = vpop.f32.mrf.mxu1 }
 0x1ee   : > { %v4886_v56 = vpop.f32.mrf.mxu0  ;;  %v5973_v63 = vpack.c.bf16 %v5000_v33, %v4999_v7  ;;  %v4998_v30 = vadd.f32 %v4873_v1, %v4501_v52  ;;  %v4506_v26 = vadd.f32 %v6634_v28, %v9382_v24  ;;  %v3369_v1 = vadd.f32 %v9395_v21, %v9293_v6 }
 0x1ef   : > { %v4389_v29 = vpop.f32.mrf.mxu1  ;;  %v5229_v4 = vmul.f32 %v5000_v33, %v5000_v33 }
 0x1f0   : > { %v6683_v39 = vpop.f32.mrf.mxu0  ;;  %6045 = vst [vmem:[%s9498_s7 + $0x8] sm:$0xff] %v5973_v63   ;;  %v5968_v48 = vpack.c.bf16 %v4998_v30, %v4997_v20  ;;  %v5189_v41 = vadd.f32 %v4998_v30, %v4997_v20  ;;  %v5227_v10 = vmul.f32 %v4998_v30, %v4998_v30  ;;  %v4504_v43 = vadd.f32 %v4389_v29, %v3751_v32 }
 0x1f1   : > { %v6635_v22 = vpop.f32.mrf.mxu1  ;;  %v5003_v18 = vadd.f32 %v6682_v50, %v4506_v26  ;;  %v3755_v63 = vadd.f32 %v9390_v19, %v3369_v1  ;;  %v3758_v26 = vadd.f32 %v9393_v12, %v3372_v49 }
 0x1f2   : > { %v4889_v36 = vpop.f32.mrf.mxu0  ;;  %5969 = vst [vmem:[%s9498_s7] sm:$0xff] %v5968_v48   ;;  %v5190_v35 = vadd.f32 %v5189_v41, %v4999_v7  ;;  %v5258_v42 = vadd.f32 %v5227_v10, %v5226_v54  ;;  %v4507_v23 = vadd.f32 %v6635_v22, %v3754_v61  ;;  %v5001_v20 = vadd.f32 %v4886_v56, %v4504_v43 }
 0x1f3   : > { %v4392_v52 = vpop.f32.mrf.mxu1  ;;  %v3370_v7 = vadd.f32 %v9403_v14, %v9299_v34  ;;  %v5232_v43 = vmul.f32 %v5003_v18, %v5003_v18 }
 0x1f4   : > { %v6686_v24 = vpop.f32.mrf.mxu0  ;;  %v5259_v28 = vadd.f32 %v5258_v42, %v5228_v27  ;;  %v5191_v8 = vadd.f32 %v5190_v35, %v5000_v33  ;;  %v5004_v38 = vadd.f32 %v6683_v39, %v4507_v23  ;;  %v4505_v6 = vadd.f32 %v4392_v52, %v3752_v57 }
 0x1f5   : > { %v6638_v30 = vpop.f32.mrf.mxu1  ;;  %v5230_v61 = vmul.f32 %v5001_v20, %v5001_v20  ;;  %v3756_v10 = vadd.f32 %v9399_v53, %v3370_v7  ;;  %v3373_v57 = vadd.f32 %v9410_v0, %v9305_v37 }
 0x1f6   : > { %v4902_v21 = vpop.f32.mrf.mxu0  ;;  %v5192_v32 = vadd.f32 %v5191_v8, %v5001_v20  ;;  %v5260_v29 = vadd.f32 %v5259_v28, %v5229_v4  ;;  %v5983_v47 = vpack.c.bf16 %v5004_v38, %v5003_v18  ;;  %v5002_v50 = vadd.f32 %v4889_v36, %v4505_v6 }
 0x1f7   : > { %v4405_v56 = vpop.f32.mrf.mxu1  ;;  %v4510_v39 = vadd.f32 %v6638_v30, %v9397_v58  ;;  %v3376_v36 = vadd.f32 %v9416_v60, %v9308_v2  ;;  %v5233_v53 = vmul.f32 %v5004_v38, %v5004_v38  ;;  %v3759_v0 = vadd.f32 %v9405_v51, %v3373_v57 }
 0x1f8   : > { %v6687_v25 = vpop.f32.mrf.mxu0  ;;  %v5261_v33 = vadd.f32 %v5260_v29, %v5230_v61  ;;  %6047 = vst [vmem:[%s9498_s7 + $0x18] sm:$0xff] %v5983_v47   ;;  %v4508_v54 = vadd.f32 %v4405_v56, %v3755_v63  ;;  %v5978_v48 = vpack.c.bf16 %v5002_v50, %v5001_v20  ;;  %v5193_v41 = vadd.f32 %v5192_v32, %v5002_v50 }
 0x1f9   : > { %v5231_v34 = vmul.f32 %v5002_v50, %v5002_v50  ;;  %v6639_v14 = vpop.f32.mrf.mxu1  ;;  %v5007_v42 = vadd.f32 %v6686_v24, %v4510_v39  ;;  %v3374_v2 = vadd.f32 %v9418_v46, %v9311_v17  ;;  %v3762_v8 = vadd.f32 %v9408_v62, %v3376_v36 }
 0x1fa   : > { %v4905_v19 = vpop.f32.mrf.mxu0  ;;  %v4511_v12 = vadd.f32 %v6639_v14, %v3758_v26  ;;  %6046 = vst [vmem:[%s9498_s7 + $0x10] sm:$0xff] %v5978_v48   ;;  %v5194_v22 = vadd.f32 %v5193_v41, %v5003_v18  ;;  %v5005_v27 = vadd.f32 %v4902_v21, %v4508_v54  ;;  %v3377_v62 = vadd.f32 %v9425_v16, %v9317_v13 }
 0x1fb   : > { %v5262_v58 = vadd.f32 %v5261_v33, %v5231_v34  ;;  %v4408_v35 = vpop.f32.mrf.mxu1  ;;  %v3760_v46 = vadd.f32 %v9414_v45, %v3374_v2  ;;  %v3380_v47 = vadd.f32 %v9431_v59, %v9320_v44  ;;  %v5236_v56 = vmul.f32 %v5007_v42, %v5007_v42 }
 0x1fc   : > { %v6690_v1 = vpop.f32.mrf.mxu0  ;;  %v5008_v23 = vadd.f32 %v6687_v25, %v4511_v12  ;;  %v4509_v49 = vadd.f32 %v4408_v35, %v3756_v10  ;;  %v5195_v52 = vadd.f32 %v5194_v22, %v5004_v38  ;;  %v5234_v24 = vmul.f32 %v5005_v27, %v5005_v27 }
 0x1fd   : > { %v5263_v20 = vadd.f32 %v5262_v58, %v5232_v43  ;;  %v6642_v37 = vpop.f32.mrf.mxu1  ;;  %v3763_v16 = vadd.f32 %v9420_v9, %v3377_v62  ;;  %v3378_v44 = vadd.f32 %v9433_v3, %v9323_v11  ;;  %v3766_v36 = vadd.f32 %v9423_v40, %v3380_v47  ;;  %v9787_v3 = vld [vmem:[#allocation5_spill] sm:$0xff] }
 0x1fe   : > { %v4918_v4 = vpop.f32.mrf.mxu0  ;;  %v5993_v60 = vpack.c.bf16 %v5008_v23, %v5007_v42  ;;  %v5006_v28 = vadd.f32 %v4905_v19, %v4509_v49  ;;  %v5196_v6 = vadd.f32 %v5195_v52, %v5005_v27  ;;  %v4514_v38 = vadd.f32 %v6642_v37, %v9412_v5  ;;  %v9790_v52 = vld [vmem:[#allocation11_spill] sm:$0xff] }
 0x1ff   : > { %v5264_v21 = vadd.f32 %v5263_v20, %v5233_v53  ;;  %v4421_v63 = vpop.f32.mrf.mxu1  ;;  %v5237_v45 = vmul.f32 %v5008_v23, %v5008_v23  ;;  %v9788_v53 = vld [vmem:[#allocation3_spill] sm:$0xff] }
 0x200   : > { %v6691_v18 = vpop.f32.mrf.mxu0  ;;  %6049 = vst [vmem:[%s9498_s7 + $0x28] sm:$0xff] %v5993_v60   ;;  %v5988_v7 = vpack.c.bf16 %v5006_v28, %v5005_v27  ;;  %v5235_v30 = vmul.f32 %v5006_v28, %v5006_v28  ;;  %v4512_v32 = vadd.f32 %v4421_v63, %v3759_v0  ;;  %v5197_v29 = vadd.f32 %v5196_v6, %v5006_v28  ;;  %v9789_v20 = vld [vmem:[#allocation7_spill] sm:$0xff] }
 0x201   : > { %v5265_v61 = vadd.f32 %v5264_v21, %v5234_v24  ;;  %v6643_v17 = vpop.f32.mrf.mxu1  ;;  %v5011_v54 = vadd.f32 %v6690_v1, %v4514_v38  ;;  %v3381_v40 = vadd.f32 %v9440_v55, %v9788_v53  ;;  %v3384_v37 = vadd.f32 %v9790_v52, %v9789_v20  ;;  %v9801_v52 = vld [vmem:[#allocation15_spill] sm:$0xff] }
 0x202   : > { %v4921_v51 = vpop.f32.mrf.mxu0  ;;  %6048 = vst [vmem:[%s9498_s7 + $0x20] sm:$0xff] %v5988_v7   ;;  %v4515_v25 = vadd.f32 %v6643_v17, %v3762_v8  ;;  %v5198_v26 = vadd.f32 %v5197_v29, %v5007_v42  ;;  %v5009_v5 = vadd.f32 %v4918_v4, %v4512_v32  ;;  %v3764_v4 = vadd.f32 %v9787_v3, %v3378_v44  ;;  %v9791_v32 = vld [vmem:[#allocation4_spill] sm:$0xff] }
 0x203   : > { %v5266_v33 = vadd.f32 %v5265_v61, %v5235_v30  ;;  %v4424_v39 = vpop.f32.mrf.mxu1  ;;  %v5240_v60 = vmul.f32 %v5011_v54, %v5011_v54  ;;  %v9792_v61 = vld [vmem:[#allocation9_spill] sm:$0xff]  ;;  %v9793_v29 = vld [vmem:[#allocation12_spill] sm:$0xff] }
 0x204   : > { %v5012_v19 = vadd.f32 %v6691_v18, %v4515_v25  ;;  %v4513_v48 = vadd.f32 %v4424_v39, %v3760_v46  ;;  %v5199_v14 = vadd.f32 %v5198_v26, %v5008_v23  ;;  %v5238_v1 = vmul.f32 %v5009_v5, %v5009_v5  ;;  %v9794_v25 = vld [vmem:[#allocation6_spill] sm:$0xff] }
 0x205   : > { %v6694_v50 = vpop.f32.mrf.mxu0  ;;  %v5267_v34 = vadd.f32 %v5266_v33, %v5236_v56  ;;  %v6646_v13 = vpop.f32.mrf.mxu1  ;;  %v3382_v17 = vadd.f32 %v9793_v29, %v9792_v61  ;;  %v3770_v56 = vadd.f32 %v9794_v25, %v3384_v37  ;;  %v9802_v37 = vld [vmem:[#allocation23_spill] sm:$0xff] }
 0x206   : > { %v6003_v59 = vpack.c.bf16 %v5012_v19, %v5011_v54  ;;  %v5010_v10 = vadd.f32 %v4921_v51, %v4513_v48  ;;  %v5200_v12 = vadd.f32 %v5199_v14, %v5009_v5  ;;  %v4518_v35 = vadd.f32 %v6646_v13, %v9427_v15 }
 0x207   : > { %v4934_v41 = vpop.f32.mrf.mxu0  ;;  %v5268_v43 = vadd.f32 %v5267_v34, %v5237_v45  ;;  %v4437_v22 = vpop.f32.mrf.mxu1  ;;  %v5241_v7 = vmul.f32 %v5012_v19, %v5012_v19  ;;  %v3767_v51 = vadd.f32 %v9791_v32, %v3381_v40  ;;  %v9800_v40 = vld [vmem:[#allocation14_spill] sm:$0xff] }
 0x208   : > { %6051 = vst [vmem:[%s9498_s7 + $0x38] sm:$0xff] %v6003_v59   ;;  %v5998_v58 = vpack.c.bf16 %v5010_v10, %v5009_v5  ;;  %v5239_v27 = vmul.f32 %v5010_v10, %v5010_v10  ;;  %v4516_v42 = vadd.f32 %v4437_v22, %v3763_v16  ;;  %v5201_v49 = vadd.f32 %v5200_v12, %v5010_v10  ;;  %v9796_v16 = vld [vmem:[#allocation10_spill] sm:$0xff] }
 0x209   : > { %v6695_v57 = vpop.f32.mrf.mxu0  ;;  %v5269_v23 = vadd.f32 %v5268_v43, %v5238_v1  ;;  %v6647_v11 = vpop.f32.mrf.mxu1  ;;  %v5015_v6 = vadd.f32 %v6694_v50, %v4518_v35  ;;  %v3768_v44 = vadd.f32 %v9796_v16, %v3382_v17  ;;  %v9797_v59 = vld [vmem:[#allocation18_spill] sm:$0xff]  ;;  %v9805_v17 = vld [vmem:[#allocation21_spill] sm:$0xff] }
 0x20a   : > { %6050 = vst [vmem:[%s9498_s7 + $0x30] sm:$0xff] %v5998_v58   ;;  %v4519_v0 = vadd.f32 %v6647_v11, %v3766_v36  ;;  %v5202_v28 = vadd.f32 %v5201_v49, %v5011_v54  ;;  %v5013_v15 = vadd.f32 %v4934_v41, %v4516_v42  ;;  %v3385_v10 = vadd.f32 %v9455_v31, %v9797_v59  ;;  %v9799_v36 = vld [vmem:[#allocation22_spill] sm:$0xff] }
 0x20b   : > { %v4937_v9 = vpop.f32.mrf.mxu0  ;;  %v5270_v18 = vadd.f32 %v5269_v23, %v5239_v27  ;;  %v4440_v8 = vpop.f32.mrf.mxu1  ;;  %v5244_v22 = vmul.f32 %v5015_v6, %v5015_v6 }
 0x20c   : > { %v5016_v24 = vadd.f32 %v6695_v57, %v4519_v0  ;;  %v4517_v21 = vadd.f32 %v4440_v8, %v3764_v4  ;;  %v5203_v38 = vadd.f32 %v5202_v28, %v5012_v19  ;;  %v5242_v50 = vmul.f32 %v5013_v15, %v5013_v15  ;;  %v9795_v19 = vld [vmem:[#allocation8_spill] sm:$0xff]  ;;  %v9798_v57 = vld [vmem:[#allocation13_spill] sm:$0xff] }
 0x20d   : > { %v6698_v2 = vpop.f32.mrf.mxu0  ;;  %v5271_v30 = vadd.f32 %v5270_v18, %v5240_v60  ;;  %v6650_v55 = vpop.f32.mrf.mxu1  ;;  %v3388_v12 = vadd.f32 %v9799_v36, %v9798_v57  ;;  %v3771_v20 = vadd.f32 %v9800_v40, %v3385_v10  ;;  %v3386_v0 = vadd.f32 %v9802_v37, %v9801_v52  ;;  %v9810_v57 = vld [vmem:[#allocation24_spill] sm:$0xff] }
 0x20e   : > { %v6013_v46 = vpack.c.bf16 %v5016_v24, %v5015_v6  ;;  %v5014_v62 = vadd.f32 %v4937_v9, %v4517_v21  ;;  %v5204_v26 = vadd.f32 %v5203_v38, %v5013_v15  ;;  %v4522_v48 = vadd.f32 %v6650_v55, %v9795_v19 }
 0x20f   : > { %v4950_v63 = vpop.f32.mrf.mxu0  ;;  %v5272_v33 = vadd.f32 %v5271_v30, %v5241_v7  ;;  %v4453_v5 = vpop.f32.mrf.mxu1  ;;  %v5245_v3 = vmul.f32 %v5016_v24, %v5016_v24 }
 0x210   : > { %6053 = vst [vmem:[%s9498_s7 + $0x48] sm:$0xff] %v6013_v46   ;;  %v6008_v39 = vpack.c.bf16 %v5014_v62, %v5013_v15  ;;  %v5243_v54 = vmul.f32 %v5014_v62, %v5014_v62  ;;  %v4520_v41 = vadd.f32 %v4453_v5, %v3767_v51  ;;  %v5205_v14 = vadd.f32 %v5204_v26, %v5014_v62  ;;  %v9803_v15 = vld [vmem:[#allocation16_spill] sm:$0xff]  ;;  %v9806_v62 = vld [vmem:[#allocation17_spill] sm:$0xff] }
 0x211   : > { %v6699_v47 = vpop.f32.mrf.mxu0  ;;  %v5273_v34 = vadd.f32 %v5272_v33, %v5242_v50  ;;  %v6651_v13 = vpop.f32.mrf.mxu1  ;;  %v5019_v9 = vadd.f32 %v6698_v2, %v4522_v48  ;;  %v3774_v8 = vadd.f32 %v9803_v15, %v3388_v12  ;;  %v3772_v46 = vadd.f32 %v9805_v17, %v3386_v0  ;;  %v9809_v26 = vld [vmem:[#allocation29_spill] sm:$0xff]  ;;  %v9811_v12 = vld [vmem:[#allocation2_spill] sm:$0xff]  ;;  %v9815_v0 = vld [vmem:[#allocation28_spill] sm:$0xff] }
 0x212   : > { %6052 = vst [vmem:[%s9498_s7 + $0x40] sm:$0xff] %v6008_v39   ;;  %v4523_v1 = vadd.f32 %v6651_v13, %v3770_v56  ;;  %v5206_v58 = vadd.f32 %v5205_v14, %v5015_v6  ;;  %v5017_v35 = vadd.f32 %v4950_v63, %v4520_v41  ;;  %v9808_v56 = vld [vmem:[#allocation20_spill] sm:$0xff] }
 0x213   : > { %v4953_v45 = vpop.f32.mrf.mxu0  ;;  %v5274_v27 = vadd.f32 %v5273_v34, %v5243_v54  ;;  %v4456_v42 = vpop.f32.mrf.mxu1  ;;  %v3392_v50 = vadd.f32 %v9809_v26, %v9808_v56  ;;  %v5248_v39 = vmul.f32 %v5019_v9, %v5019_v9 }
 0x214   : > { %v5020_v23 = vadd.f32 %v6699_v47, %v4523_v1  ;;  %v4521_v49 = vadd.f32 %v4456_v42, %v3768_v44  ;;  %v5207_v53 = vadd.f32 %v5206_v58, %v5016_v24  ;;  %v5246_v2 = vmul.f32 %v5017_v35, %v5017_v35  ;;  %v9804_v24 = vld [vmem:[#allocation19_spill] sm:$0xff]  ;;  %v9807_v47 = vld [vmem:[#allocation26_spill] sm:$0xff] }
 0x215   : > { %v6702_v43 = vpop.f32.mrf.mxu0  ;;  %v5275_v4 = vadd.f32 %v5274_v27, %v5244_v22  ;;  %v6654_v31 = vpop.f32.mrf.mxu1  ;;  %v3389_v25 = vadd.f32 %v9807_v47, %v9806_v62  ;;  %v9812_v1 = vld [vmem:[#allocation30_spill] sm:$0xff] }
 0x216   : > { %v6023_v60 = vpack.c.bf16 %v5020_v23, %v5019_v9  ;;  %v5018_v28 = vadd.f32 %v4953_v45, %v4521_v49  ;;  %v5208_v6 = vadd.f32 %v5207_v53, %v5017_v35  ;;  %v4526_v38 = vadd.f32 %v6654_v31, %v9804_v24 }
 0x217   : > { %v4966_v11 = vpop.f32.mrf.mxu0  ;;  %v5276_v21 = vadd.f32 %v5275_v4, %v5245_v3  ;;  %v4469_v63 = vpop.f32.mrf.mxu1  ;;  %v5249_v13 = vmul.f32 %v5020_v23, %v5020_v23  ;;  %v3775_v36 = vadd.f32 %v9810_v57, %v3389_v25  ;;  %v3390_v22 = vadd.f32 %v9812_v1, %v9811_v12 }
 0x218   : > { %6055 = vst [vmem:[%s9498_s7 + $0x58] sm:$0xff] %v6023_v60   ;;  %v6018_v7 = vpack.c.bf16 %v5018_v28, %v5017_v35  ;;  %v5247_v30 = vmul.f32 %v5018_v28, %v5018_v28  ;;  %v4524_v55 = vadd.f32 %v4469_v63, %v3771_v20  ;;  %v5209_v61 = vadd.f32 %v5208_v6, %v5018_v28  ;;  %v9813_v35 = vld [vmem:[#allocation25_spill] sm:$0xff] }
 0x219   : > { %v6703_v18 = vpop.f32.mrf.mxu0  ;;  %v5277_v51 = vadd.f32 %v5276_v21, %v5246_v2  ;;  %v6655_v29 = vpop.f32.mrf.mxu1  ;;  %v5023_v45 = vadd.f32 %v6702_v43, %v4526_v38  ;;  %v3778_v42 = vadd.f32 %v9813_v35, %v3392_v50  ;;  %v3776_v60 = vadd.f32 %v9815_v0, %v3390_v22 }
 0x21a   : > { %6054 = vst [vmem:[%s9498_s7 + $0x50] sm:$0xff] %v6018_v7   ;;  %v4527_v33 = vadd.f32 %v6655_v29, %v3774_v8  ;;  %v5210_v54 = vadd.f32 %v5209_v61, %v5019_v9  ;;  %v5021_v48 = vadd.f32 %v4966_v11, %v4524_v55 }
 0x21b   : > { %v4969_v32 = vpop.f32.mrf.mxu0  ;;  %v5278_v19 = vadd.f32 %v5277_v51, %v5247_v30  ;;  %v4472_v41 = vpop.f32.mrf.mxu1 }
 0x21c   : > { %v5024_v34 = vadd.f32 %v6703_v18, %v4527_v33  ;;  %v4525_v14 = vadd.f32 %v4472_v41, %v3772_v46  ;;  %v5211_v44 = vadd.f32 %v5210_v54, %v5020_v23  ;;  %v5250_v43 = vmul.f32 %v5021_v48, %v5021_v48  ;;  %v9814_v23 = vld [vmem:[#allocation27_spill] sm:$0xff] }
 0x21d   : > { %v6706_v5 = vpop.f32.mrf.mxu0  ;;  %v5279_v16 = vadd.f32 %v5278_v19, %v5248_v39  ;;  %v6658_v59 = vpop.f32.mrf.mxu1  ;;  %v5252_v18 = vmul.f32 %v5023_v45, %v5023_v45 }
 0x21e   : > { %v6033_v58 = vpack.c.bf16 %v5024_v34, %v5023_v45  ;;  %v5022_v27 = vadd.f32 %v4969_v32, %v4525_v14  ;;  %v5212_v9 = vadd.f32 %v5211_v44, %v5021_v48  ;;  %v4530_v53 = vadd.f32 %v6658_v59, %v9814_v23 }
 0x21f   : > { %v4982_v10 = vpop.f32.mrf.mxu0  ;;  %v5280_v49 = vadd.f32 %v5279_v16, %v5249_v13  ;;  %v4485_v11 = vpop.f32.mrf.mxu1  ;;  %v5253_v30 = vmul.f32 %v5024_v34, %v5024_v34 }
 0x220   : > { %6057 = vst [vmem:[%s9498_s7 + $0x68] sm:$0xff] %v6033_v58   ;;  %v6028_v3 = vpack.c.bf16 %v5022_v27, %v5021_v48  ;;  %v5251_v4 = vmul.f32 %v5022_v27, %v5022_v27  ;;  %v4528_v31 = vadd.f32 %v4485_v11, %v3775_v36  ;;  %v5213_v20 = vadd.f32 %v5212_v9, %v5022_v27 }
 0x221   : > { %v5281_v40 = vadd.f32 %v5280_v49, %v5250_v43  ;;  %v6659_v52 = vpop.f32.mrf.mxu1  ;;  %v6707_v37 = vpop.f32.mrf.mxu0  ;;  %v5027_v21 = vadd.f32 %v6706_v5, %v4530_v53 }
 0x222   : > { %6056 = vst [vmem:[%s9498_s7 + $0x60] sm:$0xff] %v6028_v3   ;;  %v4531_v28 = vadd.f32 %v6659_v52, %v3778_v42  ;;  %v5214_v15 = vadd.f32 %v5213_v20, %v5023_v45  ;;  %v5025_v6 = vadd.f32 %v4982_v10, %v4528_v31 }
 0x223   : > { %v5282_v8 = vadd.f32 %v5281_v40, %v5251_v4  ;;  %v4488_v2 = vpop.f32.mrf.mxu1  ;;  %v4985_v55 = vpop.f32.mrf.mxu0  ;;  %v5256_v56 = vmul.f32 %v5027_v21, %v5027_v21 }
 0x224   : > { %v5028_v63 = vadd.f32 %v6707_v37, %v4531_v28  ;;  %v4529_v7 = vadd.f32 %v4488_v2, %v3776_v60  ;;  %v5215_v38 = vadd.f32 %v5214_v15, %v5024_v34  ;;  %v5254_v29 = vmul.f32 %v5025_v6, %v5025_v6 }
 0x225   : > { %v5283_v24 = vadd.f32 %v5282_v8, %v5252_v18 }
 0x226   : > { %v6043_v32 = vpack.c.bf16 %v5028_v63, %v5027_v21  ;;  %v5026_v51 = vadd.f32 %v4985_v55, %v4529_v7  ;;  %v5216_v61 = vadd.f32 %v5215_v38, %v5025_v6  ;;  %v5257_v33 = vmul.f32 %v5028_v63, %v5028_v63 }
 0x227   : > { %v5284_v17 = vadd.f32 %v5283_v24, %v5253_v30 }
 0x228   : > { %6059 = vst [vmem:[%s9498_s7 + $0x78] sm:$0xff] %v6043_v32   ;;  %v6038_v46 = vpack.c.bf16 %v5026_v51, %v5025_v6  ;;  %v5255_v62 = vmul.f32 %v5026_v51, %v5026_v51  ;;  %v5217_v25 = vadd.f32 %v5216_v61, %v5026_v51 }
 0x229   : > { %v5285_v47 = vadd.f32 %v5284_v17, %v5254_v29 }
 0x22a   : > { %6058 = vst [vmem:[%s9498_s7 + $0x70] sm:$0xff] %v6038_v46   ;;  %v5218_v26 = vadd.f32 %v5217_v25, %v5027_v21 }
 0x22b   : > { %v5286_v50 = vadd.f32 %v5285_v47, %v5255_v62 }
 0x22c   : > { %v5219_v5 = vadd.f32 %v5218_v26, %v5028_v63 }
 0x22d   : > { %v5287_v39 = vadd.f32 %v5286_v50, %v5256_v56 }
 0x22e   : > { %v5220_v54 = vrot.slane %v5219_v5, 4 }
 0x22f   : > { %v5288_v19 = vadd.f32 %v5287_v39, %v5257_v33 }
 0x230   : > { %v5221_v48 = vadd.f32 %v5220_v54, %v5219_v5 }
 0x231   : > { %v5289_v41 = vrot.slane %v5288_v19, 4 }
 0x232   : > { %v5222_v45 = vrot.slane %v5221_v48, 2 }
 0x233   : > { %v5290_v34 = vadd.f32 %v5289_v41, %v5288_v19 }
 0x234   : > { %v5223_v14 = vadd.f32 %v5222_v45, %v5221_v48 }
 0x235   : > { %v5291_v13 = vrot.slane %v5290_v34, 2 }
 0x236   : > { %v5224_v16 = vrot.slane %v5223_v14, 1 }
 0x237   : > { %v5292_v44 = vadd.f32 %v5291_v13, %v5290_v34 }
 0x238   : > { %v5225_v10 = vadd.f32 %v5224_v16, %v5223_v14 }
 0x239   : > { %v5293_v59 = vrot.slane %v5292_v44, 1 }
 0x23b   : > { %v5294_v57 = vadd.f32 %v5293_v59, %v5292_v44 }
 0x23d   : > { %v5296_v36 = vsel %vm5295_vm6, %v5225_v10, %v5294_v57 }
 0x23e   : > { %5297 = vst [vmem:[%s226_s11] sm:$0x3] %v5296_v36 }
 0x23f PF: > { %s14_s14 = sadd.s32 1, %s6900_s14   ;;  %s9816_s12 = smov %s6896_s13 }
 0x240   : > { %p11_p5 = scmp.ge.s32.totalorder %s14_s14, 4   ;;  %s9817_s13 = smov %s9819_s15 }
 0x242   :  { %13 = sbr.rel (!%p11_p5) target bundleno = 2 (0x2), region = 75 }

</bundles_post_ra>
